<compile_context>
chip_gen: v6e
topology: v6e:2x2x1
jax: 0.10.0
libtpu: 0.0.40
codegen_flags: <defaults>
</compile_context>

<pallas_src>
import functools

import jax
import jax.numpy as jnp
import numpy as np
from jax.experimental import pallas as pl
from jax.experimental.pallas import tpu as pltpu


# ----------------------------------------------------------------------------
# Pallas kernel: whole forward pass (L-layer LSTM + FC) in one invocation
# ----------------------------------------------------------------------------
def _mcdlstm_kernel(no_layers, x_ref, *refs):
    """Argument order (after the static `no_layers`):

      x_ref            : (B*T, Din)  batch-major flattened input
      per layer l      : wx_l, wh_l, b_l
          wx_0         : (Din, 16H)  gate-replicated W_ih^T of layer 0
          wx_l (l>0)   : (4H, 16H)   gate-replicated W_ih^T, rows >= H zero
          wh_l         : (4H, 16H)   gate-replicated W_hh^T, rows >= H zero
          b_l          : (1, 16H)    gate-replicated (b_ih + b_hh)
      wfc              : (4H, O)     W_fc^T, rows >= H zero
      bfc              : (1, O)
      out_ref          : (B, O)
      hN_ref, cN_ref   : (L, B, H)   final hidden / cell per layer
      y_sc             : (T*B, 4H)   VMEM scratch: time-major inter-layer
                                     activations ("wide" replicated form)

    Gate layout: each 4H-wide chunk of the 16H gate projection holds ONE gate
    (PyTorch order i, f, g, o) with its H true columns replicated 4x, so every
    chunk is a whole vreg and all gate math is whole-vreg elementwise -- no
    lane slicing inside the recurrence.  The carried h/c are (B, 4H) with the
    true (B, H) state replicated 4x; the zero-padded weight rows make the
    replication transparent to every downstream matmul.
    """
    w_refs = refs[:3 * no_layers]
    wfc_ref = refs[3 * no_layers]
    bfc_ref = refs[3 * no_layers + 1]
    out_ref = refs[3 * no_layers + 2]
    hN_ref = refs[3 * no_layers + 3]
    cN_ref = refs[3 * no_layers + 4]
    y_sc = refs[3 * no_layers + 5]

    B = out_ref.shape[0]
    H = hN_ref.shape[-1]
    H4 = 4 * H                       # width of one gate chunk / wide h,c state
    T = y_sc.shape[0] // B

    h_wide = jnp.zeros((B, H4), jnp.float32)
    for l in range(no_layers):
        wx = w_refs[3 * l][...]
        wh = w_refs[3 * l + 1][...]
        b = w_refs[3 * l + 2][...]

        # Hoisted input projection for the whole sequence: one big matmul.
        if l == 0:
            xp = jnp.dot(x_ref[...], wx,
                         preferred_element_type=jnp.float32) + b  # (B*T, 16H)
            xp = xp.reshape(B, T, 4 * H4)                         # batch-major
        else:
            xp = jnp.dot(y_sc[...], wx,
                         preferred_element_type=jnp.float32) + b  # (T*B, 16H)

        h_wide = jnp.zeros((B, H4), jnp.float32)
        c_wide = jnp.zeros((B, H4), jnp.float32)
        for t in range(T):                            # static unroll (T small)
            x_t = xp[:, t, :] if l == 0 else xp[t * B:(t + 1) * B, :]
            gates = x_t + jnp.dot(h_wide, wh,
                                  preferred_element_type=jnp.float32)  # (B,16H)
            # whole-vreg activations: each 4H chunk is one gate (i, f, g, o)
            i_a = jax.nn.sigmoid(gates[:, 0 * H4:1 * H4])
            f_a = jax.nn.sigmoid(gates[:, 1 * H4:2 * H4])
            g_a = jnp.tanh(gates[:, 2 * H4:3 * H4])
            o_a = jax.nn.sigmoid(gates[:, 3 * H4:4 * H4])
            c_wide = f_a * c_wide + i_a * g_a
            h_wide = o_a * jnp.tanh(c_wide)
            if l + 1 < no_layers:                     # feed the next layer
                y_sc[pl.ds(t * B, B), :] = h_wide
        hN_ref[l] = h_wide[:, :H]                     # true state = first H lanes
        cN_ref[l] = c_wide[:, :H]

    # FC on the top layer's last-step hidden; zero-padded W_fc^T makes the
    # replicated lanes of h_wide contract against zeros.
    out_ref[...] = (jnp.dot(h_wide, wfc_ref[...],
                            preferred_element_type=jnp.float32)
                    + bfc_ref[...]).astype(out_ref.dtype)


# ----------------------------------------------------------------------------
# One-time weight preprocessing (outside the jitted hot path)
# ----------------------------------------------------------------------------
def _replicate_gate_cols(w_t, hidden_dim):
    """w_t: (K, 4H) with PyTorch gate-column order [i | f | g | o].
    Returns (K, 16H): each gate's H columns replicated 4x into its own
    contiguous 4H-wide chunk (one full 128-lane vreg for H = 32)."""
    H = hidden_dim
    chunks = []
    for m in range(4):
        blk = w_t[:, m * H:(m + 1) * H]
        chunks.append(jnp.concatenate([blk, blk, blk, blk], axis=1))
    return jnp.concatenate(chunks, axis=1)


def prepare_params(params, no_layers, hidden_dim):
    """Transpose, replicate the gate columns to whole-vreg chunks, zero-pad
    the recurrent / upper-layer / fc weights to 4H input rows (so the
    kernel's replicated 'wide' h contracts against zeros), and fuse the two
    LSTM biases.  Done once at init, not per forward call."""
    H = hidden_dim
    prepped = []
    for l in range(no_layers):
        wx = _replicate_gate_cols(
            jnp.asarray(params[f"w_ih_l{l}"], jnp.float32).T, H)
        if l > 0:
            wx = jnp.pad(wx, ((0, 3 * H), (0, 0)))            # (4H, 16H)
        wh = jnp.pad(_replicate_gate_cols(
            jnp.asarray(params[f"w_hh_l{l}"], jnp.float32).T, H),
            ((0, 3 * H), (0, 0)))                             # (4H, 16H)
        b = _replicate_gate_cols(
            (params[f"b_ih_l{l}"] + params[f"b_hh_l{l}"]
             ).astype(jnp.float32).reshape(1, 4 * H), H)      # (1, 16H)
        prepped += [wx, wh, b]
    wfc = jnp.pad(jnp.asarray(params["w_fc"], jnp.float32).T,
                  ((0, 3 * H), (0, 0)))                       # (4H, O)
    bfc = jnp.asarray(params["b_fc"], jnp.float32).reshape(1, -1)  # (1, O)
    return tuple(prepped) + (wfc, bfc)


# ----------------------------------------------------------------------------
# Forward wrapper (jitted hot path)
# ----------------------------------------------------------------------------
def mcdlstm_forward(prepped, x, no_layers, hidden_dim):
    """x: (B, T, input_size), batch-first (PyTorch convention).  Returns
    (out (B, output_dim), (h_n (L, H), c_n (L, H))) -- the hidden state of the
    LAST batch sample, matching the PyTorch module's hidden=None, B>1 path."""
    B, T, Din = x.shape
    H = hidden_dim
    out_dim = prepped[-1].shape[-1]

    x_flat = x.reshape(B * T, Din).astype(jnp.float32)  # free reshape, no transpose

    out, hN, cN = pl.pallas_call(
        functools.partial(_mcdlstm_kernel, no_layers),
        out_shape=(
            jax.ShapeDtypeStruct((B, out_dim), jnp.float32),
            jax.ShapeDtypeStruct((no_layers, B, H), jnp.float32),
            jax.ShapeDtypeStruct((no_layers, B, H), jnp.float32),
        ),
        scratch_shapes=[pltpu.VMEM((T * B, 4 * H), jnp.float32)],
    )(x_flat, *prepped)

    # PyTorch returns last_hidden of the LAST batch sample, unbatched: (L, H)
    h_n = hN[:, -1, :]
    c_n = cN[:, -1, :]
    return out, (h_n, c_n)


# ----------------------------------------------------------------------------
# Pure-JAX reference (for correctness check)
# ----------------------------------------------------------------------------
def _ref_lstm_layer(x_tbd, w_ih, w_hh, b_ih, b_hh):
    T, B, Din = x_tbd.shape
    H = w_hh.shape[1]

    def step(carry, x_t):
        h, c = carry
        g = x_t @ w_ih.T + b_ih + h @ w_hh.T + b_hh
        i, f, gg, o = jnp.split(g, 4, axis=-1)
        i = jax.nn.sigmoid(i)
        f = jax.nn.sigmoid(f)
        gg = jnp.tanh(gg)
        o = jax.nn.sigmoid(o)
        c = f * c + i * gg
        h = o * jnp.tanh(c)
        return (h, c), h

    init = (jnp.zeros((B, H), jnp.float32), jnp.zeros((B, H), jnp.float32))
    (hN, cN), ys = jax.lax.scan(step, init, x_tbd)
    return ys, hN, cN


def _ref_forward(params, x, no_layers):
    layer_in = jnp.transpose(x, (1, 0, 2)).astype(jnp.float32)
    h_finals, c_finals = [], []
    for l in range(no_layers):
        y, hN, cN = _ref_lstm_layer(
            layer_in,
            params[f"w_ih_l{l}"], params[f"w_hh_l{l}"],
            params[f"b_ih_l{l}"], params[f"b_hh_l{l}"],
        )
        layer_in = y
        h_finals.append(hN)
        c_finals.append(cN)
    out_last = h_finals[-1]
    out = out_last @ params["w_fc"].T + params["b_fc"]
    h_n = jnp.stack(h_finals)[:, -1, :]
    c_n = jnp.stack(c_finals)[:, -1, :]
    return out, (h_n, c_n)


# ----------------------------------------------------------------------------
# Deterministic parameter init (PyTorch-style uniform(-1/sqrt(H), 1/sqrt(H)))
# ----------------------------------------------------------------------------
def init_params(key, no_layers, input_size, hidden_dim, output_dim):
    k = 1.0 / np.sqrt(hidden_dim)
    params = {}
    for l in range(no_layers):
        din = input_size if l == 0 else hidden_dim
        key, k1, k2, k3, k4 = jax.random.split(key, 5)
        params[f"w_ih_l{l}"] = jax.random.uniform(
            k1, (4 * hidden_dim, din), jnp.float32, -k, k)
        params[f"w_hh_l{l}"] = jax.random.uniform(
            k2, (4 * hidden_dim, hidden_dim), jnp.float32, -k, k)
        params[f"b_ih_l{l}"] = jax.random.uniform(
            k3, (4 * hidden_dim,), jnp.float32, -k, k)
        params[f"b_hh_l{l}"] = jax.random.uniform(
            k4, (4 * hidden_dim,), jnp.float32, -k, k)
    key, k1, k2 = jax.random.split(key, 3)
    params["w_fc"] = jax.random.uniform(
        k1, (output_dim, hidden_dim), jnp.float32, -k, k)
    params["b_fc"] = jax.random.uniform(k2, (output_dim,), jnp.float32, -k, k)
    return params


# ----------------------------------------------------------------------------
# Main
# ----------------------------------------------------------------------------
if __name__ == "__main__":
    no_layers = 2
    input_size = 16
    hidden_dim = 32
    output_dim = 4
    batch = 2       # > 1, so the PyTorch batched (hidden=None) path is modeled
    seq = 8

    key = jax.random.PRNGKey(0)
    key, pkey, xkey = jax.random.split(key, 3)
    params = init_params(pkey, no_layers, input_size, hidden_dim, output_dim)
    x = jax.random.normal(xkey, (batch, seq, input_size), jnp.float32)

    # one-time weight prep (transpose / gate-replicate / zero-pad / bias fuse)
    prepped = prepare_params(params, no_layers, hidden_dim)

    fwd = jax.jit(functools.partial(
        mcdlstm_forward, no_layers=no_layers, hidden_dim=hidden_dim))
    out, (h_n, c_n) = fwd(prepped, x)
    jax.block_until_ready((out, h_n, c_n))

    # correctness check against a pure-JAX reference
    out_ref, (h_ref, c_ref) = _ref_forward(params, x, no_layers)
    np.testing.assert_allclose(np.asarray(out), np.asarray(out_ref),
                               rtol=1e-5, atol=1e-5)
    np.testing.assert_allclose(np.asarray(h_n), np.asarray(h_ref),
                               rtol=1e-5, atol=1e-5)
    np.testing.assert_allclose(np.asarray(c_n), np.asarray(c_ref),
                               rtol=1e-5, atol=1e-5)

    assert out.shape == (batch, output_dim)
    assert h_n.shape == (no_layers, hidden_dim)
    assert c_n.shape == (no_layers, hidden_dim)

    print("KERNEL_OK")
</pallas_src>

<mosaic_0001>
module attributes {stable_mosaic.version = 11 : i64} {
  func.func @_mcdlstm_kernel(%arg0: memref<16x16xf32, #tpu.memory_space<vmem>>, %arg1: memref<16x512xf32, #tpu.memory_space<vmem>>, %arg2: memref<128x512xf32, #tpu.memory_space<vmem>>, %arg3: memref<1x512xf32, #tpu.memory_space<vmem>>, %arg4: memref<128x512xf32, #tpu.memory_space<vmem>>, %arg5: memref<128x512xf32, #tpu.memory_space<vmem>>, %arg6: memref<1x512xf32, #tpu.memory_space<vmem>>, %arg7: memref<128x4xf32, #tpu.memory_space<vmem>>, %arg8: memref<1x4xf32, #tpu.memory_space<vmem>>, %arg9: memref<2x4xf32, #tpu.memory_space<vmem>>, %arg10: memref<2x2x32xf32, #tpu.memory_space<vmem>>, %arg11: memref<2x2x32xf32, #tpu.memory_space<vmem>>, %arg12: memref<16x128xf32, #tpu.memory_space<vmem>>) attributes {dimension_semantics = [], scalar_prefetch = 0 : i64, scratch_operands = 1 : i64, tpu.core_type = #tpu.core_type<tc>} {
    %c0 = arith.constant 0 : index
    %c0_0 = arith.constant 0 : index
    %0 = vector.load %arg1[%c0, %c0_0] : memref<16x512xf32, #tpu.memory_space<vmem>>, vector<16x512xf32>
    %c0_1 = arith.constant 0 : index
    %c0_2 = arith.constant 0 : index
    %1 = vector.load %arg2[%c0_1, %c0_2] : memref<128x512xf32, #tpu.memory_space<vmem>>, vector<128x512xf32>
    %c0_3 = arith.constant 0 : index
    %c0_4 = arith.constant 0 : index
    %2 = vector.load %arg3[%c0_3, %c0_4] : memref<1x512xf32, #tpu.memory_space<vmem>>, vector<1x512xf32>
    %c0_5 = arith.constant 0 : index
    %c0_6 = arith.constant 0 : index
    %3 = vector.load %arg0[%c0_5, %c0_6] : memref<16x16xf32, #tpu.memory_space<vmem>>, vector<16x16xf32>
    %cst = arith.constant dense<0.000000e+00> : vector<16x512xf32>
    %4 = tpu.matmul %3, %0, %cst {dimension_numbers = #tpu.dot_dimension_numbers<[1], [0], [0], [1], [0, 0, 1, 1], [], []>} : vector<16x16xf32>, vector<16x512xf32>, vector<16x512xf32> -> vector<16x512xf32>
    %5 = vector.broadcast %2 : vector<1x512xf32> to vector<16x512xf32>
    %6 = arith.addf %4, %5 : vector<16x512xf32>
    %7 = vector.shape_cast %6 : vector<16x512xf32> to vector<2x8x512xf32>
    %cst_7 = arith.constant 0.000000e+00 : f32
    %8 = vector.broadcast %cst_7 : f32 to vector<2x128xf32>
    %cst_8 = arith.constant 0.000000e+00 : f32
    %9 = vector.broadcast %cst_8 : f32 to vector<2x128xf32>
    %10 = vector.extract_strided_slice %7 {offsets = [0, 0, 0], sizes = [2, 1, 512], strides = [1, 1, 1]} : vector<2x8x512xf32> to vector<2x1x512xf32>
    %11 = vector.shape_cast %10 : vector<2x1x512xf32> to vector<2x512xf32>
    %cst_9 = arith.constant dense<0.000000e+00> : vector<2x512xf32>
    %12 = tpu.matmul %8, %1, %cst_9 {dimension_numbers = #tpu.dot_dimension_numbers<[1], [0], [0], [1], [0, 0, 1, 1], [], []>} : vector<2x128xf32>, vector<128x512xf32>, vector<2x512xf32> -> vector<2x512xf32>
    %13 = arith.addf %11, %12 : vector<2x512xf32>
    %14 = vector.extract_strided_slice %13 {offsets = [0, 0], sizes = [2, 128], strides = [1, 1]} : vector<2x512xf32> to vector<2x128xf32>
    %15 = arith.negf %14 : vector<2x128xf32>
    %16 = math.exp %15 : vector<2x128xf32>
    %cst_10 = arith.constant 1.000000e+00 : f32
    %17 = vector.broadcast %cst_10 : f32 to vector<2x128xf32>
    %18 = arith.addf %17, %16 : vector<2x128xf32>
    %19 = arith.divf %17, %18 : vector<2x128xf32>
    %20 = vector.extract_strided_slice %13 {offsets = [0, 128], sizes = [2, 128], strides = [1, 1]} : vector<2x512xf32> to vector<2x128xf32>
    %21 = arith.negf %20 : vector<2x128xf32>
    %22 = math.exp %21 : vector<2x128xf32>
    %cst_11 = arith.constant 1.000000e+00 : f32
    %23 = vector.broadcast %cst_11 : f32 to vector<2x128xf32>
    %24 = arith.addf %23, %22 : vector<2x128xf32>
    %25 = arith.divf %23, %24 : vector<2x128xf32>
    %26 = vector.extract_strided_slice %13 {offsets = [0, 256], sizes = [2, 128], strides = [1, 1]} : vector<2x512xf32> to vector<2x128xf32>
    %27 = math.tanh %26 : vector<2x128xf32>
    %28 = vector.extract_strided_slice %13 {offsets = [0, 384], sizes = [2, 128], strides = [1, 1]} : vector<2x512xf32> to vector<2x128xf32>
    %29 = arith.negf %28 : vector<2x128xf32>
    %30 = math.exp %29 : vector<2x128xf32>
    %cst_12 = arith.constant 1.000000e+00 : f32
    %31 = vector.broadcast %cst_12 : f32 to vector<2x128xf32>
    %32 = arith.addf %31, %30 : vector<2x128xf32>
    %33 = arith.divf %31, %32 : vector<2x128xf32>
    %34 = arith.mulf %25, %9 : vector<2x128xf32>
    %35 = arith.mulf %19, %27 : vector<2x128xf32>
    %36 = arith.addf %34, %35 : vector<2x128xf32>
    %37 = math.tanh %36 : vector<2x128xf32>
    %38 = arith.mulf %33, %37 : vector<2x128xf32>
    %c0_13 = arith.constant 0 : index
    %c0_14 = arith.constant 0 : index
    %39 = vector.load %arg12[%c0_13, %c0_14] : memref<16x128xf32, #tpu.memory_space<vmem>>, vector<2x128xf32>
    tpu.vector_store %arg12[%c0_13, %c0_14], %38 {strides = array<i32>} : memref<16x128xf32, #tpu.memory_space<vmem>>, vector<2x128xf32>,
    %40 = vector.extract_strided_slice %7 {offsets = [0, 1, 0], sizes = [2, 1, 512], strides = [1, 1, 1]} : vector<2x8x512xf32> to vector<2x1x512xf32>
    %41 = vector.shape_cast %40 : vector<2x1x512xf32> to vector<2x512xf32>
    %cst_15 = arith.constant dense<0.000000e+00> : vector<2x512xf32>
    %42 = tpu.matmul %38, %1, %cst_15 {dimension_numbers = #tpu.dot_dimension_numbers<[1], [0], [0], [1], [0, 0, 1, 1], [], []>} : vector<2x128xf32>, vector<128x512xf32>, vector<2x512xf32> -> vector<2x512xf32>
    %43 = arith.addf %41, %42 : vector<2x512xf32>
    %44 = vector.extract_strided_slice %43 {offsets = [0, 0], sizes = [2, 128], strides = [1, 1]} : vector<2x512xf32> to vector<2x128xf32>
    %45 = arith.negf %44 : vector<2x128xf32>
    %46 = math.exp %45 : vector<2x128xf32>
    %cst_16 = arith.constant 1.000000e+00 : f32
    %47 = vector.broadcast %cst_16 : f32 to vector<2x128xf32>
    %48 = arith.addf %47, %46 : vector<2x128xf32>
    %49 = arith.divf %47, %48 : vector<2x128xf32>
    %50 = vector.extract_strided_slice %43 {offsets = [0, 128], sizes = [2, 128], strides = [1, 1]} : vector<2x512xf32> to vector<2x128xf32>
    %51 = arith.negf %50 : vector<2x128xf32>
    %52 = math.exp %51 : vector<2x128xf32>
    %cst_17 = arith.constant 1.000000e+00 : f32
    %53 = vector.broadcast %cst_17 : f32 to vector<2x128xf32>
    %54 = arith.addf %53, %52 : vector<2x128xf32>
    %55 = arith.divf %53, %54 : vector<2x128xf32>
    %56 = vector.extract_strided_slice %43 {offsets = [0, 256], sizes = [2, 128], strides = [1, 1]} : vector<2x512xf32> to vector<2x128xf32>
    %57 = math.tanh %56 : vector<2x128xf32>
    %58 = vector.extract_strided_slice %43 {offsets = [0, 384], sizes = [2, 128], strides = [1, 1]} : vector<2x512xf32> to vector<2x128xf32>
    %59 = arith.negf %58 : vector<2x128xf32>
    %60 = math.exp %59 : vector<2x128xf32>
    %cst_18 = arith.constant 1.000000e+00 : f32
    %61 = vector.broadcast %cst_18 : f32 to vector<2x128xf32>
    %62 = arith.addf %61, %60 : vector<2x128xf32>
    %63 = arith.divf %61, %62 : vector<2x128xf32>
    %64 = arith.mulf %55, %36 : vector<2x128xf32>
    %65 = arith.mulf %49, %57 : vector<2x128xf32>
    %66 = arith.addf %64, %65 : vector<2x128xf32>
    %67 = math.tanh %66 : vector<2x128xf32>
    %68 = arith.mulf %63, %67 : vector<2x128xf32>
    %c2 = arith.constant 2 : index
    %c0_19 = arith.constant 0 : index
    %69 = vector.load %arg12[%c2, %c0_19] : memref<16x128xf32, #tpu.memory_space<vmem>>, vector<2x128xf32>
    tpu.vector_store %arg12[%c2, %c0_19], %68 {strides = array<i32>} : memref<16x128xf32, #tpu.memory_space<vmem>>, vector<2x128xf32>,
    %70 = vector.extract_strided_slice %7 {offsets = [0, 2, 0], sizes = [2, 1, 512], strides = [1, 1, 1]} : vector<2x8x512xf32> to vector<2x1x512xf32>
    %71 = vector.shape_cast %70 : vector<2x1x512xf32> to vector<2x512xf32>
    %cst_20 = arith.constant dense<0.000000e+00> : vector<2x512xf32>
    %72 = tpu.matmul %68, %1, %cst_20 {dimension_numbers = #tpu.dot_dimension_numbers<[1], [0], [0], [1], [0, 0, 1, 1], [], []>} : vector<2x128xf32>, vector<128x512xf32>, vector<2x512xf32> -> vector<2x512xf32>
    %73 = arith.addf %71, %72 : vector<2x512xf32>
    %74 = vector.extract_strided_slice %73 {offsets = [0, 0], sizes = [2, 128], strides = [1, 1]} : vector<2x512xf32> to vector<2x128xf32>
    %75 = arith.negf %74 : vector<2x128xf32>
    %76 = math.exp %75 : vector<2x128xf32>
    %cst_21 = arith.constant 1.000000e+00 : f32
    %77 = vector.broadcast %cst_21 : f32 to vector<2x128xf32>
    %78 = arith.addf %77, %76 : vector<2x128xf32>
    %79 = arith.divf %77, %78 : vector<2x128xf32>
    %80 = vector.extract_strided_slice %73 {offsets = [0, 128], sizes = [2, 128], strides = [1, 1]} : vector<2x512xf32> to vector<2x128xf32>
    %81 = arith.negf %80 : vector<2x128xf32>
    %82 = math.exp %81 : vector<2x128xf32>
    %cst_22 = arith.constant 1.000000e+00 : f32
    %83 = vector.broadcast %cst_22 : f32 to vector<2x128xf32>
    %84 = arith.addf %83, %82 : vector<2x128xf32>
    %85 = arith.divf %83, %84 : vector<2x128xf32>
    %86 = vector.extract_strided_slice %73 {offsets = [0, 256], sizes = [2, 128], strides = [1, 1]} : vector<2x512xf32> to vector<2x128xf32>
    %87 = math.tanh %86 : vector<2x128xf32>
    %88 = vector.extract_strided_slice %73 {offsets = [0, 384], sizes = [2, 128], strides = [1, 1]} : vector<2x512xf32> to vector<2x128xf32>
    %89 = arith.negf %88 : vector<2x128xf32>
    %90 = math.exp %89 : vector<2x128xf32>
    %cst_23 = arith.constant 1.000000e+00 : f32
    %91 = vector.broadcast %cst_23 : f32 to vector<2x128xf32>
    %92 = arith.addf %91, %90 : vector<2x128xf32>
    %93 = arith.divf %91, %92 : vector<2x128xf32>
    %94 = arith.mulf %85, %66 : vector<2x128xf32>
    %95 = arith.mulf %79, %87 : vector<2x128xf32>
    %96 = arith.addf %94, %95 : vector<2x128xf32>
    %97 = math.tanh %96 : vector<2x128xf32>
    %98 = arith.mulf %93, %97 : vector<2x128xf32>
    %c4 = arith.constant 4 : index
    %c0_24 = arith.constant 0 : index
    %99 = vector.load %arg12[%c4, %c0_24] : memref<16x128xf32, #tpu.memory_space<vmem>>, vector<2x128xf32>
    tpu.vector_store %arg12[%c4, %c0_24], %98 {strides = array<i32>} : memref<16x128xf32, #tpu.memory_space<vmem>>, vector<2x128xf32>,
    %100 = vector.extract_strided_slice %7 {offsets = [0, 3, 0], sizes = [2, 1, 512], strides = [1, 1, 1]} : vector<2x8x512xf32> to vector<2x1x512xf32>
    %101 = vector.shape_cast %100 : vector<2x1x512xf32> to vector<2x512xf32>
    %cst_25 = arith.constant dense<0.000000e+00> : vector<2x512xf32>
    %102 = tpu.matmul %98, %1, %cst_25 {dimension_numbers = #tpu.dot_dimension_numbers<[1], [0], [0], [1], [0, 0, 1, 1], [], []>} : vector<2x128xf32>, vector<128x512xf32>, vector<2x512xf32> -> vector<2x512xf32>
    %103 = arith.addf %101, %102 : vector<2x512xf32>
    %104 = vector.extract_strided_slice %103 {offsets = [0, 0], sizes = [2, 128], strides = [1, 1]} : vector<2x512xf32> to vector<2x128xf32>
    %105 = arith.negf %104 : vector<2x128xf32>
    %106 = math.exp %105 : vector<2x128xf32>
    %cst_26 = arith.constant 1.000000e+00 : f32
    %107 = vector.broadcast %cst_26 : f32 to vector<2x128xf32>
    %108 = arith.addf %107, %106 : vector<2x128xf32>
    %109 = arith.divf %107, %108 : vector<2x128xf32>
    %110 = vector.extract_strided_slice %103 {offsets = [0, 128], sizes = [2, 128], strides = [1, 1]} : vector<2x512xf32> to vector<2x128xf32>
    %111 = arith.negf %110 : vector<2x128xf32>
    %112 = math.exp %111 : vector<2x128xf32>
    %cst_27 = arith.constant 1.000000e+00 : f32
    %113 = vector.broadcast %cst_27 : f32 to vector<2x128xf32>
    %114 = arith.addf %113, %112 : vector<2x128xf32>
    %115 = arith.divf %113, %114 : vector<2x128xf32>
    %116 = vector.extract_strided_slice %103 {offsets = [0, 256], sizes = [2, 128], strides = [1, 1]} : vector<2x512xf32> to vector<2x128xf32>
    %117 = math.tanh %116 : vector<2x128xf32>
    %118 = vector.extract_strided_slice %103 {offsets = [0, 384], sizes = [2, 128], strides = [1, 1]} : vector<2x512xf32> to vector<2x128xf32>
    %119 = arith.negf %118 : vector<2x128xf32>
    %120 = math.exp %119 : vector<2x128xf32>
    %cst_28 = arith.constant 1.000000e+00 : f32
    %121 = vector.broadcast %cst_28 : f32 to vector<2x128xf32>
    %122 = arith.addf %121, %120 : vector<2x128xf32>
    %123 = arith.divf %121, %122 : vector<2x128xf32>
    %124 = arith.mulf %115, %96 : vector<2x128xf32>
    %125 = arith.mulf %109, %117 : vector<2x128xf32>
    %126 = arith.addf %124, %125 : vector<2x128xf32>
    %127 = math.tanh %126 : vector<2x128xf32>
    %128 = arith.mulf %123, %127 : vector<2x128xf32>
    %c6 = arith.constant 6 : index
    %c0_29 = arith.constant 0 : index
    %129 = vector.load %arg12[%c6, %c0_29] : memref<16x128xf32, #tpu.memory_space<vmem>>, vector<2x128xf32>
    tpu.vector_store %arg12[%c6, %c0_29], %128 {strides = array<i32>} : memref<16x128xf32, #tpu.memory_space<vmem>>, vector<2x128xf32>,
    %130 = vector.extract_strided_slice %7 {offsets = [0, 4, 0], sizes = [2, 1, 512], strides = [1, 1, 1]} : vector<2x8x512xf32> to vector<2x1x512xf32>
    %131 = vector.shape_cast %130 : vector<2x1x512xf32> to vector<2x512xf32>
    %cst_30 = arith.constant dense<0.000000e+00> : vector<2x512xf32>
    %132 = tpu.matmul %128, %1, %cst_30 {dimension_numbers = #tpu.dot_dimension_numbers<[1], [0], [0], [1], [0, 0, 1, 1], [], []>} : vector<2x128xf32>, vector<128x512xf32>, vector<2x512xf32> -> vector<2x512xf32>
    %133 = arith.addf %131, %132 : vector<2x512xf32>
    %134 = vector.extract_strided_slice %133 {offsets = [0, 0], sizes = [2, 128], strides = [1, 1]} : vector<2x512xf32> to vector<2x128xf32>
    %135 = arith.negf %134 : vector<2x128xf32>
    %136 = math.exp %135 : vector<2x128xf32>
    %cst_31 = arith.constant 1.000000e+00 : f32
    %137 = vector.broadcast %cst_31 : f32 to vector<2x128xf32>
    %138 = arith.addf %137, %136 : vector<2x128xf32>
    %139 = arith.divf %137, %138 : vector<2x128xf32>
    %140 = vector.extract_strided_slice %133 {offsets = [0, 128], sizes = [2, 128], strides = [1, 1]} : vector<2x512xf32> to vector<2x128xf32>
    %141 = arith.negf %140 : vector<2x128xf32>
    %142 = math.exp %141 : vector<2x128xf32>
    %cst_32 = arith.constant 1.000000e+00 : f32
    %143 = vector.broadcast %cst_32 : f32 to vector<2x128xf32>
    %144 = arith.addf %143, %142 : vector<2x128xf32>
    %145 = arith.divf %143, %144 : vector<2x128xf32>
    %146 = vector.extract_strided_slice %133 {offsets = [0, 256], sizes = [2, 128], strides = [1, 1]} : vector<2x512xf32> to vector<2x128xf32>
    %147 = math.tanh %146 : vector<2x128xf32>
    %148 = vector.extract_strided_slice %133 {offsets = [0, 384], sizes = [2, 128], strides = [1, 1]} : vector<2x512xf32> to vector<2x128xf32>
    %149 = arith.negf %148 : vector<2x128xf32>
    %150 = math.exp %149 : vector<2x128xf32>
    %cst_33 = arith.constant 1.000000e+00 : f32
    %151 = vector.broadcast %cst_33 : f32 to vector<2x128xf32>
    %152 = arith.addf %151, %150 : vector<2x128xf32>
    %153 = arith.divf %151, %152 : vector<2x128xf32>
    %154 = arith.mulf %145, %126 : vector<2x128xf32>
    %155 = arith.mulf %139, %147 : vector<2x128xf32>
    %156 = arith.addf %154, %155 : vector<2x128xf32>
    %157 = math.tanh %156 : vector<2x128xf32>
    %158 = arith.mulf %153, %157 : vector<2x128xf32>
    %c8 = arith.constant 8 : index
    %c0_34 = arith.constant 0 : index
    %159 = vector.load %arg12[%c8, %c0_34] : memref<16x128xf32, #tpu.memory_space<vmem>>, vector<2x128xf32>
    tpu.vector_store %arg12[%c8, %c0_34], %158 {strides = array<i32>} : memref<16x128xf32, #tpu.memory_space<vmem>>, vector<2x128xf32>,
    %160 = vector.extract_strided_slice %7 {offsets = [0, 5, 0], sizes = [2, 1, 512], strides = [1, 1, 1]} : vector<2x8x512xf32> to vector<2x1x512xf32>
    %161 = vector.shape_cast %160 : vector<2x1x512xf32> to vector<2x512xf32>
    %cst_35 = arith.constant dense<0.000000e+00> : vector<2x512xf32>
    %162 = tpu.matmul %158, %1, %cst_35 {dimension_numbers = #tpu.dot_dimension_numbers<[1], [0], [0], [1], [0, 0, 1, 1], [], []>} : vector<2x128xf32>, vector<128x512xf32>, vector<2x512xf32> -> vector<2x512xf32>
    %163 = arith.addf %161, %162 : vector<2x512xf32>
    %164 = vector.extract_strided_slice %163 {offsets = [0, 0], sizes = [2, 128], strides = [1, 1]} : vector<2x512xf32> to vector<2x128xf32>
    %165 = arith.negf %164 : vector<2x128xf32>
    %166 = math.exp %165 : vector<2x128xf32>
    %cst_36 = arith.constant 1.000000e+00 : f32
    %167 = vector.broadcast %cst_36 : f32 to vector<2x128xf32>
    %168 = arith.addf %167, %166 : vector<2x128xf32>
    %169 = arith.divf %167, %168 : vector<2x128xf32>
    %170 = vector.extract_strided_slice %163 {offsets = [0, 128], sizes = [2, 128], strides = [1, 1]} : vector<2x512xf32> to vector<2x128xf32>
    %171 = arith.negf %170 : vector<2x128xf32>
    %172 = math.exp %171 : vector<2x128xf32>
    %cst_37 = arith.constant 1.000000e+00 : f32
    %173 = vector.broadcast %cst_37 : f32 to vector<2x128xf32>
    %174 = arith.addf %173, %172 : vector<2x128xf32>
    %175 = arith.divf %173, %174 : vector<2x128xf32>
    %176 = vector.extract_strided_slice %163 {offsets = [0, 256], sizes = [2, 128], strides = [1, 1]} : vector<2x512xf32> to vector<2x128xf32>
    %177 = math.tanh %176 : vector<2x128xf32>
    %178 = vector.extract_strided_slice %163 {offsets = [0, 384], sizes = [2, 128], strides = [1, 1]} : vector<2x512xf32> to vector<2x128xf32>
    %179 = arith.negf %178 : vector<2x128xf32>
    %180 = math.exp %179 : vector<2x128xf32>
    %cst_38 = arith.constant 1.000000e+00 : f32
    %181 = vector.broadcast %cst_38 : f32 to vector<2x128xf32>
    %182 = arith.addf %181, %180 : vector<2x128xf32>
    %183 = arith.divf %181, %182 : vector<2x128xf32>
    %184 = arith.mulf %175, %156 : vector<2x128xf32>
    %185 = arith.mulf %169, %177 : vector<2x128xf32>
    %186 = arith.addf %184, %185 : vector<2x128xf32>
    %187 = math.tanh %186 : vector<2x128xf32>
    %188 = arith.mulf %183, %187 : vector<2x128xf32>
    %c10 = arith.constant 10 : index
    %c0_39 = arith.constant 0 : index
    %189 = vector.load %arg12[%c10, %c0_39] : memref<16x128xf32, #tpu.memory_space<vmem>>, vector<2x128xf32>
    tpu.vector_store %arg12[%c10, %c0_39], %188 {strides = array<i32>} : memref<16x128xf32, #tpu.memory_space<vmem>>, vector<2x128xf32>,
    %190 = vector.extract_strided_slice %7 {offsets = [0, 6, 0], sizes = [2, 1, 512], strides = [1, 1, 1]} : vector<2x8x512xf32> to vector<2x1x512xf32>
    %191 = vector.shape_cast %190 : vector<2x1x512xf32> to vector<2x512xf32>
    %cst_40 = arith.constant dense<0.000000e+00> : vector<2x512xf32>
    %192 = tpu.matmul %188, %1, %cst_40 {dimension_numbers = #tpu.dot_dimension_numbers<[1], [0], [0], [1], [0, 0, 1, 1], [], []>} : vector<2x128xf32>, vector<128x512xf32>, vector<2x512xf32> -> vector<2x512xf32>
    %193 = arith.addf %191, %192 : vector<2x512xf32>
    %194 = vector.extract_strided_slice %193 {offsets = [0, 0], sizes = [2, 128], strides = [1, 1]} : vector<2x512xf32> to vector<2x128xf32>
    %195 = arith.negf %194 : vector<2x128xf32>
    %196 = math.exp %195 : vector<2x128xf32>
    %cst_41 = arith.constant 1.000000e+00 : f32
    %197 = vector.broadcast %cst_41 : f32 to vector<2x128xf32>
    %198 = arith.addf %197, %196 : vector<2x128xf32>
    %199 = arith.divf %197, %198 : vector<2x128xf32>
    %200 = vector.extract_strided_slice %193 {offsets = [0, 128], sizes = [2, 128], strides = [1, 1]} : vector<2x512xf32> to vector<2x128xf32>
    %201 = arith.negf %200 : vector<2x128xf32>
    %202 = math.exp %201 : vector<2x128xf32>
    %cst_42 = arith.constant 1.000000e+00 : f32
    %203 = vector.broadcast %cst_42 : f32 to vector<2x128xf32>
    %204 = arith.addf %203, %202 : vector<2x128xf32>
    %205 = arith.divf %203, %204 : vector<2x128xf32>
    %206 = vector.extract_strided_slice %193 {offsets = [0, 256], sizes = [2, 128], strides = [1, 1]} : vector<2x512xf32> to vector<2x128xf32>
    %207 = math.tanh %206 : vector<2x128xf32>
    %208 = vector.extract_strided_slice %193 {offsets = [0, 384], sizes = [2, 128], strides = [1, 1]} : vector<2x512xf32> to vector<2x128xf32>
    %209 = arith.negf %208 : vector<2x128xf32>
    %210 = math.exp %209 : vector<2x128xf32>
    %cst_43 = arith.constant 1.000000e+00 : f32
    %211 = vector.broadcast %cst_43 : f32 to vector<2x128xf32>
    %212 = arith.addf %211, %210 : vector<2x128xf32>
    %213 = arith.divf %211, %212 : vector<2x128xf32>
    %214 = arith.mulf %205, %186 : vector<2x128xf32>
    %215 = arith.mulf %199, %207 : vector<2x128xf32>
    %216 = arith.addf %214, %215 : vector<2x128xf32>
    %217 = math.tanh %216 : vector<2x128xf32>
    %218 = arith.mulf %213, %217 : vector<2x128xf32>
    %c12 = arith.constant 12 : index
    %c0_44 = arith.constant 0 : index
    %219 = vector.load %arg12[%c12, %c0_44] : memref<16x128xf32, #tpu.memory_space<vmem>>, vector<2x128xf32>
    tpu.vector_store %arg12[%c12, %c0_44], %218 {strides = array<i32>} : memref<16x128xf32, #tpu.memory_space<vmem>>, vector<2x128xf32>,
    %220 = vector.extract_strided_slice %7 {offsets = [0, 7, 0], sizes = [2, 1, 512], strides = [1, 1, 1]} : vector<2x8x512xf32> to vector<2x1x512xf32>
    %221 = vector.shape_cast %220 : vector<2x1x512xf32> to vector<2x512xf32>
    %cst_45 = arith.constant dense<0.000000e+00> : vector<2x512xf32>
    %222 = tpu.matmul %218, %1, %cst_45 {dimension_numbers = #tpu.dot_dimension_numbers<[1], [0], [0], [1], [0, 0, 1, 1], [], []>} : vector<2x128xf32>, vector<128x512xf32>, vector<2x512xf32> -> vector<2x512xf32>
    %223 = arith.addf %221, %222 : vector<2x512xf32>
    %224 = vector.extract_strided_slice %223 {offsets = [0, 0], sizes = [2, 128], strides = [1, 1]} : vector<2x512xf32> to vector<2x128xf32>
    %225 = arith.negf %224 : vector<2x128xf32>
    %226 = math.exp %225 : vector<2x128xf32>
    %cst_46 = arith.constant 1.000000e+00 : f32
    %227 = vector.broadcast %cst_46 : f32 to vector<2x128xf32>
    %228 = arith.addf %227, %226 : vector<2x128xf32>
    %229 = arith.divf %227, %228 : vector<2x128xf32>
    %230 = vector.extract_strided_slice %223 {offsets = [0, 128], sizes = [2, 128], strides = [1, 1]} : vector<2x512xf32> to vector<2x128xf32>
    %231 = arith.negf %230 : vector<2x128xf32>
    %232 = math.exp %231 : vector<2x128xf32>
    %cst_47 = arith.constant 1.000000e+00 : f32
    %233 = vector.broadcast %cst_47 : f32 to vector<2x128xf32>
    %234 = arith.addf %233, %232 : vector<2x128xf32>
    %235 = arith.divf %233, %234 : vector<2x128xf32>
    %236 = vector.extract_strided_slice %223 {offsets = [0, 256], sizes = [2, 128], strides = [1, 1]} : vector<2x512xf32> to vector<2x128xf32>
    %237 = math.tanh %236 : vector<2x128xf32>
    %238 = vector.extract_strided_slice %223 {offsets = [0, 384], sizes = [2, 128], strides = [1, 1]} : vector<2x512xf32> to vector<2x128xf32>
    %239 = arith.negf %238 : vector<2x128xf32>
    %240 = math.exp %239 : vector<2x128xf32>
    %cst_48 = arith.constant 1.000000e+00 : f32
    %241 = vector.broadcast %cst_48 : f32 to vector<2x128xf32>
    %242 = arith.addf %241, %240 : vector<2x128xf32>
    %243 = arith.divf %241, %242 : vector<2x128xf32>
    %244 = arith.mulf %235, %216 : vector<2x128xf32>
    %245 = arith.mulf %229, %237 : vector<2x128xf32>
    %246 = arith.addf %244, %245 : vector<2x128xf32>
    %247 = math.tanh %246 : vector<2x128xf32>
    %248 = arith.mulf %243, %247 : vector<2x128xf32>
    %c14 = arith.constant 14 : index
    %c0_49 = arith.constant 0 : index
    %249 = vector.load %arg12[%c14, %c0_49] : memref<16x128xf32, #tpu.memory_space<vmem>>, vector<2x128xf32>
    tpu.vector_store %arg12[%c14, %c0_49], %248 {strides = array<i32>} : memref<16x128xf32, #tpu.memory_space<vmem>>, vector<2x128xf32>,
    %250 = vector.extract_strided_slice %248 {offsets = [0, 0], sizes = [2, 32], strides = [1, 1]} : vector<2x128xf32> to vector<2x32xf32>
    %c0_50 = arith.constant 0 : index
    %c0_51 = arith.constant 0 : index
    %c0_52 = arith.constant 0 : index
    %251 = vector.load %arg10[%c0_50, %c0_51, %c0_52] : memref<2x2x32xf32, #tpu.memory_space<vmem>>, vector<1x2x32xf32>
    %252 = vector.shape_cast %251 : vector<1x2x32xf32> to vector<2x32xf32>
    %253 = vector.shape_cast %250 : vector<2x32xf32> to vector<1x2x32xf32>
    tpu.vector_store %arg10[%c0_50, %c0_51, %c0_52], %253 {strides = array<i32>} : memref<2x2x32xf32, #tpu.memory_space<vmem>>, vector<1x2x32xf32>,
    %254 = vector.extract_strided_slice %246 {offsets = [0, 0], sizes = [2, 32], strides = [1, 1]} : vector<2x128xf32> to vector<2x32xf32>
    %c0_53 = arith.constant 0 : index
    %c0_54 = arith.constant 0 : index
    %c0_55 = arith.constant 0 : index
    %255 = vector.load %arg11[%c0_53, %c0_54, %c0_55] : memref<2x2x32xf32, #tpu.memory_space<vmem>>, vector<1x2x32xf32>
    %256 = vector.shape_cast %255 : vector<1x2x32xf32> to vector<2x32xf32>
    %257 = vector.shape_cast %254 : vector<2x32xf32> to vector<1x2x32xf32>
    tpu.vector_store %arg11[%c0_53, %c0_54, %c0_55], %257 {strides = array<i32>} : memref<2x2x32xf32, #tpu.memory_space<vmem>>, vector<1x2x32xf32>,
    %c0_56 = arith.constant 0 : index
    %c0_57 = arith.constant 0 : index
    %258 = vector.load %arg4[%c0_56, %c0_57] : memref<128x512xf32, #tpu.memory_space<vmem>>, vector<128x512xf32>
    %c0_58 = arith.constant 0 : index
    %c0_59 = arith.constant 0 : index
    %259 = vector.load %arg5[%c0_58, %c0_59] : memref<128x512xf32, #tpu.memory_space<vmem>>, vector<128x512xf32>
    %c0_60 = arith.constant 0 : index
    %c0_61 = arith.constant 0 : index
    %260 = vector.load %arg6[%c0_60, %c0_61] : memref<1x512xf32, #tpu.memory_space<vmem>>, vector<1x512xf32>
    %c0_62 = arith.constant 0 : index
    %c0_63 = arith.constant 0 : index
    %261 = vector.load %arg12[%c0_62, %c0_63] : memref<16x128xf32, #tpu.memory_space<vmem>>, vector<16x128xf32>
    %cst_64 = arith.constant dense<0.000000e+00> : vector<16x512xf32>
    %262 = tpu.matmul %261, %258, %cst_64 {dimension_numbers = #tpu.dot_dimension_numbers<[1], [0], [0], [1], [0, 0, 1, 1], [], []>} : vector<16x128xf32>, vector<128x512xf32>, vector<16x512xf32> -> vector<16x512xf32>
    %263 = vector.broadcast %260 : vector<1x512xf32> to vector<16x512xf32>
    %264 = arith.addf %262, %263 : vector<16x512xf32>
    %cst_65 = arith.constant 0.000000e+00 : f32
    %265 = vector.broadcast %cst_65 : f32 to vector<2x128xf32>
    %cst_66 = arith.constant 0.000000e+00 : f32
    %266 = vector.broadcast %cst_66 : f32 to vector<2x128xf32>
    %267 = vector.extract_strided_slice %264 {offsets = [0, 0], sizes = [2, 512], strides = [1, 1]} : vector<16x512xf32> to vector<2x512xf32>
    %cst_67 = arith.constant dense<0.000000e+00> : vector<2x512xf32>
    %268 = tpu.matmul %265, %259, %cst_67 {dimension_numbers = #tpu.dot_dimension_numbers<[1], [0], [0], [1], [0, 0, 1, 1], [], []>} : vector<2x128xf32>, vector<128x512xf32>, vector<2x512xf32> -> vector<2x512xf32>
    %269 = arith.addf %267, %268 : vector<2x512xf32>
    %270 = vector.extract_strided_slice %269 {offsets = [0, 0], sizes = [2, 128], strides = [1, 1]} : vector<2x512xf32> to vector<2x128xf32>
    %271 = arith.negf %270 : vector<2x128xf32>
    %272 = math.exp %271 : vector<2x128xf32>
    %cst_68 = arith.constant 1.000000e+00 : f32
    %273 = vector.broadcast %cst_68 : f32 to vector<2x128xf32>
    %274 = arith.addf %273, %272 : vector<2x128xf32>
    %275 = arith.divf %273, %274 : vector<2x128xf32>
    %276 = vector.extract_strided_slice %269 {offsets = [0, 128], sizes = [2, 128], strides = [1, 1]} : vector<2x512xf32> to vector<2x128xf32>
    %277 = arith.negf %276 : vector<2x128xf32>
    %278 = math.exp %277 : vector<2x128xf32>
    %cst_69 = arith.constant 1.000000e+00 : f32
    %279 = vector.broadcast %cst_69 : f32 to vector<2x128xf32>
    %280 = arith.addf %279, %278 : vector<2x128xf32>
    %281 = arith.divf %279, %280 : vector<2x128xf32>
    %282 = vector.extract_strided_slice %269 {offsets = [0, 256], sizes = [2, 128], strides = [1, 1]} : vector<2x512xf32> to vector<2x128xf32>
    %283 = math.tanh %282 : vector<2x128xf32>
    %284 = vector.extract_strided_slice %269 {offsets = [0, 384], sizes = [2, 128], strides = [1, 1]} : vector<2x512xf32> to vector<2x128xf32>
    %285 = arith.negf %284 : vector<2x128xf32>
    %286 = math.exp %285 : vector<2x128xf32>
    %cst_70 = arith.constant 1.000000e+00 : f32
    %287 = vector.broadcast %cst_70 : f32 to vector<2x128xf32>
    %288 = arith.addf %287, %286 : vector<2x128xf32>
    %289 = arith.divf %287, %288 : vector<2x128xf32>
    %290 = arith.mulf %281, %266 : vector<2x128xf32>
    %291 = arith.mulf %275, %283 : vector<2x128xf32>
    %292 = arith.addf %290, %291 : vector<2x128xf32>
    %293 = math.tanh %292 : vector<2x128xf32>
    %294 = arith.mulf %289, %293 : vector<2x128xf32>
    %295 = vector.extract_strided_slice %264 {offsets = [2, 0], sizes = [2, 512], strides = [1, 1]} : vector<16x512xf32> to vector<2x512xf32>
    %cst_71 = arith.constant dense<0.000000e+00> : vector<2x512xf32>
    %296 = tpu.matmul %294, %259, %cst_71 {dimension_numbers = #tpu.dot_dimension_numbers<[1], [0], [0], [1], [0, 0, 1, 1], [], []>} : vector<2x128xf32>, vector<128x512xf32>, vector<2x512xf32> -> vector<2x512xf32>
    %297 = arith.addf %295, %296 : vector<2x512xf32>
    %298 = vector.extract_strided_slice %297 {offsets = [0, 0], sizes = [2, 128], strides = [1, 1]} : vector<2x512xf32> to vector<2x128xf32>
    %299 = arith.negf %298 : vector<2x128xf32>
    %300 = math.exp %299 : vector<2x128xf32>
    %cst_72 = arith.constant 1.000000e+00 : f32
    %301 = vector.broadcast %cst_72 : f32 to vector<2x128xf32>
    %302 = arith.addf %301, %300 : vector<2x128xf32>
    %303 = arith.divf %301, %302 : vector<2x128xf32>
    %304 = vector.extract_strided_slice %297 {offsets = [0, 128], sizes = [2, 128], strides = [1, 1]} : vector<2x512xf32> to vector<2x128xf32>
    %305 = arith.negf %304 : vector<2x128xf32>
    %306 = math.exp %305 : vector<2x128xf32>
    %cst_73 = arith.constant 1.000000e+00 : f32
    %307 = vector.broadcast %cst_73 : f32 to vector<2x128xf32>
    %308 = arith.addf %307, %306 : vector<2x128xf32>
    %309 = arith.divf %307, %308 : vector<2x128xf32>
    %310 = vector.extract_strided_slice %297 {offsets = [0, 256], sizes = [2, 128], strides = [1, 1]} : vector<2x512xf32> to vector<2x128xf32>
    %311 = math.tanh %310 : vector<2x128xf32>
    %312 = vector.extract_strided_slice %297 {offsets = [0, 384], sizes = [2, 128], strides = [1, 1]} : vector<2x512xf32> to vector<2x128xf32>
    %313 = arith.negf %312 : vector<2x128xf32>
    %314 = math.exp %313 : vector<2x128xf32>
    %cst_74 = arith.constant 1.000000e+00 : f32
    %315 = vector.broadcast %cst_74 : f32 to vector<2x128xf32>
    %316 = arith.addf %315, %314 : vector<2x128xf32>
    %317 = arith.divf %315, %316 : vector<2x128xf32>
    %318 = arith.mulf %309, %292 : vector<2x128xf32>
    %319 = arith.mulf %303, %311 : vector<2x128xf32>
    %320 = arith.addf %318, %319 : vector<2x128xf32>
    %321 = math.tanh %320 : vector<2x128xf32>
    %322 = arith.mulf %317, %321 : vector<2x128xf32>
    %323 = vector.extract_strided_slice %264 {offsets = [4, 0], sizes = [2, 512], strides = [1, 1]} : vector<16x512xf32> to vector<2x512xf32>
    %cst_75 = arith.constant dense<0.000000e+00> : vector<2x512xf32>
    %324 = tpu.matmul %322, %259, %cst_75 {dimension_numbers = #tpu.dot_dimension_numbers<[1], [0], [0], [1], [0, 0, 1, 1], [], []>} : vector<2x128xf32>, vector<128x512xf32>, vector<2x512xf32> -> vector<2x512xf32>
    %325 = arith.addf %323, %324 : vector<2x512xf32>
    %326 = vector.extract_strided_slice %325 {offsets = [0, 0], sizes = [2, 128], strides = [1, 1]} : vector<2x512xf32> to vector<2x128xf32>
    %327 = arith.negf %326 : vector<2x128xf32>
    %328 = math.exp %327 : vector<2x128xf32>
    %cst_76 = arith.constant 1.000000e+00 : f32
    %329 = vector.broadcast %cst_76 : f32 to vector<2x128xf32>
    %330 = arith.addf %329, %328 : vector<2x128xf32>
    %331 = arith.divf %329, %330 : vector<2x128xf32>
    %332 = vector.extract_strided_slice %325 {offsets = [0, 128], sizes = [2, 128], strides = [1, 1]} : vector<2x512xf32> to vector<2x128xf32>
    %333 = arith.negf %332 : vector<2x128xf32>
    %334 = math.exp %333 : vector<2x128xf32>
    %cst_77 = arith.constant 1.000000e+00 : f32
    %335 = vector.broadcast %cst_77 : f32 to vector<2x128xf32>
    %336 = arith.addf %335, %334 : vector<2x128xf32>
    %337 = arith.divf %335, %336 : vector<2x128xf32>
    %338 = vector.extract_strided_slice %325 {offsets = [0, 256], sizes = [2, 128], strides = [1, 1]} : vector<2x512xf32> to vector<2x128xf32>
    %339 = math.tanh %338 : vector<2x128xf32>
    %340 = vector.extract_strided_slice %325 {offsets = [0, 384], sizes = [2, 128], strides = [1, 1]} : vector<2x512xf32> to vector<2x128xf32>
    %341 = arith.negf %340 : vector<2x128xf32>
    %342 = math.exp %341 : vector<2x128xf32>
    %cst_78 = arith.constant 1.000000e+00 : f32
    %343 = vector.broadcast %cst_78 : f32 to vector<2x128xf32>
    %344 = arith.addf %343, %342 : vector<2x128xf32>
    %345 = arith.divf %343, %344 : vector<2x128xf32>
    %346 = arith.mulf %337, %320 : vector<2x128xf32>
    %347 = arith.mulf %331, %339 : vector<2x128xf32>
    %348 = arith.addf %346, %347 : vector<2x128xf32>
    %349 = math.tanh %348 : vector<2x128xf32>
    %350 = arith.mulf %345, %349 : vector<2x128xf32>
    %351 = vector.extract_strided_slice %264 {offsets = [6, 0], sizes = [2, 512], strides = [1, 1]} : vector<16x512xf32> to vector<2x512xf32>
    %cst_79 = arith.constant dense<0.000000e+00> : vector<2x512xf32>
    %352 = tpu.matmul %350, %259, %cst_79 {dimension_numbers = #tpu.dot_dimension_numbers<[1], [0], [0], [1], [0, 0, 1, 1], [], []>} : vector<2x128xf32>, vector<128x512xf32>, vector<2x512xf32> -> vector<2x512xf32>
    %353 = arith.addf %351, %352 : vector<2x512xf32>
    %354 = vector.extract_strided_slice %353 {offsets = [0, 0], sizes = [2, 128], strides = [1, 1]} : vector<2x512xf32> to vector<2x128xf32>
    %355 = arith.negf %354 : vector<2x128xf32>
    %356 = math.exp %355 : vector<2x128xf32>
    %cst_80 = arith.constant 1.000000e+00 : f32
    %357 = vector.broadcast %cst_80 : f32 to vector<2x128xf32>
    %358 = arith.addf %357, %356 : vector<2x128xf32>
    %359 = arith.divf %357, %358 : vector<2x128xf32>
    %360 = vector.extract_strided_slice %353 {offsets = [0, 128], sizes = [2, 128], strides = [1, 1]} : vector<2x512xf32> to vector<2x128xf32>
    %361 = arith.negf %360 : vector<2x128xf32>
    %362 = math.exp %361 : vector<2x128xf32>
    %cst_81 = arith.constant 1.000000e+00 : f32
    %363 = vector.broadcast %cst_81 : f32 to vector<2x128xf32>
    %364 = arith.addf %363, %362 : vector<2x128xf32>
    %365 = arith.divf %363, %364 : vector<2x128xf32>
    %366 = vector.extract_strided_slice %353 {offsets = [0, 256], sizes = [2, 128], strides = [1, 1]} : vector<2x512xf32> to vector<2x128xf32>
    %367 = math.tanh %366 : vector<2x128xf32>
    %368 = vector.extract_strided_slice %353 {offsets = [0, 384], sizes = [2, 128], strides = [1, 1]} : vector<2x512xf32> to vector<2x128xf32>
    %369 = arith.negf %368 : vector<2x128xf32>
    %370 = math.exp %369 : vector<2x128xf32>
    %cst_82 = arith.constant 1.000000e+00 : f32
    %371 = vector.broadcast %cst_82 : f32 to vector<2x128xf32>
    %372 = arith.addf %371, %370 : vector<2x128xf32>
    %373 = arith.divf %371, %372 : vector<2x128xf32>
    %374 = arith.mulf %365, %348 : vector<2x128xf32>
    %375 = arith.mulf %359, %367 : vector<2x128xf32>
    %376 = arith.addf %374, %375 : vector<2x128xf32>
    %377 = math.tanh %376 : vector<2x128xf32>
    %378 = arith.mulf %373, %377 : vector<2x128xf32>
    %379 = vector.extract_strided_slice %264 {offsets = [8, 0], sizes = [2, 512], strides = [1, 1]} : vector<16x512xf32> to vector<2x512xf32>
    %cst_83 = arith.constant dense<0.000000e+00> : vector<2x512xf32>
    %380 = tpu.matmul %378, %259, %cst_83 {dimension_numbers = #tpu.dot_dimension_numbers<[1], [0], [0], [1], [0, 0, 1, 1], [], []>} : vector<2x128xf32>, vector<128x512xf32>, vector<2x512xf32> -> vector<2x512xf32>
    %381 = arith.addf %379, %380 : vector<2x512xf32>
    %382 = vector.extract_strided_slice %381 {offsets = [0, 0], sizes = [2, 128], strides = [1, 1]} : vector<2x512xf32> to vector<2x128xf32>
    %383 = arith.negf %382 : vector<2x128xf32>
    %384 = math.exp %383 : vector<2x128xf32>
    %cst_84 = arith.constant 1.000000e+00 : f32
    %385 = vector.broadcast %cst_84 : f32 to vector<2x128xf32>
    %386 = arith.addf %385, %384 : vector<2x128xf32>
    %387 = arith.divf %385, %386 : vector<2x128xf32>
    %388 = vector.extract_strided_slice %381 {offsets = [0, 128], sizes = [2, 128], strides = [1, 1]} : vector<2x512xf32> to vector<2x128xf32>
    %389 = arith.negf %388 : vector<2x128xf32>
    %390 = math.exp %389 : vector<2x128xf32>
    %cst_85 = arith.constant 1.000000e+00 : f32
    %391 = vector.broadcast %cst_85 : f32 to vector<2x128xf32>
    %392 = arith.addf %391, %390 : vector<2x128xf32>
    %393 = arith.divf %391, %392 : vector<2x128xf32>
    %394 = vector.extract_strided_slice %381 {offsets = [0, 256], sizes = [2, 128], strides = [1, 1]} : vector<2x512xf32> to vector<2x128xf32>
    %395 = math.tanh %394 : vector<2x128xf32>
    %396 = vector.extract_strided_slice %381 {offsets = [0, 384], sizes = [2, 128], strides = [1, 1]} : vector<2x512xf32> to vector<2x128xf32>
    %397 = arith.negf %396 : vector<2x128xf32>
    %398 = math.exp %397 : vector<2x128xf32>
    %cst_86 = arith.constant 1.000000e+00 : f32
    %399 = vector.broadcast %cst_86 : f32 to vector<2x128xf32>
    %400 = arith.addf %399, %398 : vector<2x128xf32>
    %401 = arith.divf %399, %400 : vector<2x128xf32>
    %402 = arith.mulf %393, %376 : vector<2x128xf32>
    %403 = arith.mulf %387, %395 : vector<2x128xf32>
    %404 = arith.addf %402, %403 : vector<2x128xf32>
    %405 = math.tanh %404 : vector<2x128xf32>
    %406 = arith.mulf %401, %405 : vector<2x128xf32>
    %407 = vector.extract_strided_slice %264 {offsets = [10, 0], sizes = [2, 512], strides = [1, 1]} : vector<16x512xf32> to vector<2x512xf32>
    %cst_87 = arith.constant dense<0.000000e+00> : vector<2x512xf32>
    %408 = tpu.matmul %406, %259, %cst_87 {dimension_numbers = #tpu.dot_dimension_numbers<[1], [0], [0], [1], [0, 0, 1, 1], [], []>} : vector<2x128xf32>, vector<128x512xf32>, vector<2x512xf32> -> vector<2x512xf32>
    %409 = arith.addf %407, %408 : vector<2x512xf32>
    %410 = vector.extract_strided_slice %409 {offsets = [0, 0], sizes = [2, 128], strides = [1, 1]} : vector<2x512xf32> to vector<2x128xf32>
    %411 = arith.negf %410 : vector<2x128xf32>
    %412 = math.exp %411 : vector<2x128xf32>
    %cst_88 = arith.constant 1.000000e+00 : f32
    %413 = vector.broadcast %cst_88 : f32 to vector<2x128xf32>
    %414 = arith.addf %413, %412 : vector<2x128xf32>
    %415 = arith.divf %413, %414 : vector<2x128xf32>
    %416 = vector.extract_strided_slice %409 {offsets = [0, 128], sizes = [2, 128], strides = [1, 1]} : vector<2x512xf32> to vector<2x128xf32>
    %417 = arith.negf %416 : vector<2x128xf32>
    %418 = math.exp %417 : vector<2x128xf32>
    %cst_89 = arith.constant 1.000000e+00 : f32
    %419 = vector.broadcast %cst_89 : f32 to vector<2x128xf32>
    %420 = arith.addf %419, %418 : vector<2x128xf32>
    %421 = arith.divf %419, %420 : vector<2x128xf32>
    %422 = vector.extract_strided_slice %409 {offsets = [0, 256], sizes = [2, 128], strides = [1, 1]} : vector<2x512xf32> to vector<2x128xf32>
    %423 = math.tanh %422 : vector<2x128xf32>
    %424 = vector.extract_strided_slice %409 {offsets = [0, 384], sizes = [2, 128], strides = [1, 1]} : vector<2x512xf32> to vector<2x128xf32>
    %425 = arith.negf %424 : vector<2x128xf32>
    %426 = math.exp %425 : vector<2x128xf32>
    %cst_90 = arith.constant 1.000000e+00 : f32
    %427 = vector.broadcast %cst_90 : f32 to vector<2x128xf32>
    %428 = arith.addf %427, %426 : vector<2x128xf32>
    %429 = arith.divf %427, %428 : vector<2x128xf32>
    %430 = arith.mulf %421, %404 : vector<2x128xf32>
    %431 = arith.mulf %415, %423 : vector<2x128xf32>
    %432 = arith.addf %430, %431 : vector<2x128xf32>
    %433 = math.tanh %432 : vector<2x128xf32>
    %434 = arith.mulf %429, %433 : vector<2x128xf32>
    %435 = vector.extract_strided_slice %264 {offsets = [12, 0], sizes = [2, 512], strides = [1, 1]} : vector<16x512xf32> to vector<2x512xf32>
    %cst_91 = arith.constant dense<0.000000e+00> : vector<2x512xf32>
    %436 = tpu.matmul %434, %259, %cst_91 {dimension_numbers = #tpu.dot_dimension_numbers<[1], [0], [0], [1], [0, 0, 1, 1], [], []>} : vector<2x128xf32>, vector<128x512xf32>, vector<2x512xf32> -> vector<2x512xf32>
    %437 = arith.addf %435, %436 : vector<2x512xf32>
    %438 = vector.extract_strided_slice %437 {offsets = [0, 0], sizes = [2, 128], strides = [1, 1]} : vector<2x512xf32> to vector<2x128xf32>
    %439 = arith.negf %438 : vector<2x128xf32>
    %440 = math.exp %439 : vector<2x128xf32>
    %cst_92 = arith.constant 1.000000e+00 : f32
    %441 = vector.broadcast %cst_92 : f32 to vector<2x128xf32>
    %442 = arith.addf %441, %440 : vector<2x128xf32>
    %443 = arith.divf %441, %442 : vector<2x128xf32>
    %444 = vector.extract_strided_slice %437 {offsets = [0, 128], sizes = [2, 128], strides = [1, 1]} : vector<2x512xf32> to vector<2x128xf32>
    %445 = arith.negf %444 : vector<2x128xf32>
    %446 = math.exp %445 : vector<2x128xf32>
    %cst_93 = arith.constant 1.000000e+00 : f32
    %447 = vector.broadcast %cst_93 : f32 to vector<2x128xf32>
    %448 = arith.addf %447, %446 : vector<2x128xf32>
    %449 = arith.divf %447, %448 : vector<2x128xf32>
    %450 = vector.extract_strided_slice %437 {offsets = [0, 256], sizes = [2, 128], strides = [1, 1]} : vector<2x512xf32> to vector<2x128xf32>
    %451 = math.tanh %450 : vector<2x128xf32>
    %452 = vector.extract_strided_slice %437 {offsets = [0, 384], sizes = [2, 128], strides = [1, 1]} : vector<2x512xf32> to vector<2x128xf32>
    %453 = arith.negf %452 : vector<2x128xf32>
    %454 = math.exp %453 : vector<2x128xf32>
    %cst_94 = arith.constant 1.000000e+00 : f32
    %455 = vector.broadcast %cst_94 : f32 to vector<2x128xf32>
    %456 = arith.addf %455, %454 : vector<2x128xf32>
    %457 = arith.divf %455, %456 : vector<2x128xf32>
    %458 = arith.mulf %449, %432 : vector<2x128xf32>
    %459 = arith.mulf %443, %451 : vector<2x128xf32>
    %460 = arith.addf %458, %459 : vector<2x128xf32>
    %461 = math.tanh %460 : vector<2x128xf32>
    %462 = arith.mulf %457, %461 : vector<2x128xf32>
    %463 = vector.extract_strided_slice %264 {offsets = [14, 0], sizes = [2, 512], strides = [1, 1]} : vector<16x512xf32> to vector<2x512xf32>
    %cst_95 = arith.constant dense<0.000000e+00> : vector<2x512xf32>
    %464 = tpu.matmul %462, %259, %cst_95 {dimension_numbers = #tpu.dot_dimension_numbers<[1], [0], [0], [1], [0, 0, 1, 1], [], []>} : vector<2x128xf32>, vector<128x512xf32>, vector<2x512xf32> -> vector<2x512xf32>
    %465 = arith.addf %463, %464 : vector<2x512xf32>
    %466 = vector.extract_strided_slice %465 {offsets = [0, 0], sizes = [2, 128], strides = [1, 1]} : vector<2x512xf32> to vector<2x128xf32>
    %467 = arith.negf %466 : vector<2x128xf32>
    %468 = math.exp %467 : vector<2x128xf32>
    %cst_96 = arith.constant 1.000000e+00 : f32
    %469 = vector.broadcast %cst_96 : f32 to vector<2x128xf32>
    %470 = arith.addf %469, %468 : vector<2x128xf32>
    %471 = arith.divf %469, %470 : vector<2x128xf32>
    %472 = vector.extract_strided_slice %465 {offsets = [0, 128], sizes = [2, 128], strides = [1, 1]} : vector<2x512xf32> to vector<2x128xf32>
    %473 = arith.negf %472 : vector<2x128xf32>
    %474 = math.exp %473 : vector<2x128xf32>
    %cst_97 = arith.constant 1.000000e+00 : f32
    %475 = vector.broadcast %cst_97 : f32 to vector<2x128xf32>
    %476 = arith.addf %475, %474 : vector<2x128xf32>
    %477 = arith.divf %475, %476 : vector<2x128xf32>
    %478 = vector.extract_strided_slice %465 {offsets = [0, 256], sizes = [2, 128], strides = [1, 1]} : vector<2x512xf32> to vector<2x128xf32>
    %479 = math.tanh %478 : vector<2x128xf32>
    %480 = vector.extract_strided_slice %465 {offsets = [0, 384], sizes = [2, 128], strides = [1, 1]} : vector<2x512xf32> to vector<2x128xf32>
    %481 = arith.negf %480 : vector<2x128xf32>
    %482 = math.exp %481 : vector<2x128xf32>
    %cst_98 = arith.constant 1.000000e+00 : f32
    %483 = vector.broadcast %cst_98 : f32 to vector<2x128xf32>
    %484 = arith.addf %483, %482 : vector<2x128xf32>
    %485 = arith.divf %483, %484 : vector<2x128xf32>
    %486 = arith.mulf %477, %460 : vector<2x128xf32>
    %487 = arith.mulf %471, %479 : vector<2x128xf32>
    %488 = arith.addf %486, %487 : vector<2x128xf32>
    %489 = math.tanh %488 : vector<2x128xf32>
    %490 = arith.mulf %485, %489 : vector<2x128xf32>
    %491 = vector.extract_strided_slice %490 {offsets = [0, 0], sizes = [2, 32], strides = [1, 1]} : vector<2x128xf32> to vector<2x32xf32>
    %c1 = arith.constant 1 : index
    %c0_99 = arith.constant 0 : index
    %c0_100 = arith.constant 0 : index
    %492 = vector.load %arg10[%c1, %c0_99, %c0_100] : memref<2x2x32xf32, #tpu.memory_space<vmem>>, vector<1x2x32xf32>
    %493 = vector.shape_cast %492 : vector<1x2x32xf32> to vector<2x32xf32>
    %494 = vector.shape_cast %491 : vector<2x32xf32> to vector<1x2x32xf32>
    tpu.vector_store %arg10[%c1, %c0_99, %c0_100], %494 {strides = array<i32>} : memref<2x2x32xf32, #tpu.memory_space<vmem>>, vector<1x2x32xf32>,
    %495 = vector.extract_strided_slice %488 {offsets = [0, 0], sizes = [2, 32], strides = [1, 1]} : vector<2x128xf32> to vector<2x32xf32>
    %c1_101 = arith.constant 1 : index
    %c0_102 = arith.constant 0 : index
    %c0_103 = arith.constant 0 : index
    %496 = vector.load %arg11[%c1_101, %c0_102, %c0_103] : memref<2x2x32xf32, #tpu.memory_space<vmem>>, vector<1x2x32xf32>
    %497 = vector.shape_cast %496 : vector<1x2x32xf32> to vector<2x32xf32>
    %498 = vector.shape_cast %495 : vector<2x32xf32> to vector<1x2x32xf32>
    tpu.vector_store %arg11[%c1_101, %c0_102, %c0_103], %498 {strides = array<i32>} : memref<2x2x32xf32, #tpu.memory_space<vmem>>, vector<1x2x32xf32>,
    %c0_104 = arith.constant 0 : index
    %c0_105 = arith.constant 0 : index
    %499 = vector.load %arg7[%c0_104, %c0_105] : memref<128x4xf32, #tpu.memory_space<vmem>>, vector<128x4xf32>
    %cst_106 = arith.constant dense<0.000000e+00> : vector<2x4xf32>
    %500 = tpu.matmul %490, %499, %cst_106 {dimension_numbers = #tpu.dot_dimension_numbers<[1], [0], [0], [1], [0, 0, 1, 1], [], []>} : vector<2x128xf32>, vector<128x4xf32>, vector<2x4xf32> -> vector<2x4xf32>
    %c0_107 = arith.constant 0 : index
    %c0_108 = arith.constant 0 : index
    %501 = vector.load %arg8[%c0_107, %c0_108] : memref<1x4xf32, #tpu.memory_space<vmem>>, vector<1x4xf32>
    %502 = vector.broadcast %501 : vector<1x4xf32> to vector<2x4xf32>
    %503 = arith.addf %500, %502 : vector<2x4xf32>
    %c0_109 = arith.constant 0 : index
    %c0_110 = arith.constant 0 : index
    %504 = vector.load %arg9[%c0_109, %c0_110] : memref<2x4xf32, #tpu.memory_space<vmem>>, vector<2x4xf32>
    tpu.vector_store %arg9[%c0_109, %c0_110], %503 {strides = array<i32>} : memref<2x4xf32, #tpu.memory_space<vmem>>, vector<2x4xf32>,
    return
  }
}

</mosaic_0001>

<bundles_post_ra>
// kernel: mcdlstm_forward.1
= control target key start
LH: loop header
LB: loop body
LE: loop exit
PB: predicated region body
PF: predicated region fallthrough
CT: control target
= control target key end

     0   :  { %17 = vsyncpa [#allocation4], 0  ;;  %s6901_s0 = inlined_call_operand.vmem [shape: f32[16,16], index: 0, kind: input, shape index: {}]   ;;  %s6902_s1 = inlined_call_operand.vmem [shape: f32[16,512], index: 1, kind: input, shape index: {}]   ;;  %s6903_s2 = inlined_call_operand.hbm [shape: f32[128,512], index: 2, kind: input, shape index: {}]   ;;  %s6904_s3 = inlined_call_operand.vmem [shape: f32[1,512], index: 3, kind: input, shape index: {}]   ;;  %s6905_s4 = inlined_call_operand.hbm [shape: f32[128,512], index: 4, kind: input, shape index: {}]   ;;  %s6906_s5 = inlined_call_operand.hbm [shape: f32[128,512], index: 5, kind: input, shape index: {}]   ;;  %s6907_s6 = inlined_call_operand.vmem [shape: f32[1,512], index: 6, kind: input, shape index: {}]   ;;  %s6908_s7 = inlined_call_operand.vmem [shape: f32[128,4], index: 7, kind: input, shape index: {}]   ;;  %s6909_s8 = inlined_call_operand.vmem [shape: f32[1,4], index: 8, kind: input, shape index: {}]   ;;  %s6910_s9 = inlined_call_operand.hbm [shape: f32[2,4], index: 9, kind: output, shape index: {0}]   ;;  %s6911_s10 = inlined_call_operand.vmem [shape: f32[2,2,32], index: 10, kind: output, shape index: {1}]   ;;  %s6912_s11 = inlined_call_operand.vmem [shape: f32[2,2,32], index: 11, kind: output, shape index: {2}]  }
   0x1   :  { %18 = vsyncpa [#allocation7], 0 }
   0x2   :  { %19 = vsyncpa [#allocation5], 0  ;;  %s4840_s17 = smov [#allocation6]   ;;  %s4841_s19 = smov [#allocation3]  }
   0x3   :  { %s43_s18 = sshll.u32 %s4840_s17, 4  ;;  %s29_s20 = sshll.u32 %s4841_s19, 4  ;;  %s44_s18 = int_to_ptr.vmem [resolvable:$true] %s43_s18  ;;  %s30_s20 = int_to_ptr.vmem [resolvable:$true] %s29_s20 }
   0x4   :  { %s4762_s21 = scalar_lea.vmem %s44_s18, 8192  ;;  %p4767_p1 = scmp.lt.s32.totalorder %s44_s18, %s44_s18 }
   0x5   :  { %p4763_p0 = scmp.ne.s32.totalorder %s44_s18, %s4762_s21  ;;  %p4768_p2 = scmp.lt.s32.totalorder %s4762_s21, %s4762_s21 }
   0x7   :  { %p4769_p3 = por %p4768_p2, %p4767_p1 }
   0x9   :  { %p4770_p4 = pnand %p4769_p3, %p4763_p0 }
   0xb   :  { %4773 = shalt.err (!%p4770_p4)
}
   0xc   :  { %s4842_s22 = smov 512   ;;  %s4843_s23 = smov 32  }
   0xd   :  { %49 = dma.hbm_to_vmem [thread:$0]  %s6905_s4, 8192, %s44_s18, [#allocation7], %s4842_s22, %s4842_s22, %s4843_s23  }
   0xe   :  { %s4782_s26 = scalar_lea.vmem %s30_s20, 8192  ;;  %p4787_p6 = scmp.lt.s32.totalorder %s30_s20, %s30_s20 }
   0xf   :  { %p4783_p5 = scmp.ne.s32.totalorder %s30_s20, %s4782_s26  ;;  %p4788_p7 = scmp.lt.s32.totalorder %s4782_s26, %s4782_s26 }
  0x11   :  { %p4789_p8 = por %p4788_p7, %p4787_p6 }
  0x13   :  { %p4790_p9 = pnand %p4789_p8, %p4783_p5 }
  0x15   :  { %4793 = shalt.err (!%p4790_p9)
}
  0x16   :  { %35 = dma.hbm_to_vmem [thread:$0]  %s6903_s2, 8192, %s30_s20, [#allocation4], %s4842_s22, %s4842_s22, %s4843_s23  }
  0x17   :  { %s4844_s29 = smov [#allocation8]  }
  0x18   :  { %s55_s30 = sshll.u32 %s4844_s29, 4  ;;  %s56_s30 = int_to_ptr.vmem [resolvable:$true] %s55_s30 }
  0x19   :  { %s4802_s12 = scalar_lea.vmem %s56_s30, 8192  ;;  %p4807_p11 = scmp.lt.s32.totalorder %s56_s30, %s56_s30 }
  0x1a   :  { %p4803_p10 = scmp.ne.s32.totalorder %s56_s30, %s4802_s12  ;;  %p4808_p12 = scmp.lt.s32.totalorder %s4802_s12, %s4802_s12 }
  0x1c   :  { %p4809_p13 = por %p4808_p12, %p4807_p11 }
  0x1e   :  { %p4810_p0 = pnand %p4809_p13, %p4803_p10 }
  0x20   :  { %4813 = shalt.err (!%p4810_p0)
}
  0x21   :  { %61 = dma.hbm_to_vmem [thread:$0]  %s6906_s5, 8192, %s56_s30, [#allocation7], %s4842_s22, %s4842_s22, %s4843_s23  }
  0x22   :  { %4834 = dma.done.wait [#allocation4], 8192  }
  0x23   :  { %4835 = vsyncadd [#allocation4], 4294959104 }
  0x24   :  { %4836 = dma.done.wait [#allocation7], 16384  }
  0x25   :  { %4837 = vsyncadd [#allocation7], 4294950912  ;;  %v6927_v0 = vmov 0.0   ;;  %v82_v1 = vld [vmem:[%s6902_s1 + $0x28] sm:$0xff]  ;;  %v4922_v2 = vld [vmem:[#allocation3 + $0x1e8] sm:$0xff]  ;;  %vm173_vm0 = vcmask 130048  }
  0x26   :  { %244 = vmatprep.mubr.f32.mxu1 %v6927_v0  ;;  %398 = vmatprep.mubr.f32.mxu0 %v6927_v0  ;;  %7168 = vst [vmem:[#allocation13_spill] sm:$0xff] %v4922_v2  ;;  %v81_v3 = vld [vmem:[%s6902_s1 + $0x20] sm:$0xff]  ;;  %v4928_v4 = vld [vmem:[#allocation3 + $0x1e0] sm:$0xff]  ;;  %v78_v5 = vld [vmem:[%s6902_s1 + $0x8] sm:$0xff]  ;;  %vm551_vm1 = vcmask 1041409   ;;  %vm778_vm2 = vcmask 1042434  }
  0x27   :  { %208 = vmatprep.subr.mxu1 %v82_v1  ;;  %334 = vmatprep.subr.mxu0 %v4922_v2  ;;  %v4933_v6 = vld [vmem:[#allocation3 + $0x1c8] sm:$0xff]  ;;  %v77_v7 = vld [vmem:[%s6902_s1] sm:$0xff]  ;;  %v4939_v8 = vld [vmem:[#allocation3 + $0x1c0] sm:$0xff]  ;;  %vm1012_vm3 = vcmask 1043459   ;;  %vm1247_vm4 = vcmask 1044484   ;;  %vm1482_vm5 = vcmask 1045509  }
  0x28   :  { %209 = vmatpush1.msra.mxu1 %v81_v3  ;;  %335 = vmatpush1.msra.mxu0 %v4928_v4  ;;  %v150_v9 = vld [vmem:[%s6901_s0] sm:$0xff]  ;;  %v4945_v10 = vld [vmem:[#allocation3 + $0x1a8] sm:$0xff]  ;;  %v4947_v11 = vld [vmem:[#allocation3 + $0x1a0] sm:$0xff]  ;;  %vm1717_vm6 = vcmask 1046534   ;;  %vm1952_vm7 = vcmask 1047559   ;;  %vm2191_vm8 = vcmask 261127  }
  0x29   :  { %210 = vmatprep.subr.mxu1 %v78_v5  ;;  %336 = vmatprep.subr.mxu0 %v4933_v6  ;;  %v4950_v12 = vld [vmem:[#allocation3 + $0x188] sm:$0xff]  ;;  %v4957_v14 = vld [vmem:[#allocation3 + $0x180] sm:$0xff]  ;;  %v4967_v16 = vld [vmem:[%s6901_s0 + $0x8] sm:$0xff]  ;;  %vm2193_vm9 = vcmask 253952   ;;  %vm4846_vm10 = vmmov 0   ;;  %vm3977_vm11 = vcmask 261126  }
  0x2a   :  { %211 = vmatpush1.msra.mxu1 %v77_v7  ;;  %337 = vmatpush1.msra.mxu0 %v4939_v8  ;;  %v84_v13 = vld [vmem:[%s6902_s1 + $0x38] sm:$0xff]  ;;  %v83_v15 = vld [vmem:[%s6902_s1 + $0x30] sm:$0xff]  ;;  %v4989_v23 = vld [vmem:[#allocation3 + $0x1f8] sm:$0xff]  ;;  %s4847_s29 = smov [#allocation9]   ;;  %vm4077_vm12 = vcmask 25600  }
  0x2b   :  { %4103 = vmatmul.mubr.msk.f32.vlgmr.msra.gmra.mxu1 %vm173_vm0, %v150_v9  ;;  %338 = vmatprep.subr.mxu0 %v4945_v10  ;;  %v4969_v17 = vld [vmem:[#allocation3 + $0x168] sm:$0xff]  ;;  %v4975_v19 = vld [vmem:[#allocation3 + $0x160] sm:$0xff]  ;;  %7169 = vst [vmem:[#allocation14_spill] sm:$0xff] %v4989_v23  ;;  %v4994_v25 = vld [vmem:[#allocation3 + $0x1f0] sm:$0xff]  ;;  %s4085_s30 = sshll.u32 %s4847_s29, 4  ;;  %s4086_s30 = int_to_ptr.vmem [resolvable:$true] %s4085_s30 }
  0x2c   :  { %339 = vmatpush1.msra.mxu0 %v4947_v11  ;;  %250 = vmatprep.mubr.f32.mxu1 %v6927_v0  ;;  %v80_v18 = vld [vmem:[%s6902_s1 + $0x18] sm:$0xff]  ;;  %v79_v20 = vld [vmem:[%s6902_s1 + $0x10] sm:$0xff]  ;;  %v5000_v27 = vld [vmem:[#allocation3 + $0x1d8] sm:$0xff]  ;;  %p4819_p2 = scmp.lt.s32.totalorder %s4086_s30, %s4086_s30 }
  0x2d   :  { %340 = vmatprep.subr.mxu0 %v4950_v12  ;;  %285 = vmatprep.subr.mxu1 %v84_v13  ;;  %v4981_v21 = vld [vmem:[#allocation3 + $0x148] sm:$0xff]  ;;  %v4986_v22 = vld [vmem:[#allocation3 + $0x140] sm:$0xff]  ;;  %v5006_v29 = vld [vmem:[#allocation3 + $0x1d0] sm:$0xff] }
  0x2e   :  { %341 = vmatpush1.msra.mxu0 %v4957_v14  ;;  %286 = vmatpush1.msra.mxu1 %v83_v15  ;;  %v4992_v24 = vld [vmem:[#allocation3 + $0x128] sm:$0xff]  ;;  %v4998_v26 = vld [vmem:[#allocation3 + $0x120] sm:$0xff]  ;;  %v5012_v31 = vld [vmem:[#allocation3 + $0x1b8] sm:$0xff] }
  0x2f   :  { %4104 = vmatmul.mubr.msk.f32.gmra.mxu1 %vm173_vm0, %v4967_v16  ;;  %342 = vmatprep.subr.mxu0 %v4969_v17  ;;  %v5004_v28 = vld [vmem:[#allocation3 + $0x108] sm:$0xff]  ;;  %v5010_v30 = vld [vmem:[#allocation3 + $0x100] sm:$0xff]  ;;  %v5018_v33 = vld [vmem:[#allocation3 + $0x1b0] sm:$0xff] }
  0x30   :  { %287 = vmatprep.subr.mxu1 %v80_v18  ;;  %343 = vmatpush1.msra.mxu0 %v4975_v19  ;;  %v5016_v32 = vld [vmem:[#allocation3 + $0xe8] sm:$0xff]  ;;  %v5022_v34 = vld [vmem:[#allocation3 + $0xe0] sm:$0xff]  ;;  %v5024_v35 = vld [vmem:[#allocation3 + $0x198] sm:$0xff] }
  0x31   :  { %288 = vmatpush1.msra.mxu1 %v79_v20  ;;  %344 = vmatprep.subr.mxu0 %v4981_v21  ;;  %v5028_v36 = vld [vmem:[#allocation3 + $0xc8] sm:$0xff]  ;;  %v5030_v37 = vld [vmem:[#allocation3 + $0x190] sm:$0xff]  ;;  %v5034_v38 = vld [vmem:[#allocation3 + $0xc0] sm:$0xff] }
  0x32   :  { %321 = vmatprep.mubr.f32.mxu1 %v6927_v0  ;;  %345 = vmatpush1.msra.mxu0 %v4986_v22  ;;  %v5036_v39 = vld [vmem:[#allocation3 + $0x178] sm:$0xff]  ;;  %v5040_v40 = vld [vmem:[#allocation3 + $0xa8] sm:$0xff]  ;;  %v5042_v41 = vld [vmem:[#allocation3 + $0x170] sm:$0xff] }
  0x33   :  { %405 = vmatprep.subr.mxu1 %v4989_v23  ;;  %4105 = vmatmul.mubr.msk.f32.vlgmr.msra.gmra.mxu1 %vm173_vm0, %v150_v9  ;;  %v5046_v42 = vld [vmem:[#allocation3 + $0xa0] sm:$0xff]  ;;  %v5048_v43 = vld [vmem:[#allocation3 + $0x158] sm:$0xff]  ;;  %v5052_v44 = vld [vmem:[#allocation3 + $0x88] sm:$0xff] }
  0x34   :  { %346 = vmatprep.subr.mxu0 %v4992_v24  ;;  %406 = vmatpush1.msra.mxu1 %v4994_v25  ;;  %7170 = vst [vmem:[#allocation15_spill] sm:$0xff] %v5046_v42  ;;  %7171 = vst [vmem:[#allocation16_spill] sm:$0xff] %v5052_v44  ;;  %v5054_v45 = vld [vmem:[#allocation3 + $0x150] sm:$0xff]  ;;  %v5058_v46 = vld [vmem:[#allocation3 + $0x80] sm:$0xff] }
  0x35   :  { %347 = vmatpush1.msra.mxu0 %v4998_v26  ;;  %407 = vmatprep.subr.mxu1 %v5000_v27  ;;  %7172 = vst [vmem:[#allocation17_spill] sm:$0xff] %v5058_v46  ;;  %v5060_v47 = vld [vmem:[#allocation3 + $0x138] sm:$0xff]  ;;  %v5064_v48 = vld [vmem:[#allocation3 + $0x68] sm:$0xff]  ;;  %v5066_v49 = vld [vmem:[#allocation3 + $0x130] sm:$0xff] }
  0x36   :  { %348 = vmatprep.subr.mxu0 %v5004_v28  ;;  %408 = vmatpush1.msra.mxu1 %v5006_v29  ;;  %7173 = vst [vmem:[#allocation18_spill] sm:$0xff] %v5064_v48  ;;  %v5070_v50 = vld [vmem:[#allocation3 + $0x60] sm:$0xff]  ;;  %v5072_v51 = vld [vmem:[#allocation3 + $0x118] sm:$0xff]  ;;  %v5076_v52 = vld [vmem:[#allocation3 + $0x48] sm:$0xff] }
  0x37   :  { %349 = vmatpush1.msra.mxu0 %v5010_v30  ;;  %409 = vmatprep.subr.mxu1 %v5012_v31  ;;  %7174 = vst [vmem:[#allocation19_spill] sm:$0xff] %v5070_v50  ;;  %7175 = vst [vmem:[#allocation20_spill] sm:$0xff] %v5076_v52  ;;  %v5078_v53 = vld [vmem:[#allocation3 + $0x110] sm:$0xff]  ;;  %v5082_v54 = vld [vmem:[#allocation3 + $0x40] sm:$0xff] }
  0x38   :  { %350 = vmatprep.subr.mxu0 %v5016_v32  ;;  %410 = vmatpush1.msra.mxu1 %v5018_v33  ;;  %7176 = vst [vmem:[#allocation21_spill] sm:$0xff] %v5082_v54  ;;  %v5084_v55 = vld [vmem:[#allocation3 + $0xf8] sm:$0xff]  ;;  %v5088_v56 = vld [vmem:[#allocation3 + $0x28] sm:$0xff]  ;;  %v5090_v57 = vld [vmem:[#allocation3 + $0xf0] sm:$0xff] }
  0x39   :  { %351 = vmatpush1.msra.mxu0 %v5022_v34  ;;  %411 = vmatprep.subr.mxu1 %v5024_v35  ;;  %7177 = vst [vmem:[#allocation22_spill] sm:$0xff] %v5088_v56  ;;  %v5094_v58 = vld [vmem:[#allocation3 + $0x20] sm:$0xff]  ;;  %v5096_v59 = vld [vmem:[#allocation3 + $0xd8] sm:$0xff]  ;;  %v5100_v60 = vld [vmem:[#allocation3 + $0x8] sm:$0xff] }
  0x3a   :  { %352 = vmatprep.subr.mxu0 %v5028_v36  ;;  %412 = vmatpush1.msra.mxu1 %v5030_v37  ;;  %7178 = vst [vmem:[#allocation23_spill] sm:$0xff] %v5094_v58  ;;  %7179 = vst [vmem:[#allocation24_spill] sm:$0xff] %v5100_v60  ;;  %v5102_v61 = vld [vmem:[#allocation3 + $0xd0] sm:$0xff]  ;;  %v5106_v62 = vld [vmem:[#allocation3] sm:$0xff] }
  0x3b   :  { %353 = vmatpush1.msra.mxu0 %v5034_v38  ;;  %413 = vmatprep.subr.mxu1 %v5036_v39  ;;  %7180 = vst [vmem:[#allocation25_spill] sm:$0xff] %v5106_v62  ;;  %v5108_v63 = vld [vmem:[#allocation3 + $0xb8] sm:$0xff]  ;;  %v5112_v1 = vld [vmem:[#allocation3 + $0xb0] sm:$0xff] }
  0x3c   :  { %354 = vmatprep.subr.mxu0 %v5040_v40  ;;  %414 = vmatpush1.msra.mxu1 %v5042_v41  ;;  %7181 = vst [vmem:[#allocation26_spill] sm:$0xff] %v5112_v1  ;;  %v5116_v3 = vld [vmem:[#allocation3 + $0x98] sm:$0xff]  ;;  %v5120_v5 = vld [vmem:[#allocation3 + $0x90] sm:$0xff] }
  0x3d   :  { %355 = vmatpush1.msra.mxu0 %v5046_v42  ;;  %415 = vmatprep.subr.mxu1 %v5048_v43  ;;  %7182 = vst [vmem:[#allocation27_spill] sm:$0xff] %v5116_v3  ;;  %7183 = vst [vmem:[#allocation28_spill] sm:$0xff] %v5120_v5  ;;  %v5124_v7 = vld [vmem:[#allocation3 + $0x78] sm:$0xff]  ;;  %v5127_v9 = vld [vmem:[#allocation3 + $0x70] sm:$0xff] }
  0x3e   :  { %356 = vmatprep.subr.mxu0 %v5052_v44  ;;  %416 = vmatpush1.msra.mxu1 %v5054_v45  ;;  %7184 = vst [vmem:[#allocation29_spill] sm:$0xff] %v5124_v7  ;;  %7185 = vst [vmem:[#allocation30_spill] sm:$0xff] %v5127_v9  ;;  %v5131_v13 = vld [vmem:[#allocation3 + $0x58] sm:$0xff]  ;;  %v5135_v15 = vld [vmem:[#allocation3 + $0x50] sm:$0xff] }
  0x3f   :  { %357 = vmatpush1.msra.mxu0 %v5058_v46  ;;  %417 = vmatprep.subr.mxu1 %v5060_v47  ;;  %7186 = vst [vmem:[#allocation31_spill] sm:$0xff] %v5131_v13  ;;  %7187 = vst [vmem:[#allocation32_spill] sm:$0xff] %v5135_v15  ;;  %v5140_v18 = vld [vmem:[#allocation3 + $0x38] sm:$0xff]  ;;  %v5144_v20 = vld [vmem:[#allocation3 + $0x30] sm:$0xff] }
  0x40   :  { %358 = vmatprep.subr.mxu0 %v5064_v48  ;;  %418 = vmatpush1.msra.mxu1 %v5066_v49  ;;  %7188 = vst [vmem:[#allocation33_spill] sm:$0xff] %v5140_v18  ;;  %7189 = vst [vmem:[#allocation34_spill] sm:$0xff] %v5144_v20 }
  0x41   :  { %359 = vmatpush1.msra.mxu0 %v5070_v50  ;;  %419 = vmatprep.subr.mxu1 %v5072_v51 }
  0x42   :  { %360 = vmatprep.subr.mxu0 %v5076_v52  ;;  %420 = vmatpush1.msra.mxu1 %v5078_v53 }
  0x43   :  { %361 = vmatpush1.msra.mxu0 %v5082_v54  ;;  %421 = vmatprep.subr.mxu1 %v5084_v55 }
  0x44   :  { %362 = vmatprep.subr.mxu0 %v5088_v56  ;;  %422 = vmatpush1.msra.mxu1 %v5090_v57 }
  0x45   :  { %363 = vmatpush1.msra.mxu0 %v5094_v58  ;;  %423 = vmatprep.subr.mxu1 %v5096_v59 }
  0x46   :  { %364 = vmatprep.subr.mxu0 %v5100_v60  ;;  %424 = vmatpush1.msra.mxu1 %v5102_v61 }
  0x47   :  { %365 = vmatpush1.msra.mxu0 %v5106_v62  ;;  %425 = vmatprep.subr.mxu1 %v5108_v63 }
  0x48   :  { %399 = vmatmul.mubr.f32.vlgmr.msra.gmra.mxu0 %v6927_v0  ;;  %426 = vmatpush1.msra.mxu1 %v5112_v1 }
  0x49   :  { %427 = vmatprep.subr.mxu1 %v5116_v3  ;;  %327 = vmatprep.mubr.f32.mxu1 %v6927_v0 }
  0x4a   :  { %428 = vmatpush1.msra.mxu1 %v5120_v5  ;;  %555 = vmatprep.subr.mxu0 %v4922_v2  ;;  %v5148_v2 = vld [vmem:[#allocation3 + $0x18] sm:$0xff] }
  0x4b   :  { %429 = vmatprep.subr.mxu1 %v5124_v7  ;;  %4106 = vmatmul.mubr.msk.f32.gmra.mxu1 %vm173_vm0, %v4967_v16  ;;  %7190 = vst [vmem:[#allocation35_spill] sm:$0xff] %v5148_v2  ;;  %v5152_v16 = vld [vmem:[#allocation3 + $0x10] sm:$0xff] }
  0x4c   :  { %430 = vmatpush1.msra.mxu1 %v5127_v9  ;;  %469 = vmatprep.mubr.f32.mxu1 %v6927_v0  ;;  %7191 = vst [vmem:[#allocation36_spill] sm:$0xff] %v5152_v16 }
  0x4d   :  { %431 = vmatprep.subr.mxu1 %v5131_v13  ;;  %556 = vmatpush1.msra.mxu0 %v4928_v4 }
  0x4e   :  { %432 = vmatpush1.msra.mxu1 %v5135_v15  ;;  %557 = vmatprep.subr.mxu0 %v4933_v6 }
  0x4f   :  { %433 = vmatprep.subr.mxu1 %v5140_v18  ;;  %558 = vmatpush1.msra.mxu0 %v4939_v8 }
  0x50   :  { %434 = vmatpush1.msra.mxu1 %v5144_v20  ;;  %559 = vmatprep.subr.mxu0 %v4945_v10 }
  0x51   :  { %435 = vmatprep.subr.mxu1 %v5148_v2  ;;  %560 = vmatpush1.msra.mxu0 %v4947_v11 }
  0x52   :  { %436 = vmatpush1.msra.mxu1 %v5152_v16  ;;  %561 = vmatprep.subr.mxu0 %v4950_v12 }
  0x53   :  { %470 = vmatmul.mubr.f32.vlgmr.msra.gmra.mxu1 %v6927_v0  ;;  %626 = vmatprep.subr.mxu1 %v4989_v23 }
  0x54   :  { %627 = vmatpush1.msra.mxu1 %v4994_v25  ;;  %562 = vmatpush1.msra.mxu0 %v4957_v14 }
  0x55   :  { %628 = vmatprep.subr.mxu1 %v5000_v27  ;;  %563 = vmatprep.subr.mxu0 %v4969_v17 }
  0x56   :  { %629 = vmatpush1.msra.mxu1 %v5006_v29  ;;  %564 = vmatpush1.msra.mxu0 %v4975_v19 }
  0x57   :  { %630 = vmatprep.subr.mxu1 %v5012_v31  ;;  %565 = vmatprep.subr.mxu0 %v4981_v21 }
  0x58   :  { %631 = vmatpush1.msra.mxu1 %v5018_v33  ;;  %566 = vmatpush1.msra.mxu0 %v4986_v22 }
  0x59   :  { %632 = vmatprep.subr.mxu1 %v5024_v35  ;;  %567 = vmatprep.subr.mxu0 %v4992_v24 }
  0x5a   :  { %633 = vmatpush1.msra.mxu1 %v5030_v37  ;;  %568 = vmatpush1.msra.mxu0 %v4998_v26 }
  0x5b   :  { %634 = vmatprep.subr.mxu1 %v5036_v39  ;;  %569 = vmatprep.subr.mxu0 %v5004_v28 }
  0x5c   :  { %635 = vmatpush1.msra.mxu1 %v5042_v41  ;;  %570 = vmatpush1.msra.mxu0 %v5010_v30 }
  0x5d   :  { %636 = vmatprep.subr.mxu1 %v5048_v43  ;;  %571 = vmatprep.subr.mxu0 %v5016_v32 }
  0x5e   :  { %637 = vmatpush1.msra.mxu1 %v5054_v45  ;;  %572 = vmatpush1.msra.mxu0 %v5022_v34 }
  0x5f   :  { %638 = vmatprep.subr.mxu1 %v5060_v47  ;;  %573 = vmatprep.subr.mxu0 %v5028_v36 }
  0x60   :  { %639 = vmatpush1.msra.mxu1 %v5066_v49  ;;  %574 = vmatpush1.msra.mxu0 %v5034_v38 }
  0x61   :  { %640 = vmatprep.subr.mxu1 %v5072_v51  ;;  %575 = vmatprep.subr.mxu0 %v5040_v40 }
  0x62   :  { %641 = vmatpush1.msra.mxu1 %v5078_v53  ;;  %576 = vmatpush1.msra.mxu0 %v5046_v42 }
  0x63   :  { %642 = vmatprep.subr.mxu1 %v5084_v55  ;;  %577 = vmatprep.subr.mxu0 %v5052_v44 }
  0x64   :  { %643 = vmatpush1.msra.mxu1 %v5090_v57  ;;  %578 = vmatpush1.msra.mxu0 %v5058_v46 }
  0x65   :  { %644 = vmatprep.subr.mxu1 %v5096_v59  ;;  %579 = vmatprep.subr.mxu0 %v5064_v48 }
  0x66   :  { %645 = vmatpush1.msra.mxu1 %v5102_v61  ;;  %580 = vmatpush1.msra.mxu0 %v5070_v50 }
  0x67   :  { %646 = vmatprep.subr.mxu1 %v5108_v63  ;;  %581 = vmatprep.subr.mxu0 %v5076_v52 }
  0x68   :  { %647 = vmatpush1.msra.mxu1 %v5112_v1  ;;  %582 = vmatpush1.msra.mxu0 %v5082_v54 }
  0x69   :  { %648 = vmatprep.subr.mxu1 %v5116_v3  ;;  %583 = vmatprep.subr.mxu0 %v5088_v56  ;;  %v7192_v56 = vld [vmem:[#allocation13_spill] sm:$0xff] }
  0x6a   :  { %649 = vmatpush1.msra.mxu1 %v5120_v5  ;;  %584 = vmatpush1.msra.mxu0 %v5094_v58 }
  0x6b   :  { %650 = vmatprep.subr.mxu1 %v5124_v7  ;;  %585 = vmatprep.subr.mxu0 %v5100_v60  ;;  %v153_v60 = vlaneseq }
  0x6c   :  { %651 = vmatpush1.msra.mxu1 %v5127_v9  ;;  %586 = vmatpush1.msra.mxu0 %v5106_v62 }
  0x6d   :  { %652 = vmatprep.subr.mxu1 %v5131_v13  ;;  %619 = vmatprep.mubr.f32.mxu0 %v6927_v0  ;;  %v5223_v54 = vshrl.u32 %v153_v60, 7 }
  0x6e   :  { %653 = vmatpush1.msra.mxu1 %v5135_v15  ;;  %690 = vmatprep.mubr.f32.mxu1 %v6927_v0 }
  0x6f   :  { %654 = vmatprep.subr.mxu1 %v5140_v18  ;;  %785 = vmatprep.subr.mxu0 %v7192_v56  ;;  %7193 = vst [vmem:[#allocation37_spill] sm:$0xff] %v5223_v54  ;;  %v6955_v0 = vsub.s32 0, %v5223_v54  ;;  %v149_v56 = vld [vmem:[%s6904_s3] sm:$0xf]  ;;  %v6967_v1 = vsub.s32 2, %v5223_v54 }
  0x70   :  { %655 = vmatpush1.msra.mxu1 %v5144_v20  ;;  %v6960_v20 = vsub.s32 1, %v5223_v54 }
  0x71   :  { %656 = vmatprep.subr.mxu1 %v5148_v2 }
  0x72   :  { %657 = vmatpush1.msra.mxu1 %v5152_v16  ;;  %v156_v16 = vrot.slane %v149_v56, %v6955_v0 }
  0x73   :  { %856 = vmatprep.subr.mxu1 %v4989_v23  ;;  %v160_v23 = vrot.slane %v149_v56, %v6960_v20 }
  0xeb   :  { %v246_v62 = vpop.f32.mrf.mxu1 }
  0xec   :  { %v5234_v13 = vadd.f32 %v246_v62, %v156_v16 }
  0xed   :  { %v248_v58 = vpop.f32.mrf.mxu1 }
  0xee   :  { %7194 = vst [vmem:[#allocation38_spill] sm:$0xff] %v5234_v13  ;;  %v5236_v52 = vadd.f32 %v248_v58, %v160_v23  ;;  %v6968_v58 = vsub.s32 3, %v5223_v54 }
  0xef   :  { %v252_v15 = vpop.f32.mrf.mxu1 }
  0xf0   :  { %7195 = vst [vmem:[#allocation39_spill] sm:$0xff] %v5236_v52  ;;  %v5238_v9 = vadd.f32 %v252_v15, %v156_v16 }
  0xf1   :  { %v254_v18 = vpop.f32.mrf.mxu1 }
  0xf2   :  { %7196 = vst [vmem:[#allocation40_spill] sm:$0xff] %v5238_v9  ;;  %v5241_v5 = vadd.f32 %v254_v18, %v160_v23 }
  0xf3   :  { %v323_v2 = vpop.f32.mrf.mxu1 }
  0xf4   :  { %7197 = vst [vmem:[#allocation41_spill] sm:$0xff] %v5241_v5 }
  0xf5   :  { %v325_v50 = vpop.f32.mrf.mxu1 }
 0x108   :  { %v400_v60 = vpop.f32.mrf.mxu0 }
 0x109   :  { %v480_v7 = vrot.slane %v400_v60, 1  ;;  %v492_v48 = vadd.f32 %v400_v60, %v5234_v13 }
 0x10a   :  { %v402_v46 = vpop.f32.mrf.mxu0 }
 0x10b   :  { %v496_v0 = vadd.f32 %v480_v7, %v5238_v9  ;;  %v4107_v3 = vmul.f32 -1.442695, %v492_v48  ;;  %v481_v44 = vrot.slane %v402_v46, 1  ;;  %v493_v20 = vadd.f32 %v402_v46, %v5236_v52  ;;  %v329_v62 = vpop.f32.mrf.mxu1 }
 0x10c   :  { %v164_v7 = vrot.slane %v149_v56, %v6967_v1  ;;  %v168_v48 = vrot.slane %v149_v56, %v6968_v58 }
 0x10d   :  { %4242 = vpow2.f32 %v4107_v3  ;;  %v4108_v15 = vmul.f32 -1.442695, %v496_v0  ;;  %v497_v16 = vadd.f32 %v481_v44, %v5241_v5  ;;  %v4109_v42 = vmul.f32 -1.442695, %v493_v20  ;;  %v331_v18 = vpop.f32.mrf.mxu1 }
 0x10e   :  { %v5252_v46 = vadd.f32 %v329_v62, %v164_v7  ;;  %v5254_v52 = vadd.f32 %v323_v2, %v164_v7  ;;  %v5256_v0 = vadd.f32 %v325_v50, %v168_v48  ;;  %v5258_v44 = vadd.f32 %v331_v18, %v168_v48 }
 0x10f   :  { %4244 = vpow2.f32 %v4108_v15  ;;  %v4110_v23 = vmul.f32 -1.442695, %v497_v16 }
 0x110   :  { %4246 = vpow2.f32 %v4109_v42  ;;  %7198 = vst [vmem:[#allocation42_spill] sm:$0xff] %v5252_v46  ;;  %7199 = vst [vmem:[#allocation43_spill] sm:$0xff] %v5254_v52 }
 0x111   :  { %4248 = vpow2.f32 %v4110_v23  ;;  %7200 = vst [vmem:[#allocation44_spill] sm:$0xff] %v5256_v0  ;;  %7201 = vst [vmem:[#allocation45_spill] sm:$0xff] %v5258_v44 }
 0x113   :  { %v471_v60 = vpop.f32.mrf.mxu1 }
 0x114   :  { %v482_v3 = vrot.slane %v471_v60, 1  ;;  %v494_v15 = vadd.f32 %v471_v60, %v5254_v52 }
 0x115   :  { %v473_v20 = vpop.f32.mrf.mxu1 }
 0x116   :  { %v483_v16 = vrot.slane %v473_v20, 1  ;;  %v495_v1 = vadd.f32 %v473_v20, %v5256_v0  ;;  %v498_v56 = vadd.f32 %v482_v3, %v5252_v46  ;;  %4250 = vtanh.f32 %v494_v15 }
 0x118   :  { %v499_v42 = vadd.f32 %v483_v16, %v5258_v44  ;;  %v4111_v62 = vmul.f32 -1.442695, %v495_v1  ;;  %4252 = vtanh.f32 %v498_v56 }
 0x11a   :  { %v4243_v23 = vpop.eup %4242  ;;  %v4112_v2 = vmul.f32 -1.442695, %v499_v42  ;;  %4254 = vpow2.f32 %v4111_v62 }
 0x11b   :  { %v506_v7 = vadd.f32 1.0, %v4243_v23 }
 0x11c   :  { %v4245_v50 = vpop.eup %4244  ;;  %4256 = vpow2.f32 %v4112_v2 }
 0x11d   :  { %v4247_v18 = vpop.eup %4246  ;;  %v507_v48 = vadd.f32 1.0, %v4245_v50  ;;  %4258 = vrcp.f32 %v506_v7 }
 0x11e   :  { %v4249_v58 = vpop.eup %4248  ;;  %v518_v60 = vadd.f32 1.0, %v4247_v18 }
 0x11f   :  { %4260 = vrcp.f32 %v507_v48  ;;  %v519_v20 = vadd.f32 1.0, %v4249_v58 }
 0x120   :  { %4262 = vrcp.f32 %v518_v60 }
 0x121   :  { %4264 = vrcp.f32 %v519_v20 }
 0x123   :  { %v4251_v3 = vpop.eup %4250 }
 0x125   :  { %v4253_v16 = vpop.eup %4252 }
 0x127   :  { %v4255_v1 = vpop.eup %4254 }
 0x128   :  { %v532_v58 = vadd.f32 1.0, %v4255_v1  ;;  %v7203_v1 = vld [vmem:[#allocation26_spill] sm:$0xff] }
 0x129   :  { %v4257_v54 = vpop.eup %4256 }
 0x12a   :  { %v4259_v15 = vpop.eup %4258  ;;  %v533_v56 = vadd.f32 1.0, %v4257_v54 }
 0x12b   :  { %v540_v46 = vmul.f32 %v4259_v15, %v4251_v3  ;;  %v7204_v15 = vld [vmem:[#allocation16_spill] sm:$0xff] }
 0x12c   :  { %v4261_v42 = vpop.eup %4260  ;;  %4266 = vrcp.f32 %v533_v56  ;;  %v7207_v56 = vld [vmem:[#allocation28_spill] sm:$0xff] }
 0x12d   :  { %v4263_v23 = vpop.eup %4262  ;;  %v541_v2 = vmul.f32 %v4261_v42, %v4253_v16  ;;  %v7202_v16 = vld [vmem:[#allocation15_spill] sm:$0xff] }
 0x12e   :  { %v4265_v52 = vpop.eup %4264  ;;  %v538_v62 = vmul.f32 0.0, %v4263_v23  ;;  %v7205_v42 = vld [vmem:[#allocation27_spill] sm:$0xff]  ;;  %v7206_v23 = vld [vmem:[#allocation17_spill] sm:$0xff] }
 0x12f   :  { %v539_v50 = vmul.f32 0.0, %v4265_v52 }
 0x130   :  { %v5264_v0 = vadd.f32 %v540_v46, %v538_v62  ;;  %v7208_v62 = vld [vmem:[#allocation18_spill] sm:$0xff] }
 0x131   :  { %v5266_v7 = vadd.f32 %v541_v2, %v539_v50  ;;  %v7209_v50 = vld [vmem:[#allocation29_spill] sm:$0xff]  ;;  %v7210_v2 = vld [vmem:[#allocation19_spill] sm:$0xff] }
 0x132   :  { %4268 = vtanh.f32 %v5264_v0 }
 0x133   :  { %4270 = vtanh.f32 %v5266_v7 }
 0x134   :  { %4272 = vrcp.f32 %v532_v58  ;;  %v7211_v58 = vld [vmem:[#allocation30_spill] sm:$0xff] }
 0x139   :  { %v4267_v18 = vpop.eup %4266 }
 0x13f   :  { %v4269_v48 = vpop.eup %4268 }
 0x140   :  { %v4271_v60 = vpop.eup %4270 }
 0x141   :  { %v547_v54 = vmul.f32 %v4271_v60, %v4267_v18  ;;  %v4273_v20 = vpop.eup %4272  ;;  %v7212_v18 = vld [vmem:[#allocation20_spill] sm:$0xff]  ;;  %v7214_v60 = vld [vmem:[#allocation21_spill] sm:$0xff] }
 0x142   :  { %v546_v3 = vmul.f32 %v4273_v20, %v4269_v48  ;;  %v7213_v48 = vld [vmem:[#allocation31_spill] sm:$0xff]  ;;  %v7216_v20 = vld [vmem:[#allocation22_spill] sm:$0xff] }
 0x143   :  { %v550_v52 = vrot.slane %v547_v54, 7  ;;  %v7215_v54 = vld [vmem:[#allocation32_spill] sm:$0xff] }
 0x145   :  { %v552_v46 = vsel %vm551_vm1, %v550_v52, %v546_v3  ;;  %v7217_v3 = vld [vmem:[#allocation33_spill] sm:$0xff]  ;;  %v7218_v52 = vld [vmem:[#allocation23_spill] sm:$0xff] }
 0x146   :  { %554 = vst [vmem:[#allocation2] sm:$0x3] %v552_v46  ;;  %620 = vmatmul.mubr.f32.vlgmr.msra.gmra.mxu0 %v552_v46  ;;  %691 = vmatmul.mubr.f32.vlgmr.msra.gmra.mxu1 %v552_v46  ;;  %v7219_v46 = vld [vmem:[#allocation34_spill] sm:$0xff] }
 0x147   :  { %786 = vmatpush1.msra.mxu0 %v4928_v4  ;;  %857 = vmatpush1.msra.mxu1 %v4994_v25 }
 0x148   :  { %787 = vmatprep.subr.mxu0 %v4933_v6  ;;  %858 = vmatprep.subr.mxu1 %v5000_v27 }
 0x149   :  { %788 = vmatpush1.msra.mxu0 %v4939_v8  ;;  %859 = vmatpush1.msra.mxu1 %v5006_v29 }
 0x14a   :  { %789 = vmatprep.subr.mxu0 %v4945_v10  ;;  %860 = vmatprep.subr.mxu1 %v5012_v31 }
 0x14b   :  { %790 = vmatpush1.msra.mxu0 %v4947_v11  ;;  %861 = vmatpush1.msra.mxu1 %v5018_v33 }
 0x14c   :  { %791 = vmatprep.subr.mxu0 %v4950_v12  ;;  %862 = vmatprep.subr.mxu1 %v5024_v35 }
 0x14d   :  { %792 = vmatpush1.msra.mxu0 %v4957_v14  ;;  %863 = vmatpush1.msra.mxu1 %v5030_v37 }
 0x14e   :  { %793 = vmatprep.subr.mxu0 %v4969_v17  ;;  %864 = vmatprep.subr.mxu1 %v5036_v39 }
 0x14f   :  { %794 = vmatpush1.msra.mxu0 %v4975_v19  ;;  %865 = vmatpush1.msra.mxu1 %v5042_v41 }
 0x150   :  { %795 = vmatprep.subr.mxu0 %v4981_v21  ;;  %866 = vmatprep.subr.mxu1 %v5048_v43 }
 0x151   :  { %796 = vmatpush1.msra.mxu0 %v4986_v22  ;;  %867 = vmatpush1.msra.mxu1 %v5054_v45 }
 0x152   :  { %797 = vmatprep.subr.mxu0 %v4992_v24  ;;  %868 = vmatprep.subr.mxu1 %v5060_v47 }
 0x153   :  { %798 = vmatpush1.msra.mxu0 %v4998_v26  ;;  %869 = vmatpush1.msra.mxu1 %v5066_v49 }
 0x154   :  { %799 = vmatprep.subr.mxu0 %v5004_v28  ;;  %870 = vmatprep.subr.mxu1 %v5072_v51 }
 0x155   :  { %800 = vmatpush1.msra.mxu0 %v5010_v30  ;;  %871 = vmatpush1.msra.mxu1 %v5078_v53 }
 0x156   :  { %801 = vmatprep.subr.mxu0 %v5016_v32  ;;  %872 = vmatprep.subr.mxu1 %v5084_v55 }
 0x157   :  { %802 = vmatpush1.msra.mxu0 %v5022_v34  ;;  %873 = vmatpush1.msra.mxu1 %v5090_v57 }
 0x158   :  { %803 = vmatprep.subr.mxu0 %v5028_v36  ;;  %874 = vmatprep.subr.mxu1 %v5096_v59 }
 0x159   :  { %804 = vmatpush1.msra.mxu0 %v5034_v38  ;;  %875 = vmatpush1.msra.mxu1 %v5102_v61 }
 0x15a   :  { %805 = vmatprep.subr.mxu0 %v5040_v40  ;;  %876 = vmatprep.subr.mxu1 %v5108_v63 }
 0x15b   :  { %806 = vmatpush1.msra.mxu0 %v7202_v16  ;;  %877 = vmatpush1.msra.mxu1 %v7203_v1 }
 0x15c   :  { %807 = vmatprep.subr.mxu0 %v7204_v15  ;;  %878 = vmatprep.subr.mxu1 %v7205_v42 }
 0x15d   :  { %808 = vmatpush1.msra.mxu0 %v7206_v23  ;;  %879 = vmatpush1.msra.mxu1 %v7207_v56 }
 0x15e   :  { %809 = vmatprep.subr.mxu0 %v7208_v62  ;;  %880 = vmatprep.subr.mxu1 %v7209_v50  ;;  %v7220_v50 = vld [vmem:[#allocation24_spill] sm:$0xff] }
 0x15f   :  { %810 = vmatpush1.msra.mxu0 %v7210_v2  ;;  %881 = vmatpush1.msra.mxu1 %v7211_v58  ;;  %v7221_v2 = vld [vmem:[#allocation35_spill] sm:$0xff]  ;;  %v7222_v58 = vld [vmem:[#allocation25_spill] sm:$0xff] }
 0x160   :  { %811 = vmatprep.subr.mxu0 %v7212_v18  ;;  %882 = vmatprep.subr.mxu1 %v7213_v48  ;;  %v7223_v18 = vmov 0.0   ;;  %v7224_v48 = vld [vmem:[#allocation36_spill] sm:$0xff] }
 0x161   :  { %812 = vmatpush1.msra.mxu0 %v7214_v60  ;;  %883 = vmatpush1.msra.mxu1 %v7215_v54  ;;  %v7225_v54 = vld [vmem:[#allocation13_spill] sm:$0xff] }
 0x162   :  { %813 = vmatprep.subr.mxu0 %v7216_v20  ;;  %884 = vmatprep.subr.mxu1 %v7217_v3  ;;  %v7226_v20 = vld [vmem:[#allocation14_spill] sm:$0xff] }
 0x163   :  { %814 = vmatpush1.msra.mxu0 %v7218_v52  ;;  %885 = vmatpush1.msra.mxu1 %v7219_v46 }
 0x164   :  { %815 = vmatprep.subr.mxu0 %v7220_v50  ;;  %886 = vmatprep.subr.mxu1 %v7221_v2 }
 0x165   :  { %816 = vmatpush1.msra.mxu0 %v7222_v58  ;;  %849 = vmatprep.mubr.f32.mxu0 %v7223_v18 }
 0x166   :  { %887 = vmatpush1.msra.mxu1 %v7224_v48  ;;  %920 = vmatprep.mubr.f32.mxu1 %v7223_v18  ;;  %v7227_v48 = vld [vmem:[#allocation39_spill] sm:$0xff] }
 0x167   :  { %1020 = vmatprep.subr.mxu0 %v7225_v54  ;;  %1091 = vmatprep.subr.mxu1 %v7226_v20 }
 0x206   :  { %v621_v3 = vpop.f32.mrf.mxu0  ;;  %v692_v60 = vpop.f32.mrf.mxu1 }
 0x207   :  { %v701_v52 = vrot.slane %v621_v3, 7  ;;  %v717_v46 = vadd.f32 %v621_v3, %v5238_v9  ;;  %v7228_v9 = vld [vmem:[#allocation44_spill] sm:$0xff]  ;;  %v703_v16 = vrot.slane %v692_v60, 7 }
 0x208   :  { %v623_v50 = vpop.f32.mrf.mxu0  ;;  %v694_v54 = vpop.f32.mrf.mxu1 }
 0x209   :  { %v713_v2 = vadd.f32 %v701_v52, %v5234_v13  ;;  %v4114_v62 = vmul.f32 -1.442695, %v717_v46  ;;  %v702_v58 = vrot.slane %v623_v50, 7  ;;  %v718_v56 = vadd.f32 %v623_v50, %v5241_v5  ;;  %v7229_v52 = vld [vmem:[#allocation42_spill] sm:$0xff] }
 0x20a   :  { %v704_v15 = vrot.slane %v694_v54, 7  ;;  %v720_v3 = vadd.f32 %v694_v54, %v5258_v44  ;;  %v719_v46 = vadd.f32 %v692_v60, %v7229_v52 }
 0x20b   :  { %v4113_v23 = vmul.f32 -1.442695, %v713_v2  ;;  %4274 = vpow2.f32 %v4114_v62  ;;  %v714_v18 = vadd.f32 %v702_v58, %v7227_v48  ;;  %v4116_v42 = vmul.f32 -1.442695, %v718_v56 }
 0x20c   :  { %v716_v1 = vadd.f32 %v704_v15, %v7228_v9  ;;  %v4118_v13 = vmul.f32 -1.442695, %v720_v3 }
 0x20d   :  { %4276 = vpow2.f32 %v4113_v23  ;;  %v4115_v20 = vmul.f32 -1.442695, %v714_v18  ;;  %v7230_v18 = vld [vmem:[#allocation43_spill] sm:$0xff] }
 0x20e   :  { %4278 = vpow2.f32 %v4116_v42  ;;  %v4117_v50 = vmul.f32 -1.442695, %v716_v1  ;;  %v715_v42 = vadd.f32 %v703_v16, %v7230_v18  ;;  %v761_v16 = vrot.slane %v5264_v0, 7 }
 0x20f   :  { %4280 = vpow2.f32 %v4115_v20 }
 0x210   :  { %4282 = vtanh.f32 %v719_v46 }
 0x211   :  { %4284 = vpow2.f32 %v4118_v13  ;;  %v762_v13 = vrot.slane %v5266_v7, 7 }
 0x212   :  { %4286 = vpow2.f32 %v4117_v50 }
 0x218   :  { %v4275_v2 = vpop.eup %4274 }
 0x219   :  { %v728_v62 = vadd.f32 1.0, %v4275_v2 }
 0x21a   :  { %v4277_v58 = vpop.eup %4276 }
 0x21b   :  { %v4279_v56 = vpop.eup %4278  ;;  %v727_v23 = vadd.f32 1.0, %v4277_v58  ;;  %4288 = vrcp.f32 %v728_v62 }
 0x21c   :  { %v740_v20 = vadd.f32 1.0, %v4279_v56  ;;  %v4281_v54 = vpop.eup %4280 }
 0x21d   :  { %4290 = vrcp.f32 %v727_v23  ;;  %v739_v15 = vadd.f32 1.0, %v4281_v54  ;;  %v4283_v60 = vpop.eup %4282 }
 0x21e   :  { %4292 = vrcp.f32 %v740_v20  ;;  %v4285_v1 = vpop.eup %4284 }
 0x21f   :  { %4294 = vtanh.f32 %v715_v42  ;;  %v4287_v3 = vpop.eup %4286  ;;  %v754_v58 = vadd.f32 1.0, %v4285_v1 }
 0x220   :  { %4296 = vrcp.f32 %v739_v15  ;;  %v753_v23 = vadd.f32 1.0, %v4287_v3 }
 0x221   :  { %4298 = vrcp.f32 %v754_v58 }
 0x228   :  { %v4289_v2 = vpop.eup %4288 }
 0x229   :  { %v768_v50 = vmul.f32 %v4289_v2, %v4283_v60 }
 0x22a   :  { %v4291_v46 = vpop.eup %4290 }
 0x22b   :  { %v4293_v52 = vpop.eup %4292 }
 0x22c   :  { %v4295_v44 = vpop.eup %4294  ;;  %v766_v62 = vmul.f32 %v4293_v52, %v762_v13 }
 0x22d   :  { %v4297_v56 = vpop.eup %4296  ;;  %v767_v54 = vmul.f32 %v4295_v44, %v4291_v46 }
 0x22e   :  { %v765_v20 = vmul.f32 %v4297_v56, %v761_v16  ;;  %v5347_v42 = vadd.f32 %v768_v50, %v766_v62  ;;  %v4299_v7 = vpop.eup %4298 }
 0x230   :  { %v5349_v15 = vadd.f32 %v767_v54, %v765_v20  ;;  %4300 = vtanh.f32 %v5347_v42  ;;  %v7258_v54 = vld [vmem:[#allocation45_spill] sm:$0xff] }
 0x231   :  { %4302 = vrcp.f32 %v753_v23 }
 0x232   :  { %4304 = vtanh.f32 %v5349_v15 }
 0x23d   :  { %v4301_v1 = vpop.eup %4300 }
 0x23e   :  { %v4303_v18 = vpop.eup %4302  ;;  %v774_v0 = vmul.f32 %v4301_v1, %v4299_v7  ;;  %v7259_v7 = vld [vmem:[#allocation43_spill] sm:$0xff] }
 0x23f   :  { %v4305_v60 = vpop.eup %4304 }
 0x240   :  { %v773_v52 = vmul.f32 %v4305_v60, %v4303_v18  ;;  %v777_v3 = vrot.slane %v774_v0, 7 }
 0x242   :  { %v779_v44 = vsel %vm778_vm2, %v777_v3, %v773_v52  ;;  %v782_v2 = vrot.slane %v773_v52, 1 }
 0x243   :  { %781 = vst [vmem:[#allocation2 + $0x1] sm:$0x6] %v779_v44 }
 0x244   :  { %v783_v46 = vsel %vm551_vm1, %v774_v0, %v782_v2  ;;  %v7260_v0 = vld [vmem:[#allocation42_spill] sm:$0xff] }
 0x245   :  { %850 = vmatmul.mubr.f32.vlgmr.msra.gmra.mxu0 %v783_v46  ;;  %921 = vmatmul.mubr.f32.vlgmr.msra.gmra.mxu1 %v783_v46 }
 0x246   :  { %1021 = vmatpush1.msra.mxu0 %v4928_v4  ;;  %1092 = vmatpush1.msra.mxu1 %v4994_v25  ;;  %v7231_v4 = vld [vmem:[#allocation15_spill] sm:$0xff]  ;;  %v7243_v25 = vld [vmem:[#allocation21_spill] sm:$0xff] }
 0x247   :  { %1022 = vmatprep.subr.mxu0 %v4933_v6  ;;  %1093 = vmatprep.subr.mxu1 %v5000_v27  ;;  %v7232_v6 = vld [vmem:[#allocation26_spill] sm:$0xff] }
 0x248   :  { %1023 = vmatpush1.msra.mxu0 %v4939_v8  ;;  %1094 = vmatpush1.msra.mxu1 %v5006_v29  ;;  %v7233_v8 = vld [vmem:[#allocation16_spill] sm:$0xff]  ;;  %v7245_v27 = vld [vmem:[#allocation22_spill] sm:$0xff]  ;;  %v7247_v29 = vld [vmem:[#allocation23_spill] sm:$0xff] }
 0x249   :  { %1024 = vmatprep.subr.mxu0 %v4945_v10  ;;  %1095 = vmatprep.subr.mxu1 %v5012_v31  ;;  %v7234_v10 = vld [vmem:[#allocation27_spill] sm:$0xff]  ;;  %v7249_v31 = vld [vmem:[#allocation24_spill] sm:$0xff] }
 0x24a   :  { %1025 = vmatpush1.msra.mxu0 %v4947_v11  ;;  %1096 = vmatpush1.msra.mxu1 %v5018_v33  ;;  %v7235_v11 = vld [vmem:[#allocation17_spill] sm:$0xff] }
 0x24b   :  { %1026 = vmatprep.subr.mxu0 %v4950_v12  ;;  %1097 = vmatprep.subr.mxu1 %v5024_v35  ;;  %v7236_v12 = vld [vmem:[#allocation28_spill] sm:$0xff]  ;;  %v7251_v33 = vld [vmem:[#allocation25_spill] sm:$0xff] }
 0x24c   :  { %1027 = vmatpush1.msra.mxu0 %v4957_v14  ;;  %1098 = vmatpush1.msra.mxu1 %v5030_v37  ;;  %v7237_v14 = vld [vmem:[#allocation18_spill] sm:$0xff]  ;;  %v7253_v35 = vld [vmem:[#allocation36_spill] sm:$0xff] }
 0x24d   :  { %1028 = vmatprep.subr.mxu0 %v4969_v17  ;;  %1099 = vmatprep.subr.mxu1 %v5036_v39  ;;  %v7238_v17 = vld [vmem:[#allocation29_spill] sm:$0xff]  ;;  %v7255_v37 = vld [vmem:[#allocation14_spill] sm:$0xff] }
 0x24e   :  { %1029 = vmatpush1.msra.mxu0 %v4975_v19  ;;  %1100 = vmatpush1.msra.mxu1 %v5042_v41  ;;  %v7239_v19 = vld [vmem:[#allocation19_spill] sm:$0xff] }
 0x24f   :  { %1030 = vmatprep.subr.mxu0 %v4981_v21  ;;  %1101 = vmatprep.subr.mxu1 %v5048_v43  ;;  %v7240_v21 = vld [vmem:[#allocation30_spill] sm:$0xff] }
 0x250   :  { %1031 = vmatpush1.msra.mxu0 %v4986_v22  ;;  %1102 = vmatpush1.msra.mxu1 %v5054_v45  ;;  %v7241_v22 = vld [vmem:[#allocation20_spill] sm:$0xff]  ;;  %v7256_v43 = vld [vmem:[#allocation38_spill] sm:$0xff] }
 0x251   :  { %1032 = vmatprep.subr.mxu0 %v4992_v24  ;;  %1103 = vmatprep.subr.mxu1 %v5060_v47  ;;  %v7242_v24 = vld [vmem:[#allocation31_spill] sm:$0xff]  ;;  %v7257_v47 = vld [vmem:[#allocation40_spill] sm:$0xff] }
 0x252   :  { %1033 = vmatpush1.msra.mxu0 %v4998_v26  ;;  %1104 = vmatpush1.msra.mxu1 %v5066_v49  ;;  %v7244_v26 = vld [vmem:[#allocation32_spill] sm:$0xff] }
 0x253   :  { %1034 = vmatprep.subr.mxu0 %v5004_v28  ;;  %1105 = vmatprep.subr.mxu1 %v5072_v51  ;;  %v7246_v28 = vld [vmem:[#allocation33_spill] sm:$0xff] }
 0x254   :  { %1035 = vmatpush1.msra.mxu0 %v5010_v30  ;;  %1106 = vmatpush1.msra.mxu1 %v5078_v53  ;;  %v7248_v30 = vld [vmem:[#allocation34_spill] sm:$0xff] }
 0x255   :  { %1036 = vmatprep.subr.mxu0 %v5016_v32  ;;  %1107 = vmatprep.subr.mxu1 %v5084_v55  ;;  %v7250_v32 = vld [vmem:[#allocation35_spill] sm:$0xff] }
 0x256   :  { %1037 = vmatpush1.msra.mxu0 %v5022_v34  ;;  %1108 = vmatpush1.msra.mxu1 %v5090_v57  ;;  %v7252_v34 = vmov 0.0  }
 0x257   :  { %1038 = vmatprep.subr.mxu0 %v5028_v36  ;;  %1109 = vmatprep.subr.mxu1 %v5096_v59  ;;  %v5418_v36 = vld [vmem:[#allocation3 + $0x1e8] sm:$0xff] }
 0x258   :  { %1039 = vmatpush1.msra.mxu0 %v5034_v38  ;;  %1110 = vmatpush1.msra.mxu1 %v5102_v61  ;;  %7254 = vst [vmem:[#allocation13_spill] sm:$0xff] %v5418_v36 }
 0x259   :  { %1040 = vmatprep.subr.mxu0 %v5040_v40  ;;  %1111 = vmatprep.subr.mxu1 %v5108_v63 }
 0x25a   :  { %1041 = vmatpush1.msra.mxu0 %v7231_v4  ;;  %1112 = vmatpush1.msra.mxu1 %v7232_v6 }
 0x25b   :  { %1042 = vmatprep.subr.mxu0 %v7233_v8  ;;  %1113 = vmatprep.subr.mxu1 %v7234_v10 }
 0x25c   :  { %1043 = vmatpush1.msra.mxu0 %v7235_v11  ;;  %1114 = vmatpush1.msra.mxu1 %v7236_v12 }
 0x25d   :  { %1044 = vmatprep.subr.mxu0 %v7237_v14  ;;  %1115 = vmatprep.subr.mxu1 %v7238_v17 }
 0x25e   :  { %1045 = vmatpush1.msra.mxu0 %v7239_v19  ;;  %1116 = vmatpush1.msra.mxu1 %v7240_v21 }
 0x25f   :  { %1046 = vmatprep.subr.mxu0 %v7241_v22  ;;  %1117 = vmatprep.subr.mxu1 %v7242_v24  ;;  %v995_v24 = vrot.slane %v5349_v15, 7 }
 0x260   :  { %1047 = vmatpush1.msra.mxu0 %v7243_v25  ;;  %1118 = vmatpush1.msra.mxu1 %v7244_v26 }
 0x261   :  { %1048 = vmatprep.subr.mxu0 %v7245_v27  ;;  %1119 = vmatprep.subr.mxu1 %v7246_v28  ;;  %v996_v27 = vrot.slane %v5347_v42, 7 }
 0x262   :  { %1049 = vmatpush1.msra.mxu0 %v7247_v29  ;;  %1120 = vmatpush1.msra.mxu1 %v7248_v30 }
 0x263   :  { %1050 = vmatprep.subr.mxu0 %v7249_v31  ;;  %1121 = vmatprep.subr.mxu1 %v7250_v32 }
 0x264   :  { %1051 = vmatpush1.msra.mxu0 %v7251_v33  ;;  %1084 = vmatprep.mubr.f32.mxu0 %v7252_v34 }
 0x265   :  { %1122 = vmatpush1.msra.mxu1 %v7253_v35  ;;  %1155 = vmatprep.mubr.f32.mxu1 %v7252_v34 }
 0x266   :  { %1255 = vmatprep.subr.mxu0 %v5418_v36  ;;  %1326 = vmatprep.subr.mxu1 %v7255_v37 }
 0x305   :  { %v851_v38 = vpop.f32.mrf.mxu0  ;;  %v922_v51 = vpop.f32.mrf.mxu1 }
 0x306   :  { %v931_v39 = vrot.slane %v851_v38, 6  ;;  %v935_v40 = vrot.slane %v851_v38, 7  ;;  %v933_v62 = vrot.slane %v922_v51, 6  ;;  %v937_v56 = vrot.slane %v922_v51, 7 }
 0x307   :  { %v853_v41 = vpop.f32.mrf.mxu0  ;;  %v924_v18 = vpop.f32.mrf.mxu1 }
 0x308   :  { %v947_v45 = vadd.f32 %v931_v39, %v7256_v43  ;;  %v951_v49 = vadd.f32 %v935_v40, %v7257_v47  ;;  %v932_v53 = vrot.slane %v853_v41, 6  ;;  %v936_v55 = vrot.slane %v853_v41, 7 }
 0x309   :  { %v934_v16 = vrot.slane %v924_v18, 6  ;;  %v938_v50 = vrot.slane %v924_v18, 7  ;;  %v949_v1 = vadd.f32 %v933_v62, %v7259_v7  ;;  %v953_v60 = vadd.f32 %v937_v56, %v7260_v0  ;;  %v5451_v18 = vld [vmem:[#allocation3 + $0x1c0] sm:$0xff]  ;;  %v5466_v62 = vld [vmem:[#allocation3 + $0x1b0] sm:$0xff]  ;;  %v5469_v56 = vld [vmem:[#allocation3 + $0x188] sm:$0xff] }
 0x30a   :  { %v4119_v57 = vmul.f32 -1.442695, %v947_v45  ;;  %v4120_v59 = vmul.f32 -1.442695, %v951_v49  ;;  %v948_v61 = vadd.f32 %v932_v53, %v7227_v48  ;;  %v952_v63 = vadd.f32 %v936_v55, %v5241_v5 }
 0x30b   :  { %v950_v23 = vadd.f32 %v934_v16, %v7228_v9  ;;  %v954_v20 = vadd.f32 %v938_v50, %v7258_v54  ;;  %v5460_v16 = vld [vmem:[#allocation3 + $0x1b8] sm:$0xff]  ;;  %v5463_v50 = vld [vmem:[#allocation3 + $0x1a0] sm:$0xff] }
 0x30c   :  { %4306 = vpow2.f32 %v4119_v57  ;;  %v4121_v13 = vmul.f32 -1.442695, %v948_v61  ;;  %v4122_v58 = vmul.f32 -1.442695, %v952_v63  ;;  %v5439_v57 = vld [vmem:[#allocation3 + $0x1e0] sm:$0xff]  ;;  %v5445_v61 = vld [vmem:[#allocation3 + $0x1c8] sm:$0xff] }
 0x30d   :  { %4308 = vpow2.f32 %v4120_v59  ;;  %v4123_v52 = vmul.f32 -1.442695, %v950_v23  ;;  %v4124_v3 = vmul.f32 -1.442695, %v954_v20  ;;  %v5442_v59 = vld [vmem:[#allocation3 + $0x1f0] sm:$0xff]  ;;  %v5448_v63 = vld [vmem:[#allocation3 + $0x1d8] sm:$0xff] }
 0x30e   :  { %4310 = vpow2.f32 %v4121_v13  ;;  %v5454_v13 = vld [vmem:[#allocation3 + $0x1d0] sm:$0xff]  ;;  %v5472_v23 = vld [vmem:[#allocation3 + $0x198] sm:$0xff]  ;;  %v5475_v20 = vld [vmem:[#allocation3 + $0x180] sm:$0xff] }
 0x30f   :  { %4312 = vpow2.f32 %v4122_v58  ;;  %v5457_v58 = vld [vmem:[#allocation3 + $0x1a8] sm:$0xff] }
 0x310   :  { %4314 = vtanh.f32 %v949_v1  ;;  %v5478_v1 = vld [vmem:[#allocation3 + $0x190] sm:$0xff] }
 0x311   :  { %4316 = vtanh.f32 %v953_v60  ;;  %v5481_v60 = vld [vmem:[#allocation3 + $0x168] sm:$0xff] }
 0x312   :  { %4318 = vpow2.f32 %v4123_v52  ;;  %v5484_v52 = vld [vmem:[#allocation3 + $0x178] sm:$0xff] }
 0x313   :  { %4320 = vpow2.f32 %v4124_v3  ;;  %v5487_v3 = vld [vmem:[#allocation3 + $0x160] sm:$0xff] }
 0x319   :  { %v4307_v44 = vpop.eup %4306 }
 0x31a   :  { %v4309_v2 = vpop.eup %4308  ;;  %v961_v46 = vadd.f32 1.0, %v4307_v44  ;;  %v5490_v44 = vld [vmem:[#allocation3 + $0x170] sm:$0xff] }
 0x31b   :  { %v962_v4 = vadd.f32 1.0, %v4309_v2  ;;  %v4311_v6 = vpop.eup %4310  ;;  %v5493_v2 = vld [vmem:[#allocation3 + $0x148] sm:$0xff] }
 0x31c   :  { %v4313_v8 = vpop.eup %4312  ;;  %4322 = vrcp.f32 %v961_v46  ;;  %v973_v10 = vadd.f32 1.0, %v4311_v6  ;;  %v5496_v46 = vld [vmem:[#allocation3 + $0x158] sm:$0xff]  ;;  %v5502_v6 = vld [vmem:[#allocation3 + $0x150] sm:$0xff] }
 0x31d   :  { %4324 = vrcp.f32 %v962_v4  ;;  %v974_v11 = vadd.f32 1.0, %v4313_v8  ;;  %v4315_v12 = vpop.eup %4314  ;;  %v5499_v4 = vld [vmem:[#allocation3 + $0x140] sm:$0xff]  ;;  %v5505_v8 = vld [vmem:[#allocation3 + $0x128] sm:$0xff] }
 0x31e   :  { %4326 = vrcp.f32 %v973_v10  ;;  %v4317_v14 = vpop.eup %4316  ;;  %v5508_v10 = vld [vmem:[#allocation3 + $0x138] sm:$0xff] }
 0x31f   :  { %4328 = vrcp.f32 %v974_v11  ;;  %v4319_v17 = vpop.eup %4318  ;;  %v5511_v11 = vld [vmem:[#allocation3 + $0x120] sm:$0xff] }
 0x320   :  { %v4321_v19 = vpop.eup %4320  ;;  %v987_v25 = vadd.f32 1.0, %v4319_v17  ;;  %v5520_v17 = vld [vmem:[#allocation3 + $0x118] sm:$0xff] }
 0x321   :  { %v988_v28 = vadd.f32 1.0, %v4321_v19  ;;  %v5523_v19 = vld [vmem:[#allocation3 + $0x100] sm:$0xff] }
 0x322   :  { %4330 = vrcp.f32 %v987_v25  ;;  %v5535_v25 = vld [vmem:[#allocation3 + $0xe0] sm:$0xff] }
 0x323   :  { %4332 = vrcp.f32 %v988_v28  ;;  %v5544_v28 = vld [vmem:[#allocation3 + $0xd8] sm:$0xff] }
 0x329   :  { %v4323_v21 = vpop.eup %4322 }
 0x32a   :  { %v4325_v22 = vpop.eup %4324  ;;  %v1001_v30 = vmul.f32 %v4323_v21, %v4315_v12  ;;  %v5514_v12 = vld [vmem:[#allocation3 + $0x130] sm:$0xff] }
 0x32b   :  { %v4327_v26 = vpop.eup %4326  ;;  %v1002_v32 = vmul.f32 %v4325_v22, %v4317_v14  ;;  %v5517_v14 = vld [vmem:[#allocation3 + $0x108] sm:$0xff]  ;;  %v5526_v21 = vld [vmem:[#allocation3 + $0x110] sm:$0xff] }
 0x32c   :  { %v4329_v29 = vpop.eup %4328  ;;  %v999_v31 = vmul.f32 %v4327_v26, %v995_v24  ;;  %v5529_v22 = vld [vmem:[#allocation3 + $0xe8] sm:$0xff]  ;;  %v5532_v24 = vld [vmem:[#allocation3 + $0xf8] sm:$0xff]  ;;  %v5538_v26 = vld [vmem:[#allocation3 + $0xf0] sm:$0xff] }
 0x32d   :  { %v1000_v33 = vmul.f32 %v4329_v29, %v996_v27  ;;  %v5541_v27 = vld [vmem:[#allocation3 + $0xc8] sm:$0xff]  ;;  %v5547_v29 = vld [vmem:[#allocation3 + $0xc0] sm:$0xff] }
 0x32e   :  { %v5432_v35 = vadd.f32 %v1001_v30, %v999_v31  ;;  %v5550_v30 = vld [vmem:[#allocation3 + $0xd0] sm:$0xff]  ;;  %v5553_v31 = vld [vmem:[#allocation3 + $0xa8] sm:$0xff] }
 0x32f   :  { %v5434_v37 = vadd.f32 %v1002_v32, %v1000_v33  ;;  %v4331_v15 = vpop.eup %4330  ;;  %7261 = vst [vmem:[#allocation44_spill] sm:$0xff] %v5553_v31  ;;  %v5556_v32 = vld [vmem:[#allocation3 + $0xb8] sm:$0xff]  ;;  %v5559_v33 = vld [vmem:[#allocation3 + $0xa0] sm:$0xff] }
 0x330   :  { %4334 = vtanh.f32 %v5432_v35  ;;  %v4333_v38 = vpop.eup %4332  ;;  %7262 = vst [vmem:[#allocation15_spill] sm:$0xff] %v5556_v32  ;;  %7263 = vst [vmem:[#allocation26_spill] sm:$0xff] %v5559_v33 }
 0x331   :  { %4336 = vtanh.f32 %v5434_v37 }
 0x33d   :  { %v4335_v39 = vpop.eup %4334 }
 0x33e   :  { %v4337_v42 = vpop.eup %4336  ;;  %v1007_v40 = vmul.f32 %v4335_v39, %v4331_v15  ;;  %v5562_v15 = vld [vmem:[#allocation3 + $0xb0] sm:$0xff]  ;;  %v5568_v39 = vld [vmem:[#allocation3 + $0x98] sm:$0xff] }
 0x33f   :  { %v1008_v41 = vmul.f32 %v4337_v42, %v4333_v38  ;;  %7264 = vst [vmem:[#allocation16_spill] sm:$0xff] %v5562_v15  ;;  %v5565_v38 = vld [vmem:[#allocation3 + $0x88] sm:$0xff]  ;;  %7266 = vst [vmem:[#allocation17_spill] sm:$0xff] %v5568_v39  ;;  %v5571_v42 = vld [vmem:[#allocation3 + $0x80] sm:$0xff] }
 0x340   :  { %v1016_v45 = vrot.slane %v1007_v40, 2  ;;  %7265 = vst [vmem:[#allocation27_spill] sm:$0xff] %v5565_v38  ;;  %7267 = vst [vmem:[#allocation28_spill] sm:$0xff] %v5571_v42 }
 0x341   :  { %v1011_v49 = vrot.slane %v1008_v41, 7  ;;  %v1017_v51 = vrot.slane %v1008_v41, 1  ;;  %v5577_v41 = vld [vmem:[#allocation3 + $0x68] sm:$0xff] }
 0x342   :  { %7269 = vst [vmem:[#allocation29_spill] sm:$0xff] %v5577_v41 }
 0x343   :  { %v1013_v53 = vsel %vm1012_vm3, %v1011_v49, %v1007_v40  ;;  %v1018_v55 = vsel %vm551_vm1, %v1017_v51, %v1016_v45  ;;  %v5574_v40 = vld [vmem:[#allocation3 + $0x90] sm:$0xff]  ;;  %v5580_v45 = vld [vmem:[#allocation3 + $0x78] sm:$0xff]  ;;  %v5583_v49 = vld [vmem:[#allocation3 + $0x60] sm:$0xff] }
 0x344   :  { %1015 = vst [vmem:[#allocation2 + $0x2] sm:$0xc] %v1013_v53  ;;  %1085 = vmatmul.mubr.f32.vlgmr.msra.gmra.mxu0 %v1018_v55  ;;  %1156 = vmatmul.mubr.f32.vlgmr.msra.gmra.mxu1 %v1018_v55  ;;  %7268 = vst [vmem:[#allocation18_spill] sm:$0xff] %v5574_v40  ;;  %v5586_v51 = vld [vmem:[#allocation3 + $0x70] sm:$0xff]  ;;  %v5589_v53 = vld [vmem:[#allocation3 + $0x48] sm:$0xff] }
 0x345   :  { %1256 = vmatpush1.msra.mxu0 %v5439_v57  ;;  %1327 = vmatpush1.msra.mxu1 %v5442_v59  ;;  %7270 = vst [vmem:[#allocation19_spill] sm:$0xff] %v5580_v45  ;;  %7271 = vst [vmem:[#allocation30_spill] sm:$0xff] %v5583_v49  ;;  %v5592_v55 = vld [vmem:[#allocation3 + $0x58] sm:$0xff] }
 0x346   :  { %1257 = vmatprep.subr.mxu0 %v5445_v61  ;;  %1328 = vmatprep.subr.mxu1 %v5448_v63  ;;  %7272 = vst [vmem:[#allocation20_spill] sm:$0xff] %v5586_v51  ;;  %7273 = vst [vmem:[#allocation31_spill] sm:$0xff] %v5589_v53 }
 0x347   :  { %1258 = vmatpush1.msra.mxu0 %v5451_v18  ;;  %1329 = vmatpush1.msra.mxu1 %v5454_v13  ;;  %7274 = vst [vmem:[#allocation21_spill] sm:$0xff] %v5592_v55 }
 0x348   :  { %1259 = vmatprep.subr.mxu0 %v5457_v58  ;;  %1330 = vmatprep.subr.mxu1 %v5460_v16 }
 0x349   :  { %1260 = vmatpush1.msra.mxu0 %v5463_v50  ;;  %1331 = vmatpush1.msra.mxu1 %v5466_v62 }
 0x34a   :  { %1261 = vmatprep.subr.mxu0 %v5469_v56  ;;  %1332 = vmatprep.subr.mxu1 %v5472_v23 }
 0x34b   :  { %1262 = vmatpush1.msra.mxu0 %v5475_v20  ;;  %1333 = vmatpush1.msra.mxu1 %v5478_v1 }
 0x34c   :  { %1263 = vmatprep.subr.mxu0 %v5481_v60  ;;  %1334 = vmatprep.subr.mxu1 %v5484_v52 }
 0x34d   :  { %1264 = vmatpush1.msra.mxu0 %v5487_v3  ;;  %1335 = vmatpush1.msra.mxu1 %v5490_v44 }
 0x34e   :  { %1265 = vmatprep.subr.mxu0 %v5493_v2  ;;  %1336 = vmatprep.subr.mxu1 %v5496_v46 }
 0x34f   :  { %1266 = vmatpush1.msra.mxu0 %v5499_v4  ;;  %1337 = vmatpush1.msra.mxu1 %v5502_v6 }
 0x350   :  { %1267 = vmatprep.subr.mxu0 %v5505_v8  ;;  %1338 = vmatprep.subr.mxu1 %v5508_v10 }
 0x351   :  { %1268 = vmatpush1.msra.mxu0 %v5511_v11  ;;  %1339 = vmatpush1.msra.mxu1 %v5514_v12 }
 0x352   :  { %1269 = vmatprep.subr.mxu0 %v5517_v14  ;;  %1340 = vmatprep.subr.mxu1 %v5520_v17 }
 0x353   :  { %1270 = vmatpush1.msra.mxu0 %v5523_v19  ;;  %1341 = vmatpush1.msra.mxu1 %v5526_v21 }
 0x354   :  { %1271 = vmatprep.subr.mxu0 %v5529_v22  ;;  %1342 = vmatprep.subr.mxu1 %v5532_v24 }
 0x355   :  { %1272 = vmatpush1.msra.mxu0 %v5535_v25  ;;  %1343 = vmatpush1.msra.mxu1 %v5538_v26 }
 0x356   :  { %1273 = vmatprep.subr.mxu0 %v5541_v27  ;;  %1344 = vmatprep.subr.mxu1 %v5544_v28 }
 0x357   :  { %1274 = vmatpush1.msra.mxu0 %v5547_v29  ;;  %1345 = vmatpush1.msra.mxu1 %v5550_v30 }
 0x358   :  { %1275 = vmatprep.subr.mxu0 %v5553_v31  ;;  %1346 = vmatprep.subr.mxu1 %v5556_v32 }
 0x359   :  { %1276 = vmatpush1.msra.mxu0 %v5559_v33  ;;  %1347 = vmatpush1.msra.mxu1 %v5562_v15 }
 0x35a   :  { %1277 = vmatprep.subr.mxu0 %v5565_v38  ;;  %1348 = vmatprep.subr.mxu1 %v5568_v39 }
 0x35b   :  { %1278 = vmatpush1.msra.mxu0 %v5571_v42  ;;  %1349 = vmatpush1.msra.mxu1 %v5574_v40 }
 0x35c   :  { %1279 = vmatprep.subr.mxu0 %v5577_v41  ;;  %1350 = vmatprep.subr.mxu1 %v5580_v45  ;;  %v5595_v41 = vld [vmem:[#allocation3 + $0x40] sm:$0xff]  ;;  %v5598_v45 = vld [vmem:[#allocation3 + $0x50] sm:$0xff] }
 0x35d   :  { %1280 = vmatpush1.msra.mxu0 %v5583_v49  ;;  %1351 = vmatpush1.msra.mxu1 %v5586_v51  ;;  %7275 = vst [vmem:[#allocation32_spill] sm:$0xff] %v5595_v41  ;;  %7276 = vst [vmem:[#allocation22_spill] sm:$0xff] %v5598_v45  ;;  %v5601_v49 = vld [vmem:[#allocation3 + $0x28] sm:$0xff]  ;;  %v5604_v51 = vld [vmem:[#allocation3 + $0x38] sm:$0xff] }
 0x35e   :  { %1281 = vmatprep.subr.mxu0 %v5589_v53  ;;  %1352 = vmatprep.subr.mxu1 %v5592_v55  ;;  %7277 = vst [vmem:[#allocation33_spill] sm:$0xff] %v5601_v49  ;;  %7278 = vst [vmem:[#allocation23_spill] sm:$0xff] %v5604_v51  ;;  %v5607_v53 = vld [vmem:[#allocation3 + $0x20] sm:$0xff]  ;;  %v5610_v55 = vld [vmem:[#allocation3 + $0x30] sm:$0xff] }
 0x35f   :  { %1282 = vmatpush1.msra.mxu0 %v5595_v41  ;;  %1353 = vmatpush1.msra.mxu1 %v5598_v45  ;;  %7279 = vst [vmem:[#allocation34_spill] sm:$0xff] %v5607_v53  ;;  %7280 = vst [vmem:[#allocation24_spill] sm:$0xff] %v5610_v55  ;;  %v5613_v41 = vld [vmem:[#allocation3 + $0x8] sm:$0xff]  ;;  %v5616_v45 = vld [vmem:[#allocation3 + $0x18] sm:$0xff] }
 0x360   :  { %1283 = vmatprep.subr.mxu0 %v5601_v49  ;;  %1354 = vmatprep.subr.mxu1 %v5604_v51  ;;  %7281 = vst [vmem:[#allocation35_spill] sm:$0xff] %v5613_v41  ;;  %7282 = vst [vmem:[#allocation25_spill] sm:$0xff] %v5616_v45  ;;  %v5619_v49 = vld [vmem:[#allocation3] sm:$0xff]  ;;  %v5623_v51 = vld [vmem:[#allocation3 + $0x10] sm:$0xff] }
 0x361   :  { %1284 = vmatpush1.msra.mxu0 %v5607_v53  ;;  %1355 = vmatpush1.msra.mxu1 %v5610_v55  ;;  %7283 = vst [vmem:[#allocation36_spill] sm:$0xff] %v5619_v49  ;;  %7284 = vst [vmem:[#allocation14_spill] sm:$0xff] %v5623_v51  ;;  %v5628_v55 = vld [vmem:[#allocation3 + $0x1f8] sm:$0xff] }
 0x362   :  { %1285 = vmatprep.subr.mxu0 %v5613_v41  ;;  %1356 = vmatprep.subr.mxu1 %v5616_v45  ;;  %7285 = vst [vmem:[#allocation45_spill] sm:$0xff] %v5628_v55 }
 0x363   :  { %1286 = vmatpush1.msra.mxu0 %v5619_v49  ;;  %1319 = vmatprep.mubr.f32.mxu0 %v7252_v34 }
 0x364   :  { %1357 = vmatpush1.msra.mxu1 %v5623_v51  ;;  %1390 = vmatprep.mubr.f32.mxu1 %v7252_v34 }
 0x365   :  { %1490 = vmatprep.subr.mxu0 %v5418_v36  ;;  %1561 = vmatprep.subr.mxu1 %v5628_v55 }
 0x404   :  { %v1086_v41 = vpop.f32.mrf.mxu0  ;;  %v1157_v39 = vpop.f32.mrf.mxu1 }
 0x405   :  { %v1166_v45 = vrot.slane %v1086_v41, 5  ;;  %v1170_v53 = vrot.slane %v1086_v41, 6 }
 0x406   :  { %v1088_v40 = vpop.f32.mrf.mxu0  ;;  %v1159_v32 = vpop.f32.mrf.mxu1 }
 0x407   :  { %v1182_v49 = vadd.f32 %v1166_v45, %v7256_v43  ;;  %v1186_v42 = vadd.f32 %v1170_v53, %v7257_v47  ;;  %v1167_v38 = vrot.slane %v1088_v40, 5  ;;  %v1171_v15 = vrot.slane %v1088_v40, 6 }
 0x408   :  { %v1169_v41 = vrot.slane %v1159_v32, 5  ;;  %v1173_v45 = vrot.slane %v1159_v32, 6  ;;  %v1168_v43 = vrot.slane %v1157_v39, 5  ;;  %v1172_v53 = vrot.slane %v1157_v39, 6 }
 0x409   :  { %v4125_v51 = vmul.f32 -1.442695, %v1182_v49  ;;  %v4126_v33 = vmul.f32 -1.442695, %v1186_v42  ;;  %v1183_v34 = vadd.f32 %v1167_v38, %v7227_v48  ;;  %v1187_v36 = vadd.f32 %v1171_v15, %v5241_v5 }
 0x40a   :  { %v1185_v47 = vadd.f32 %v1169_v41, %v7228_v9  ;;  %v1189_v40 = vadd.f32 %v1173_v45, %v7258_v54  ;;  %v1184_v42 = vadd.f32 %v1168_v43, %v7259_v7  ;;  %v1188_v38 = vadd.f32 %v1172_v53, %v7260_v0 }
 0x40b   :  { %4338 = vpow2.f32 %v4125_v51  ;;  %v4127_v55 = vmul.f32 -1.442695, %v1183_v34  ;;  %v4128_v31 = vmul.f32 -1.442695, %v1187_v36 }
 0x40c   :  { %4340 = vpow2.f32 %v4126_v33  ;;  %v4129_v15 = vmul.f32 -1.442695, %v1185_v47  ;;  %v4130_v49 = vmul.f32 -1.442695, %v1189_v40 }
 0x40d   :  { %4342 = vpow2.f32 %v4127_v55 }
 0x40e   :  { %4344 = vpow2.f32 %v4128_v31 }
 0x40f   :  { %4346 = vtanh.f32 %v1184_v42  ;;  %v1230_v42 = vrot.slane %v5432_v35, 7 }
 0x410   :  { %4348 = vtanh.f32 %v1188_v38 }
 0x411   :  { %4350 = vpow2.f32 %v4129_v15  ;;  %v1231_v15 = vrot.slane %v5434_v37, 7 }
 0x412   :  { %4352 = vpow2.f32 %v4130_v49 }
 0x418   :  { %v4339_v51 = vpop.eup %4338 }
 0x419   :  { %v4341_v34 = vpop.eup %4340  ;;  %v1196_v36 = vadd.f32 1.0, %v4339_v51 }
 0x41a   :  { %v1197_v33 = vadd.f32 1.0, %v4341_v34  ;;  %v4343_v31 = vpop.eup %4342 }
 0x41b   :  { %v4345_v32 = vpop.eup %4344  ;;  %4354 = vrcp.f32 %v1196_v36  ;;  %v1208_v39 = vadd.f32 1.0, %v4343_v31 }
 0x41c   :  { %4356 = vrcp.f32 %v1197_v33  ;;  %v1209_v55 = vadd.f32 1.0, %v4345_v32  ;;  %v4347_v43 = vpop.eup %4346 }
 0x41d   :  { %4358 = vrcp.f32 %v1208_v39  ;;  %v4349_v41 = vpop.eup %4348 }
 0x41e   :  { %4360 = vrcp.f32 %v1209_v55  ;;  %v4351_v47 = vpop.eup %4350 }
 0x41f   :  { %v4353_v45 = vpop.eup %4352  ;;  %v1222_v38 = vadd.f32 1.0, %v4351_v47 }
 0x420   :  { %v1223_v49 = vadd.f32 1.0, %v4353_v45 }
 0x421   :  { %4362 = vrcp.f32 %v1222_v38  ;;  %v7288_v38 = vld [vmem:[#allocation26_spill] sm:$0xff] }
 0x422   :  { %4364 = vrcp.f32 %v1223_v49  ;;  %v7291_v49 = vld [vmem:[#allocation17_spill] sm:$0xff] }
 0x428   :  { %v4355_v53 = vpop.eup %4354 }
 0x429   :  { %v4357_v40 = vpop.eup %4356  ;;  %v1236_v36 = vmul.f32 %v4355_v53, %v4347_v43 }
 0x42a   :  { %v4359_v51 = vpop.eup %4358  ;;  %v1237_v33 = vmul.f32 %v4357_v40, %v4349_v41 }
 0x42b   :  { %v4361_v34 = vpop.eup %4360  ;;  %v1234_v31 = vmul.f32 %v4359_v51, %v1230_v42  ;;  %v7289_v51 = vld [vmem:[#allocation16_spill] sm:$0xff] }
 0x42c   :  { %v1235_v32 = vmul.f32 %v4361_v34, %v1231_v15  ;;  %v7290_v15 = vld [vmem:[#allocation27_spill] sm:$0xff]  ;;  %v7292_v34 = vld [vmem:[#allocation28_spill] sm:$0xff] }
 0x42d   :  { %v5641_v39 = vadd.f32 %v1236_v36, %v1234_v31  ;;  %v7293_v36 = vld [vmem:[#allocation18_spill] sm:$0xff]  ;;  %v7294_v31 = vld [vmem:[#allocation29_spill] sm:$0xff] }
 0x42e   :  { %v5643_v55 = vadd.f32 %v1237_v33, %v1235_v32  ;;  %v4363_v35 = vpop.eup %4362  ;;  %v7295_v33 = vld [vmem:[#allocation19_spill] sm:$0xff]  ;;  %v7296_v32 = vld [vmem:[#allocation30_spill] sm:$0xff] }
 0x42f   :  { %4366 = vtanh.f32 %v5641_v39  ;;  %v4365_v47 = vpop.eup %4364 }
 0x430   :  { %4368 = vtanh.f32 %v5643_v55 }
 0x43c   :  { %v4367_v0 = vpop.eup %4366 }
 0x43d   :  { %v4369_v37 = vpop.eup %4368  ;;  %v1242_v45 = vmul.f32 %v4367_v0, %v4363_v35  ;;  %v7287_v0 = vld [vmem:[#allocation15_spill] sm:$0xff]  ;;  %v7297_v35 = vld [vmem:[#allocation20_spill] sm:$0xff] }
 0x43e   :  { %v1243_v7 = vmul.f32 %v4369_v37, %v4365_v47  ;;  %v7298_v47 = vld [vmem:[#allocation31_spill] sm:$0xff]  ;;  %v7299_v37 = vld [vmem:[#allocation21_spill] sm:$0xff] }
 0x43f   :  { %v1251_v43 = vrot.slane %v1242_v45, 3 }
 0x440   :  { %v1246_v41 = vrot.slane %v1243_v7, 7  ;;  %v1252_v53 = vrot.slane %v1243_v7, 2  ;;  %v7286_v7 = vld [vmem:[#allocation44_spill] sm:$0xff] }
 0x442   :  { %v1248_v40 = vsel %vm1247_vm4, %v1246_v41, %v1242_v45  ;;  %v1253_v42 = vsel %vm551_vm1, %v1252_v53, %v1251_v43  ;;  %v7300_v45 = vld [vmem:[#allocation32_spill] sm:$0xff]  ;;  %v7301_v43 = vld [vmem:[#allocation22_spill] sm:$0xff]  ;;  %v7302_v41 = vld [vmem:[#allocation33_spill] sm:$0xff] }
 0x443   :  { %1250 = vst [vmem:[#allocation2 + $0x3] sm:$0x18] %v1248_v40  ;;  %1320 = vmatmul.mubr.f32.vlgmr.msra.gmra.mxu0 %v1253_v42  ;;  %1391 = vmatmul.mubr.f32.vlgmr.msra.gmra.mxu1 %v1253_v42  ;;  %v7303_v53 = vld [vmem:[#allocation23_spill] sm:$0xff]  ;;  %v7304_v40 = vld [vmem:[#allocation34_spill] sm:$0xff]  ;;  %v7305_v42 = vld [vmem:[#allocation24_spill] sm:$0xff] }
 0x444   :  { %1491 = vmatpush1.msra.mxu0 %v5439_v57  ;;  %1562 = vmatpush1.msra.mxu1 %v5442_v59 }
 0x445   :  { %1492 = vmatprep.subr.mxu0 %v5445_v61  ;;  %1563 = vmatprep.subr.mxu1 %v5448_v63 }
 0x446   :  { %1493 = vmatpush1.msra.mxu0 %v5451_v18  ;;  %1564 = vmatpush1.msra.mxu1 %v5454_v13 }
 0x447   :  { %1494 = vmatprep.subr.mxu0 %v5457_v58  ;;  %1565 = vmatprep.subr.mxu1 %v5460_v16 }
 0x448   :  { %1495 = vmatpush1.msra.mxu0 %v5463_v50  ;;  %1566 = vmatpush1.msra.mxu1 %v5466_v62 }
 0x449   :  { %1496 = vmatprep.subr.mxu0 %v5469_v56  ;;  %1567 = vmatprep.subr.mxu1 %v5472_v23 }
 0x44a   :  { %1497 = vmatpush1.msra.mxu0 %v5475_v20  ;;  %1568 = vmatpush1.msra.mxu1 %v5478_v1 }
 0x44b   :  { %1498 = vmatprep.subr.mxu0 %v5481_v60  ;;  %1569 = vmatprep.subr.mxu1 %v5484_v52 }
 0x44c   :  { %1499 = vmatpush1.msra.mxu0 %v5487_v3  ;;  %1570 = vmatpush1.msra.mxu1 %v5490_v44 }
 0x44d   :  { %1500 = vmatprep.subr.mxu0 %v5493_v2  ;;  %1571 = vmatprep.subr.mxu1 %v5496_v46 }
 0x44e   :  { %1501 = vmatpush1.msra.mxu0 %v5499_v4  ;;  %1572 = vmatpush1.msra.mxu1 %v5502_v6 }
 0x44f   :  { %1502 = vmatprep.subr.mxu0 %v5505_v8  ;;  %1573 = vmatprep.subr.mxu1 %v5508_v10 }
 0x450   :  { %1503 = vmatpush1.msra.mxu0 %v5511_v11  ;;  %1574 = vmatpush1.msra.mxu1 %v5514_v12 }
 0x451   :  { %1504 = vmatprep.subr.mxu0 %v5517_v14  ;;  %1575 = vmatprep.subr.mxu1 %v5520_v17 }
 0x452   :  { %1505 = vmatpush1.msra.mxu0 %v5523_v19  ;;  %1576 = vmatpush1.msra.mxu1 %v5526_v21 }
 0x453   :  { %1506 = vmatprep.subr.mxu0 %v5529_v22  ;;  %1577 = vmatprep.subr.mxu1 %v5532_v24 }
 0x454   :  { %1507 = vmatpush1.msra.mxu0 %v5535_v25  ;;  %1578 = vmatpush1.msra.mxu1 %v5538_v26 }
 0x455   :  { %1508 = vmatprep.subr.mxu0 %v5541_v27  ;;  %1579 = vmatprep.subr.mxu1 %v5544_v28 }
 0x456   :  { %1509 = vmatpush1.msra.mxu0 %v5547_v29  ;;  %1580 = vmatpush1.msra.mxu1 %v5550_v30 }
 0x457   :  { %1510 = vmatprep.subr.mxu0 %v7286_v7  ;;  %1581 = vmatprep.subr.mxu1 %v7287_v0 }
 0x458   :  { %1511 = vmatpush1.msra.mxu0 %v7288_v38  ;;  %1582 = vmatpush1.msra.mxu1 %v7289_v51 }
 0x459   :  { %1512 = vmatprep.subr.mxu0 %v7290_v15  ;;  %1583 = vmatprep.subr.mxu1 %v7291_v49 }
 0x45a   :  { %1513 = vmatpush1.msra.mxu0 %v7292_v34  ;;  %1584 = vmatpush1.msra.mxu1 %v7293_v36  ;;  %v7314_v36 = vld [vmem:[#allocation40_spill] sm:$0xff] }
 0x45b   :  { %1514 = vmatprep.subr.mxu0 %v7294_v31  ;;  %1585 = vmatprep.subr.mxu1 %v7295_v33  ;;  %v7306_v33 = vld [vmem:[#allocation35_spill] sm:$0xff]  ;;  %v7313_v31 = vld [vmem:[#allocation38_spill] sm:$0xff] }
 0x45c   :  { %1515 = vmatpush1.msra.mxu0 %v7296_v32  ;;  %1586 = vmatpush1.msra.mxu1 %v7297_v35  ;;  %v7307_v32 = vld [vmem:[#allocation25_spill] sm:$0xff]  ;;  %v7308_v35 = vld [vmem:[#allocation36_spill] sm:$0xff] }
 0x45d   :  { %1516 = vmatprep.subr.mxu0 %v7298_v47  ;;  %1587 = vmatprep.subr.mxu1 %v7299_v37  ;;  %v7309_v47 = vmov 0.0   ;;  %v7310_v37 = vld [vmem:[#allocation14_spill] sm:$0xff] }
 0x45e   :  { %1517 = vmatpush1.msra.mxu0 %v7300_v45  ;;  %1588 = vmatpush1.msra.mxu1 %v7301_v43  ;;  %v7311_v43 = vld [vmem:[#allocation13_spill] sm:$0xff] }
 0x45f   :  { %1518 = vmatprep.subr.mxu0 %v7302_v41  ;;  %1589 = vmatprep.subr.mxu1 %v7303_v53  ;;  %v7312_v41 = vld [vmem:[#allocation45_spill] sm:$0xff] }
 0x460   :  { %1519 = vmatpush1.msra.mxu0 %v7304_v40  ;;  %1590 = vmatpush1.msra.mxu1 %v7305_v42 }
 0x461   :  { %1520 = vmatprep.subr.mxu0 %v7306_v33  ;;  %1591 = vmatprep.subr.mxu1 %v7307_v32 }
 0x462   :  { %1521 = vmatpush1.msra.mxu0 %v7308_v35  ;;  %1554 = vmatprep.mubr.f32.mxu0 %v7309_v47 }
 0x463   :  { %1592 = vmatpush1.msra.mxu1 %v7310_v37  ;;  %1625 = vmatprep.mubr.f32.mxu1 %v7309_v47 }
 0x464   :  { %1725 = vmatprep.subr.mxu0 %v7311_v43  ;;  %1796 = vmatprep.subr.mxu1 %v7312_v41 }
 0x503   :  { %v1321_v53 = vpop.f32.mrf.mxu0  ;;  %v1392_v34 = vpop.f32.mrf.mxu1 }
 0x504   :  { %v1401_v40 = vrot.slane %v1321_v53, 4  ;;  %v1405_v45 = vrot.slane %v1321_v53, 5 }
 0x505   :  { %v1323_v42 = vpop.f32.mrf.mxu0  ;;  %v1394_v43 = vpop.f32.mrf.mxu1 }
 0x506   :  { %v1417_v33 = vadd.f32 %v1401_v40, %v7313_v31  ;;  %v1421_v32 = vadd.f32 %v1405_v45, %v7314_v36  ;;  %v1402_v35 = vrot.slane %v1323_v42, 4  ;;  %v1406_v49 = vrot.slane %v1323_v42, 5 }
 0x507   :  { %v1404_v53 = vrot.slane %v1394_v43, 4  ;;  %v1408_v40 = vrot.slane %v1394_v43, 5  ;;  %v1403_v31 = vrot.slane %v1392_v34, 4  ;;  %v1407_v45 = vrot.slane %v1392_v34, 5 }
 0x508   :  { %v4131_v15 = vmul.f32 -1.442695, %v1417_v33  ;;  %v4132_v51 = vmul.f32 -1.442695, %v1421_v32  ;;  %v1418_v37 = vadd.f32 %v1402_v35, %v7227_v48  ;;  %v1422_v47 = vadd.f32 %v1406_v49, %v5241_v5  ;;  %v7315_v32 = vld [vmem:[#allocation43_spill] sm:$0xff]  ;;  %v7316_v35 = vld [vmem:[#allocation42_spill] sm:$0xff] }
 0x509   :  { %v1420_v36 = vadd.f32 %v1404_v53, %v7228_v9  ;;  %v1424_v33 = vadd.f32 %v1408_v40, %v7258_v54  ;;  %v1419_v42 = vadd.f32 %v1403_v31, %v7315_v32  ;;  %v1423_v48 = vadd.f32 %v1407_v45, %v7316_v35 }
 0x50a   :  { %4370 = vpow2.f32 %v4131_v15  ;;  %v4133_v41 = vmul.f32 -1.442695, %v1418_v37  ;;  %v4134_v38 = vmul.f32 -1.442695, %v1422_v47 }
 0x50b   :  { %4372 = vpow2.f32 %v4132_v51  ;;  %v4135_v49 = vmul.f32 -1.442695, %v1420_v36  ;;  %v4136_v15 = vmul.f32 -1.442695, %v1424_v33 }
 0x50c   :  { %4374 = vpow2.f32 %v4133_v41 }
 0x50d   :  { %4376 = vpow2.f32 %v4134_v38 }
 0x50e   :  { %4378 = vtanh.f32 %v1419_v42 }
 0x50f   :  { %4380 = vtanh.f32 %v1423_v48 }
 0x510   :  { %4382 = vpow2.f32 %v4135_v49  ;;  %v1466_v49 = vrot.slane %v5643_v55, 7 }
 0x511   :  { %4384 = vpow2.f32 %v4136_v15 }
 0x517   :  { %v4371_v5 = vpop.eup %4370 }
 0x518   :  { %v4373_v51 = vpop.eup %4372  ;;  %v1431_v47 = vadd.f32 1.0, %v4371_v5  ;;  %v1465_v5 = vrot.slane %v5641_v39, 7 }
 0x519   :  { %v1432_v37 = vadd.f32 1.0, %v4373_v51  ;;  %v4375_v38 = vpop.eup %4374 }
 0x51a   :  { %v4377_v34 = vpop.eup %4376  ;;  %4386 = vrcp.f32 %v1431_v47  ;;  %v1443_v43 = vadd.f32 1.0, %v4375_v38 }
 0x51b   :  { %4388 = vrcp.f32 %v1432_v37  ;;  %v1444_v41 = vadd.f32 1.0, %v4377_v34  ;;  %v4379_v31 = vpop.eup %4378 }
 0x51c   :  { %4390 = vrcp.f32 %v1443_v43  ;;  %v4381_v53 = vpop.eup %4380 }
 0x51d   :  { %4392 = vrcp.f32 %v1444_v41  ;;  %v4383_v36 = vpop.eup %4382 }
 0x51e   :  { %v4385_v40 = vpop.eup %4384  ;;  %v1457_v48 = vadd.f32 1.0, %v4383_v36 }
 0x51f   :  { %v1458_v15 = vadd.f32 1.0, %v4385_v40 }
 0x520   :  { %4394 = vrcp.f32 %v1457_v48  ;;  %v7319_v48 = vld [vmem:[#allocation27_spill] sm:$0xff] }
 0x521   :  { %4396 = vrcp.f32 %v1458_v15  ;;  %v7322_v15 = vld [vmem:[#allocation18_spill] sm:$0xff] }
 0x527   :  { %v4387_v45 = vpop.eup %4386 }
 0x528   :  { %v4389_v33 = vpop.eup %4388  ;;  %v1471_v47 = vmul.f32 %v4387_v45, %v4379_v31 }
 0x529   :  { %v4391_v42 = vpop.eup %4390  ;;  %v1472_v37 = vmul.f32 %v4389_v33, %v4381_v53 }
 0x52a   :  { %v4393_v51 = vpop.eup %4392  ;;  %v1469_v38 = vmul.f32 %v4391_v42, %v1465_v5  ;;  %v7320_v42 = vld [vmem:[#allocation17_spill] sm:$0xff] }
 0x52b   :  { %v1470_v34 = vmul.f32 %v4393_v51, %v1466_v49  ;;  %v7321_v49 = vld [vmem:[#allocation28_spill] sm:$0xff]  ;;  %v7323_v51 = vld [vmem:[#allocation29_spill] sm:$0xff] }
 0x52c   :  { %v5724_v43 = vadd.f32 %v1471_v47, %v1469_v38  ;;  %v7324_v47 = vld [vmem:[#allocation19_spill] sm:$0xff]  ;;  %v7325_v38 = vld [vmem:[#allocation30_spill] sm:$0xff] }
 0x52d   :  { %v5726_v41 = vadd.f32 %v1472_v37, %v1470_v34  ;;  %v4395_v39 = vpop.eup %4394  ;;  %v7326_v37 = vld [vmem:[#allocation20_spill] sm:$0xff]  ;;  %v7327_v34 = vld [vmem:[#allocation31_spill] sm:$0xff] }
 0x52e   :  { %4398 = vtanh.f32 %v5724_v43  ;;  %v4397_v36 = vpop.eup %4396 }
 0x52f   :  { %4400 = vtanh.f32 %v5726_v41 }
 0x53b   :  { %v4399_v35 = vpop.eup %4398 }
 0x53c   :  { %v4401_v55 = vpop.eup %4400  ;;  %v1477_v40 = vmul.f32 %v4399_v35, %v4395_v39  ;;  %v7318_v35 = vld [vmem:[#allocation16_spill] sm:$0xff]  ;;  %v7328_v39 = vld [vmem:[#allocation21_spill] sm:$0xff] }
 0x53d   :  { %v1478_v32 = vmul.f32 %v4401_v55, %v4397_v36  ;;  %v7329_v36 = vld [vmem:[#allocation32_spill] sm:$0xff]  ;;  %v7330_v55 = vld [vmem:[#allocation22_spill] sm:$0xff] }
 0x53e   :  { %v1486_v31 = vrot.slane %v1477_v40, 4 }
 0x53f   :  { %v1481_v53 = vrot.slane %v1478_v32, 7  ;;  %v1487_v45 = vrot.slane %v1478_v32, 3  ;;  %v7317_v32 = vld [vmem:[#allocation26_spill] sm:$0xff] }
 0x541   :  { %v1483_v33 = vsel %vm1482_vm5, %v1481_v53, %v1477_v40  ;;  %v1488_v5 = vsel %vm551_vm1, %v1487_v45, %v1486_v31  ;;  %v7331_v40 = vld [vmem:[#allocation33_spill] sm:$0xff]  ;;  %v7332_v31 = vld [vmem:[#allocation23_spill] sm:$0xff]  ;;  %v7333_v53 = vld [vmem:[#allocation34_spill] sm:$0xff] }
 0x542   :  { %1485 = vst [vmem:[#allocation2 + $0x4] sm:$0x30] %v1483_v33  ;;  %1555 = vmatmul.mubr.f32.vlgmr.msra.gmra.mxu0 %v1488_v5  ;;  %1626 = vmatmul.mubr.f32.vlgmr.msra.gmra.mxu1 %v1488_v5  ;;  %v7334_v45 = vld [vmem:[#allocation24_spill] sm:$0xff]  ;;  %v7335_v33 = vld [vmem:[#allocation35_spill] sm:$0xff]  ;;  %v7336_v5 = vld [vmem:[#allocation25_spill] sm:$0xff] }
 0x543   :  { %1726 = vmatpush1.msra.mxu0 %v5439_v57  ;;  %1797 = vmatpush1.msra.mxu1 %v5442_v59 }
 0x544   :  { %1727 = vmatprep.subr.mxu0 %v5445_v61  ;;  %1798 = vmatprep.subr.mxu1 %v5448_v63 }
 0x545   :  { %1728 = vmatpush1.msra.mxu0 %v5451_v18  ;;  %1799 = vmatpush1.msra.mxu1 %v5454_v13 }
 0x546   :  { %1729 = vmatprep.subr.mxu0 %v5457_v58  ;;  %1800 = vmatprep.subr.mxu1 %v5460_v16 }
 0x547   :  { %1730 = vmatpush1.msra.mxu0 %v5463_v50  ;;  %1801 = vmatpush1.msra.mxu1 %v5466_v62 }
 0x548   :  { %1731 = vmatprep.subr.mxu0 %v5469_v56  ;;  %1802 = vmatprep.subr.mxu1 %v5472_v23 }
 0x549   :  { %1732 = vmatpush1.msra.mxu0 %v5475_v20  ;;  %1803 = vmatpush1.msra.mxu1 %v5478_v1 }
 0x54a   :  { %1733 = vmatprep.subr.mxu0 %v5481_v60  ;;  %1804 = vmatprep.subr.mxu1 %v5484_v52 }
 0x54b   :  { %1734 = vmatpush1.msra.mxu0 %v5487_v3  ;;  %1805 = vmatpush1.msra.mxu1 %v5490_v44 }
 0x54c   :  { %1735 = vmatprep.subr.mxu0 %v5493_v2  ;;  %1806 = vmatprep.subr.mxu1 %v5496_v46 }
 0x54d   :  { %1736 = vmatpush1.msra.mxu0 %v5499_v4  ;;  %1807 = vmatpush1.msra.mxu1 %v5502_v6 }
 0x54e   :  { %1737 = vmatprep.subr.mxu0 %v5505_v8  ;;  %1808 = vmatprep.subr.mxu1 %v5508_v10 }
 0x54f   :  { %1738 = vmatpush1.msra.mxu0 %v5511_v11  ;;  %1809 = vmatpush1.msra.mxu1 %v5514_v12 }
 0x550   :  { %1739 = vmatprep.subr.mxu0 %v5517_v14  ;;  %1810 = vmatprep.subr.mxu1 %v5520_v17 }
 0x551   :  { %1740 = vmatpush1.msra.mxu0 %v5523_v19  ;;  %1811 = vmatpush1.msra.mxu1 %v5526_v21 }
 0x552   :  { %1741 = vmatprep.subr.mxu0 %v5529_v22  ;;  %1812 = vmatprep.subr.mxu1 %v5532_v24 }
 0x553   :  { %1742 = vmatpush1.msra.mxu0 %v5535_v25  ;;  %1813 = vmatpush1.msra.mxu1 %v5538_v26 }
 0x554   :  { %1743 = vmatprep.subr.mxu0 %v5541_v27  ;;  %1814 = vmatprep.subr.mxu1 %v5544_v28 }
 0x555   :  { %1744 = vmatpush1.msra.mxu0 %v5547_v29  ;;  %1815 = vmatpush1.msra.mxu1 %v5550_v30 }
 0x556   :  { %1745 = vmatprep.subr.mxu0 %v7286_v7  ;;  %1816 = vmatprep.subr.mxu1 %v7287_v0 }
 0x557   :  { %1746 = vmatpush1.msra.mxu0 %v7317_v32  ;;  %1817 = vmatpush1.msra.mxu1 %v7318_v35 }
 0x558   :  { %1747 = vmatprep.subr.mxu0 %v7319_v48  ;;  %1818 = vmatprep.subr.mxu1 %v7320_v42 }
 0x559   :  { %1748 = vmatpush1.msra.mxu0 %v7321_v49  ;;  %1819 = vmatpush1.msra.mxu1 %v7322_v15 }
 0x55a   :  { %1749 = vmatprep.subr.mxu0 %v7323_v51  ;;  %1820 = vmatprep.subr.mxu1 %v7324_v47  ;;  %v7343_v47 = vld [vmem:[#allocation40_spill] sm:$0xff] }
 0x55b   :  { %1750 = vmatpush1.msra.mxu0 %v7325_v38  ;;  %1821 = vmatpush1.msra.mxu1 %v7326_v37  ;;  %v7337_v37 = vld [vmem:[#allocation36_spill] sm:$0xff]  ;;  %v7342_v38 = vld [vmem:[#allocation38_spill] sm:$0xff] }
 0x55c   :  { %1751 = vmatprep.subr.mxu0 %v7327_v34  ;;  %1822 = vmatprep.subr.mxu1 %v7328_v39  ;;  %v7338_v34 = vmov 0.0   ;;  %v7339_v39 = vld [vmem:[#allocation14_spill] sm:$0xff] }
 0x55d   :  { %1752 = vmatpush1.msra.mxu0 %v7329_v36  ;;  %1823 = vmatpush1.msra.mxu1 %v7330_v55  ;;  %v7340_v55 = vld [vmem:[#allocation13_spill] sm:$0xff] }
 0x55e   :  { %1753 = vmatprep.subr.mxu0 %v7331_v40  ;;  %1824 = vmatprep.subr.mxu1 %v7332_v31  ;;  %v7341_v40 = vld [vmem:[#allocation45_spill] sm:$0xff] }
 0x55f   :  { %1754 = vmatpush1.msra.mxu0 %v7333_v53  ;;  %1825 = vmatpush1.msra.mxu1 %v7334_v45 }
 0x560   :  { %1755 = vmatprep.subr.mxu0 %v7335_v33  ;;  %1826 = vmatprep.subr.mxu1 %v7336_v5 }
 0x561   :  { %1756 = vmatpush1.msra.mxu0 %v7337_v37  ;;  %1789 = vmatprep.mubr.f32.mxu0 %v7338_v34 }
 0x562   :  { %1827 = vmatpush1.msra.mxu1 %v7339_v39  ;;  %1860 = vmatprep.mubr.f32.mxu1 %v7338_v34  ;;  %v7344_v39 = vld [vmem:[#allocation39_spill] sm:$0xff]  ;;  %v7345_v34 = vld [vmem:[#allocation41_spill] sm:$0xff] }
 0x563   :  { %1960 = vmatprep.subr.mxu0 %v7340_v55  ;;  %2031 = vmatprep.subr.mxu1 %v7341_v40 }
 0x602   :  { %v1556_v31 = vpop.f32.mrf.mxu0  ;;  %v1627_v51 = vpop.f32.mrf.mxu1 }
 0x603   :  { %v1636_v53 = vrot.slane %v1556_v31, 3  ;;  %v1640_v36 = vrot.slane %v1556_v31, 4 }
 0x604   :  { %v1558_v45 = vpop.f32.mrf.mxu0  ;;  %v1629_v55 = vpop.f32.mrf.mxu1 }
 0x605   :  { %v1652_v33 = vadd.f32 %v1636_v53, %v7342_v38  ;;  %v1656_v5 = vadd.f32 %v1640_v36, %v7343_v47  ;;  %v1637_v37 = vrot.slane %v1558_v45, 3  ;;  %v1641_v15 = vrot.slane %v1558_v45, 4 }
 0x606   :  { %v1639_v31 = vrot.slane %v1629_v55, 3  ;;  %v1643_v53 = vrot.slane %v1629_v55, 4  ;;  %v1638_v38 = vrot.slane %v1627_v51, 3  ;;  %v1642_v36 = vrot.slane %v1627_v51, 4 }
 0x607   :  { %v4137_v49 = vmul.f32 -1.442695, %v1652_v33  ;;  %v4138_v42 = vmul.f32 -1.442695, %v1656_v5  ;;  %v1653_v48 = vadd.f32 %v1637_v37, %v7344_v39  ;;  %v1657_v35 = vadd.f32 %v1641_v15, %v7345_v34  ;;  %v7346_v33 = vld [vmem:[#allocation43_spill] sm:$0xff]  ;;  %v7347_v37 = vld [vmem:[#allocation42_spill] sm:$0xff] }
 0x608   :  { %v1655_v47 = vadd.f32 %v1639_v31, %v7228_v9  ;;  %v1659_v45 = vadd.f32 %v1643_v53, %v7258_v54  ;;  %v1654_v5 = vadd.f32 %v1638_v38, %v7346_v33  ;;  %v1658_v39 = vadd.f32 %v1642_v36, %v7347_v37 }
 0x609   :  { %4402 = vpow2.f32 %v4137_v49  ;;  %v4139_v40 = vmul.f32 -1.442695, %v1653_v48  ;;  %v4140_v32 = vmul.f32 -1.442695, %v1657_v35 }
 0x60a   :  { %4404 = vpow2.f32 %v4138_v42  ;;  %v4141_v15 = vmul.f32 -1.442695, %v1655_v47  ;;  %v4142_v49 = vmul.f32 -1.442695, %v1659_v45 }
 0x60b   :  { %4406 = vpow2.f32 %v4139_v40 }
 0x60c   :  { %4408 = vpow2.f32 %v4140_v32 }
 0x60d   :  { %4410 = vtanh.f32 %v1654_v5 }
 0x60e   :  { %4412 = vtanh.f32 %v1658_v39 }
 0x60f   :  { %4414 = vpow2.f32 %v4141_v15  ;;  %v1701_v15 = vrot.slane %v5726_v41, 7 }
 0x610   :  { %4416 = vpow2.f32 %v4142_v49 }
 0x616   :  { %v4403_v34 = vpop.eup %4402 }
 0x617   :  { %v4405_v48 = vpop.eup %4404  ;;  %v1666_v35 = vadd.f32 1.0, %v4403_v34  ;;  %v1700_v34 = vrot.slane %v5724_v43, 7 }
 0x618   :  { %v1667_v42 = vadd.f32 1.0, %v4405_v48  ;;  %v4407_v32 = vpop.eup %4406 }
 0x619   :  { %v4409_v51 = vpop.eup %4408  ;;  %4418 = vrcp.f32 %v1666_v35  ;;  %v1678_v55 = vadd.f32 1.0, %v4407_v32 }
 0x61a   :  { %4420 = vrcp.f32 %v1667_v42  ;;  %v1679_v40 = vadd.f32 1.0, %v4409_v51  ;;  %v4411_v38 = vpop.eup %4410 }
 0x61b   :  { %4422 = vrcp.f32 %v1678_v55  ;;  %v4413_v31 = vpop.eup %4412 }
 0x61c   :  { %4424 = vrcp.f32 %v1679_v40  ;;  %v4415_v47 = vpop.eup %4414 }
 0x61d   :  { %v4417_v53 = vpop.eup %4416  ;;  %v1692_v39 = vadd.f32 1.0, %v4415_v47 }
 0x61e   :  { %v1693_v49 = vadd.f32 1.0, %v4417_v53 }
 0x61f   :  { %4426 = vrcp.f32 %v1692_v39 }
 0x620   :  { %4428 = vrcp.f32 %v1693_v49 }
 0x626   :  { %v4419_v36 = vpop.eup %4418 }
 0x627   :  { %v4421_v45 = vpop.eup %4420  ;;  %v1706_v35 = vmul.f32 %v4419_v36, %v4411_v38 }
 0x628   :  { %v4423_v5 = vpop.eup %4422  ;;  %v1707_v42 = vmul.f32 %v4421_v45, %v4413_v31 }
 0x629   :  { %v4425_v48 = vpop.eup %4424  ;;  %v1704_v32 = vmul.f32 %v4423_v5, %v1700_v34 }
 0x62a   :  { %v1705_v51 = vmul.f32 %v4425_v48, %v1701_v15 }
 0x62b   :  { %v5807_v55 = vadd.f32 %v1706_v35, %v1704_v32 }
 0x62c   :  { %v5809_v40 = vadd.f32 %v1707_v42, %v1705_v51  ;;  %v4427_v43 = vpop.eup %4426 }
 0x62d   :  { %4430 = vtanh.f32 %v5807_v55  ;;  %v4429_v47 = vpop.eup %4428 }
 0x62e   :  { %4432 = vtanh.f32 %v5809_v40 }
 0x63a   :  { %v4431_v37 = vpop.eup %4430 }
 0x63b   :  { %v4433_v41 = vpop.eup %4432  ;;  %v1712_v53 = vmul.f32 %v4431_v37, %v4427_v43  ;;  %v7375_v43 = vld [vmem:[#allocation43_spill] sm:$0xff] }
 0x63c   :  { %v1713_v33 = vmul.f32 %v4433_v41, %v4429_v47  ;;  %v7376_v41 = vld [vmem:[#allocation42_spill] sm:$0xff] }
 0x63d   :  { %v1721_v38 = vrot.slane %v1712_v53, 5 }
 0x63e   :  { %v1716_v31 = vrot.slane %v1713_v33, 7  ;;  %v1722_v36 = vrot.slane %v1713_v33, 4  ;;  %v7374_v33 = vld [vmem:[#allocation41_spill] sm:$0xff] }
 0x640   :  { %v1718_v45 = vsel %vm1717_vm6, %v1716_v31, %v1712_v53  ;;  %v1723_v34 = vsel %vm551_vm1, %v1722_v36, %v1721_v38 }
 0x641   :  { %1720 = vst [vmem:[#allocation2 + $0x5] sm:$0x60] %v1718_v45  ;;  %1790 = vmatmul.mubr.f32.vlgmr.msra.gmra.mxu0 %v1723_v34  ;;  %1861 = vmatmul.mubr.f32.vlgmr.msra.gmra.mxu1 %v1723_v34 }
 0x642   :  { %1961 = vmatpush1.msra.mxu0 %v5439_v57  ;;  %2032 = vmatpush1.msra.mxu1 %v5442_v59  ;;  %v7348_v57 = vld [vmem:[#allocation26_spill] sm:$0xff]  ;;  %v7349_v59 = vld [vmem:[#allocation16_spill] sm:$0xff] }
 0x643   :  { %1962 = vmatprep.subr.mxu0 %v5445_v61  ;;  %2033 = vmatprep.subr.mxu1 %v5448_v63  ;;  %v7350_v61 = vld [vmem:[#allocation27_spill] sm:$0xff]  ;;  %v7351_v63 = vld [vmem:[#allocation17_spill] sm:$0xff] }
 0x644   :  { %1963 = vmatpush1.msra.mxu0 %v5451_v18  ;;  %2034 = vmatpush1.msra.mxu1 %v5454_v13  ;;  %v7352_v18 = vld [vmem:[#allocation28_spill] sm:$0xff]  ;;  %v7353_v13 = vld [vmem:[#allocation18_spill] sm:$0xff] }
 0x645   :  { %1964 = vmatprep.subr.mxu0 %v5457_v58  ;;  %2035 = vmatprep.subr.mxu1 %v5460_v16  ;;  %v7354_v58 = vld [vmem:[#allocation29_spill] sm:$0xff]  ;;  %v7355_v16 = vld [vmem:[#allocation19_spill] sm:$0xff] }
 0x646   :  { %1965 = vmatpush1.msra.mxu0 %v5463_v50  ;;  %2036 = vmatpush1.msra.mxu1 %v5466_v62  ;;  %v7356_v50 = vld [vmem:[#allocation30_spill] sm:$0xff]  ;;  %v7357_v62 = vld [vmem:[#allocation20_spill] sm:$0xff] }
 0x647   :  { %1966 = vmatprep.subr.mxu0 %v5469_v56  ;;  %2037 = vmatprep.subr.mxu1 %v5472_v23  ;;  %v7358_v56 = vld [vmem:[#allocation31_spill] sm:$0xff]  ;;  %v7359_v23 = vld [vmem:[#allocation21_spill] sm:$0xff] }
 0x648   :  { %1967 = vmatpush1.msra.mxu0 %v5475_v20  ;;  %2038 = vmatpush1.msra.mxu1 %v5478_v1  ;;  %v7360_v20 = vld [vmem:[#allocation32_spill] sm:$0xff]  ;;  %v7361_v1 = vld [vmem:[#allocation22_spill] sm:$0xff] }
 0x649   :  { %1968 = vmatprep.subr.mxu0 %v5481_v60  ;;  %2039 = vmatprep.subr.mxu1 %v5484_v52  ;;  %v7362_v60 = vld [vmem:[#allocation33_spill] sm:$0xff]  ;;  %v7363_v52 = vld [vmem:[#allocation23_spill] sm:$0xff] }
 0x64a   :  { %1969 = vmatpush1.msra.mxu0 %v5487_v3  ;;  %2040 = vmatpush1.msra.mxu1 %v5490_v44  ;;  %v7364_v3 = vld [vmem:[#allocation34_spill] sm:$0xff]  ;;  %v7365_v44 = vld [vmem:[#allocation24_spill] sm:$0xff] }
 0x64b   :  { %1970 = vmatprep.subr.mxu0 %v5493_v2  ;;  %2041 = vmatprep.subr.mxu1 %v5496_v46  ;;  %v7366_v2 = vld [vmem:[#allocation35_spill] sm:$0xff]  ;;  %v7367_v46 = vld [vmem:[#allocation25_spill] sm:$0xff] }
 0x64c   :  { %1971 = vmatpush1.msra.mxu0 %v5499_v4  ;;  %2042 = vmatpush1.msra.mxu1 %v5502_v6  ;;  %v7368_v4 = vld [vmem:[#allocation36_spill] sm:$0xff]  ;;  %v7369_v6 = vld [vmem:[#allocation14_spill] sm:$0xff] }
 0x64d   :  { %1972 = vmatprep.subr.mxu0 %v5505_v8  ;;  %2043 = vmatprep.subr.mxu1 %v5508_v10  ;;  %v7370_v8 = vmov 0.0   ;;  %v2263_v10 = vld [vmem:[#allocation6 + $0x1e8] sm:$0xff] }
 0x64e   :  { %1973 = vmatpush1.msra.mxu0 %v5511_v11  ;;  %2044 = vmatpush1.msra.mxu1 %v5514_v12  ;;  %v2265_v11 = vld [vmem:[#allocation6 + $0x1f8] sm:$0xff] }
 0x64f   :  { %1974 = vmatprep.subr.mxu0 %v5517_v14  ;;  %2045 = vmatprep.subr.mxu1 %v5520_v17 }
 0x650   :  { %1975 = vmatpush1.msra.mxu0 %v5523_v19  ;;  %2046 = vmatpush1.msra.mxu1 %v5526_v21  ;;  %v7371_v21 = vld [vmem:[#allocation38_spill] sm:$0xff] }
 0x651   :  { %1976 = vmatprep.subr.mxu0 %v5529_v22  ;;  %2047 = vmatprep.subr.mxu1 %v5532_v24  ;;  %v7372_v24 = vld [vmem:[#allocation40_spill] sm:$0xff] }
 0x652   :  { %1977 = vmatpush1.msra.mxu0 %v5535_v25  ;;  %2048 = vmatpush1.msra.mxu1 %v5538_v26 }
 0x653   :  { %1978 = vmatprep.subr.mxu0 %v5541_v27  ;;  %2049 = vmatprep.subr.mxu1 %v5544_v28 }
 0x654   :  { %1979 = vmatpush1.msra.mxu0 %v5547_v29  ;;  %2050 = vmatpush1.msra.mxu1 %v5550_v30 }
 0x655   :  { %1980 = vmatprep.subr.mxu0 %v7286_v7  ;;  %2051 = vmatprep.subr.mxu1 %v7287_v0  ;;  %v7373_v7 = vld [vmem:[#allocation39_spill] sm:$0xff] }
 0x656   :  { %1981 = vmatpush1.msra.mxu0 %v7348_v57  ;;  %2052 = vmatpush1.msra.mxu1 %v7349_v59 }
 0x657   :  { %1982 = vmatprep.subr.mxu0 %v7350_v61  ;;  %2053 = vmatprep.subr.mxu1 %v7351_v63 }
 0x658   :  { %1983 = vmatpush1.msra.mxu0 %v7352_v18  ;;  %2054 = vmatpush1.msra.mxu1 %v7353_v13 }
 0x659   :  { %1984 = vmatprep.subr.mxu0 %v7354_v58  ;;  %2055 = vmatprep.subr.mxu1 %v7355_v16 }
 0x65a   :  { %1985 = vmatpush1.msra.mxu0 %v7356_v50  ;;  %2056 = vmatpush1.msra.mxu1 %v7357_v62 }
 0x65b   :  { %1986 = vmatprep.subr.mxu0 %v7358_v56  ;;  %2057 = vmatprep.subr.mxu1 %v7359_v23  ;;  %v1935_v23 = vrot.slane %v5807_v55, 7 }
 0x65c   :  { %1987 = vmatpush1.msra.mxu0 %v7360_v20  ;;  %2058 = vmatpush1.msra.mxu1 %v7361_v1 }
 0x65d   :  { %1988 = vmatprep.subr.mxu0 %v7362_v60  ;;  %2059 = vmatprep.subr.mxu1 %v7363_v52  ;;  %v1936_v60 = vrot.slane %v5809_v40, 7 }
 0x65e   :  { %1989 = vmatpush1.msra.mxu0 %v7364_v3  ;;  %2060 = vmatpush1.msra.mxu1 %v7365_v44 }
 0x65f   :  { %1990 = vmatprep.subr.mxu0 %v7366_v2  ;;  %2061 = vmatprep.subr.mxu1 %v7367_v46 }
 0x660   :  { %1991 = vmatpush1.msra.mxu0 %v7368_v4  ;;  %2062 = vmatpush1.msra.mxu1 %v7369_v6 }
 0x661   :  { %2024 = vmatprep.mubr.f32.mxu0 %v7370_v8  ;;  %2095 = vmatprep.mubr.f32.mxu1 %v7370_v8 }
 0x662   :  { %2354 = vmatprep.subr.mxu0 %v2263_v10  ;;  %2431 = vmatprep.subr.mxu1 %v2265_v11 }
 0x701   :  { %v1791_v12 = vpop.f32.mrf.mxu0  ;;  %v1862_v26 = vpop.f32.mrf.mxu1 }
 0x702   :  { %v1871_v14 = vrot.slane %v1791_v12, 2  ;;  %v1875_v17 = vrot.slane %v1791_v12, 3  ;;  %v1873_v35 = vrot.slane %v1862_v26, 2  ;;  %v1877_v32 = vrot.slane %v1862_v26, 3  ;;  %v2262_v26 = vld [vmem:[#allocation6 + $0x1e0] sm:$0xff] }
 0x703   :  { %v1793_v19 = vpop.f32.mrf.mxu0  ;;  %v1864_v39 = vpop.f32.mrf.mxu1 }
 0x704   :  { %v1887_v22 = vadd.f32 %v1871_v14, %v7371_v21  ;;  %v1891_v25 = vadd.f32 %v1875_v17, %v7372_v24  ;;  %v1872_v27 = vrot.slane %v1793_v19, 2  ;;  %v1876_v28 = vrot.slane %v1793_v19, 3 }
 0x705   :  { %v1874_v49 = vrot.slane %v1864_v39, 2  ;;  %v1878_v48 = vrot.slane %v1864_v39, 3  ;;  %v1889_v47 = vadd.f32 %v1873_v35, %v7375_v43  ;;  %v1893_v53 = vadd.f32 %v1877_v32, %v7376_v41  ;;  %v2260_v39 = vld [vmem:[#allocation6 + $0x1d0] sm:$0xff]  ;;  %v2251_v35 = vld [vmem:[#allocation6 + $0x188] sm:$0xff]  ;;  %v2253_v32 = vld [vmem:[#allocation6 + $0x198] sm:$0xff] }
 0x706   :  { %v4143_v29 = vmul.f32 -1.442695, %v1887_v22  ;;  %v4144_v30 = vmul.f32 -1.442695, %v1891_v25  ;;  %v1888_v0 = vadd.f32 %v1872_v27, %v7373_v7  ;;  %v1892_v37 = vadd.f32 %v1876_v28, %v7374_v33  ;;  %v2264_v27 = vld [vmem:[#allocation6 + $0x1f0] sm:$0xff] }
 0x707   :  { %v1890_v42 = vadd.f32 %v1874_v49, %v7228_v9  ;;  %v1894_v51 = vadd.f32 %v1878_v48, %v7258_v54  ;;  %v2254_v49 = vld [vmem:[#allocation6 + $0x1a0] sm:$0xff]  ;;  %v2256_v48 = vld [vmem:[#allocation6 + $0x1b0] sm:$0xff] }
 0x708   :  { %4434 = vpow2.f32 %v4143_v29  ;;  %v4145_v5 = vmul.f32 -1.442695, %v1888_v0  ;;  %v4146_v15 = vmul.f32 -1.442695, %v1892_v37  ;;  %v2261_v0 = vld [vmem:[#allocation6 + $0x1d8] sm:$0xff]  ;;  %v2258_v37 = vld [vmem:[#allocation6 + $0x1c0] sm:$0xff] }
 0x709   :  { %4436 = vpow2.f32 %v4144_v30  ;;  %v4147_v38 = vmul.f32 -1.442695, %v1890_v42  ;;  %v4148_v31 = vmul.f32 -1.442695, %v1894_v51  ;;  %v2259_v30 = vld [vmem:[#allocation6 + $0x1c8] sm:$0xff]  ;;  %v2250_v42 = vld [vmem:[#allocation6 + $0x180] sm:$0xff] }
 0x70a   :  { %4438 = vpow2.f32 %v4145_v5  ;;  %v2255_v5 = vld [vmem:[#allocation6 + $0x1a8] sm:$0xff]  ;;  %v2252_v51 = vld [vmem:[#allocation6 + $0x190] sm:$0xff] }
 0x70b   :  { %4440 = vpow2.f32 %v4146_v15  ;;  %v2257_v15 = vld [vmem:[#allocation6 + $0x1b8] sm:$0xff] }
 0x70c   :  { %4442 = vtanh.f32 %v1889_v47  ;;  %v2247_v47 = vld [vmem:[#allocation6 + $0x168] sm:$0xff] }
 0x70d   :  { %4444 = vtanh.f32 %v1893_v53  ;;  %v2249_v53 = vld [vmem:[#allocation6 + $0x178] sm:$0xff] }
 0x70e   :  { %4446 = vpow2.f32 %v4147_v38  ;;  %v2246_v38 = vld [vmem:[#allocation6 + $0x160] sm:$0xff] }
 0x70f   :  { %4448 = vpow2.f32 %v4148_v31  ;;  %v2248_v31 = vld [vmem:[#allocation6 + $0x170] sm:$0xff] }
 0x715   :  { %v4435_v36 = vpop.eup %4434 }
 0x716   :  { %v4437_v45 = vpop.eup %4436  ;;  %v1901_v34 = vadd.f32 1.0, %v4435_v36  ;;  %v2243_v36 = vld [vmem:[#allocation6 + $0x148] sm:$0xff] }
 0x717   :  { %v1902_v57 = vadd.f32 1.0, %v4437_v45  ;;  %v4439_v59 = vpop.eup %4438  ;;  %v2245_v45 = vld [vmem:[#allocation6 + $0x158] sm:$0xff] }
 0x718   :  { %v4441_v61 = vpop.eup %4440  ;;  %4450 = vrcp.f32 %v1901_v34  ;;  %v1913_v63 = vadd.f32 1.0, %v4439_v59  ;;  %v2242_v34 = vld [vmem:[#allocation6 + $0x140] sm:$0xff]  ;;  %v2239_v59 = vld [vmem:[#allocation6 + $0x128] sm:$0xff] }
 0x719   :  { %4452 = vrcp.f32 %v1902_v57  ;;  %v1914_v18 = vadd.f32 1.0, %v4441_v61  ;;  %v4443_v13 = vpop.eup %4442  ;;  %v2244_v57 = vld [vmem:[#allocation6 + $0x150] sm:$0xff]  ;;  %v2241_v61 = vld [vmem:[#allocation6 + $0x138] sm:$0xff] }
 0x71a   :  { %4454 = vrcp.f32 %v1913_v63  ;;  %v4445_v58 = vpop.eup %4444  ;;  %v2238_v63 = vld [vmem:[#allocation6 + $0x120] sm:$0xff] }
 0x71b   :  { %4456 = vrcp.f32 %v1914_v18  ;;  %v4447_v16 = vpop.eup %4446  ;;  %v2240_v18 = vld [vmem:[#allocation6 + $0x130] sm:$0xff] }
 0x71c   :  { %v4449_v50 = vpop.eup %4448  ;;  %v1927_v20 = vadd.f32 1.0, %v4447_v16  ;;  %v2234_v16 = vld [vmem:[#allocation6 + $0x100] sm:$0xff] }
 0x71d   :  { %v1928_v52 = vadd.f32 1.0, %v4449_v50  ;;  %v2236_v50 = vld [vmem:[#allocation6 + $0x110] sm:$0xff] }
 0x71e   :  { %4458 = vrcp.f32 %v1927_v20  ;;  %v2232_v20 = vld [vmem:[#allocation6 + $0xf0] sm:$0xff] }
 0x71f   :  { %4460 = vrcp.f32 %v1928_v52  ;;  %v2226_v52 = vld [vmem:[#allocation6 + $0xc0] sm:$0xff] }
 0x725   :  { %v4451_v62 = vpop.eup %4450 }
 0x726   :  { %v4453_v56 = vpop.eup %4452  ;;  %v1941_v44 = vmul.f32 %v4451_v62, %v4443_v13  ;;  %v2235_v13 = vld [vmem:[#allocation6 + $0x108] sm:$0xff] }
 0x727   :  { %v4455_v1 = vpop.eup %4454  ;;  %v1942_v46 = vmul.f32 %v4453_v56, %v4445_v58  ;;  %v2237_v58 = vld [vmem:[#allocation6 + $0x118] sm:$0xff]  ;;  %v2231_v62 = vld [vmem:[#allocation6 + $0xe8] sm:$0xff] }
 0x728   :  { %v4457_v3 = vpop.eup %4456  ;;  %v1939_v2 = vmul.f32 %v4455_v1, %v1935_v23  ;;  %v2233_v56 = vld [vmem:[#allocation6 + $0xf8] sm:$0xff]  ;;  %v2230_v23 = vld [vmem:[#allocation6 + $0xe0] sm:$0xff]  ;;  %v2227_v1 = vld [vmem:[#allocation6 + $0xc8] sm:$0xff] }
 0x729   :  { %v1940_v4 = vmul.f32 %v4457_v3, %v1936_v60  ;;  %v2229_v60 = vld [vmem:[#allocation6 + $0xd8] sm:$0xff]  ;;  %v2228_v3 = vld [vmem:[#allocation6 + $0xd0] sm:$0xff] }
 0x72a   :  { %v5888_v6 = vadd.f32 %v1941_v44, %v1939_v2  ;;  %v2223_v44 = vld [vmem:[#allocation6 + $0xa8] sm:$0xff]  ;;  %v2225_v2 = vld [vmem:[#allocation6 + $0xb8] sm:$0xff] }
 0x72b   :  { %v5890_v10 = vadd.f32 %v1942_v46, %v1940_v4  ;;  %v4459_v55 = vpop.eup %4458  ;;  %v2222_v46 = vld [vmem:[#allocation6 + $0xa0] sm:$0xff]  ;;  %v2224_v4 = vld [vmem:[#allocation6 + $0xb0] sm:$0xff] }
 0x72c   :  { %4462 = vtanh.f32 %v5888_v6  ;;  %v4461_v11 = vpop.eup %4460 }
 0x72d   :  { %4464 = vtanh.f32 %v5890_v10 }
 0x739   :  { %v4463_v12 = vpop.eup %4462 }
 0x73a   :  { %v4465_v40 = vpop.eup %4464  ;;  %v1947_v14 = vmul.f32 %v4463_v12, %v4459_v55  ;;  %v2219_v55 = vld [vmem:[#allocation6 + $0x88] sm:$0xff]  ;;  %v2218_v12 = vld [vmem:[#allocation6 + $0x80] sm:$0xff] }
 0x73b   :  { %v1948_v17 = vmul.f32 %v4465_v40, %v4461_v11  ;;  %v2221_v11 = vld [vmem:[#allocation6 + $0x98] sm:$0xff]  ;;  %v2220_v40 = vld [vmem:[#allocation6 + $0x90] sm:$0xff] }
 0x73c   :  { %v1956_v19 = vrot.slane %v1947_v14, 6 }
 0x73d   :  { %v1951_v22 = vrot.slane %v1948_v17, 7  ;;  %v1957_v25 = vrot.slane %v1948_v17, 5  ;;  %v2217_v17 = vld [vmem:[#allocation6 + $0x78] sm:$0xff] }
 0x73f   :  { %v1953_v28 = vsel %vm1952_vm7, %v1951_v22, %v1947_v14  ;;  %v1958_v29 = vsel %vm551_vm1, %v1957_v25, %v1956_v19  ;;  %v2215_v14 = vld [vmem:[#allocation6 + $0x68] sm:$0xff]  ;;  %v2214_v19 = vld [vmem:[#allocation6 + $0x60] sm:$0xff]  ;;  %v2216_v22 = vld [vmem:[#allocation6 + $0x70] sm:$0xff] }
 0x740   :  { %1955 = vst [vmem:[#allocation2 + $0x6] sm:$0xc0] %v1953_v28  ;;  %2025 = vmatmul.mubr.f32.vlgmr.msra.gmra.mxu0 %v1958_v29  ;;  %2096 = vmatmul.mubr.f32.vlgmr.msra.gmra.mxu1 %v1958_v29  ;;  %v2211_v25 = vld [vmem:[#allocation6 + $0x48] sm:$0xff]  ;;  %v2212_v28 = vld [vmem:[#allocation6 + $0x50] sm:$0xff] }
 0x741   :  { %2355 = vmatpush1.msra.mxu0 %v2262_v26  ;;  %2432 = vmatpush1.msra.mxu1 %v2264_v27  ;;  %v2213_v26 = vld [vmem:[#allocation6 + $0x58] sm:$0xff]  ;;  %v2210_v27 = vld [vmem:[#allocation6 + $0x40] sm:$0xff]  ;;  %v2207_v29 = vld [vmem:[#allocation6 + $0x28] sm:$0xff] }
 0x742   :  { %2356 = vmatprep.subr.mxu0 %v2259_v30  ;;  %2433 = vmatprep.subr.mxu1 %v2261_v0  ;;  %v2209_v30 = vld [vmem:[#allocation6 + $0x38] sm:$0xff]  ;;  %v2206_v0 = vld [vmem:[#allocation6 + $0x20] sm:$0xff] }
 0x743   :  { %2357 = vmatpush1.msra.mxu0 %v2258_v37  ;;  %2434 = vmatpush1.msra.mxu1 %v2260_v39  ;;  %v2208_v37 = vld [vmem:[#allocation6 + $0x30] sm:$0xff]  ;;  %v2203_v39 = vld [vmem:[#allocation6 + $0x8] sm:$0xff] }
 0x744   :  { %2358 = vmatprep.subr.mxu0 %v2255_v5  ;;  %2435 = vmatprep.subr.mxu1 %v2257_v15  ;;  %v2205_v5 = vld [vmem:[#allocation6 + $0x18] sm:$0xff]  ;;  %v2202_v15 = vld [vmem:[#allocation6] sm:$0xff] }
 0x745   :  { %2359 = vmatpush1.msra.mxu0 %v2254_v49  ;;  %2436 = vmatpush1.msra.mxu1 %v2256_v48  ;;  %v2204_v49 = vld [vmem:[#allocation6 + $0x10] sm:$0xff] }
 0x746   :  { %2360 = vmatprep.subr.mxu0 %v2251_v35  ;;  %2437 = vmatprep.subr.mxu1 %v2253_v32  ;;  %v2331_v48 = vld [vmem:[#allocation2] sm:$0xff]  ;;  %v5899_v35 = vld [vmem:[#allocation8 + $0x1e8] sm:$0xff]  ;;  %v5901_v32 = vld [vmem:[#allocation8 + $0x1f8] sm:$0xff] }
 0x747   :  { %2361 = vmatpush1.msra.mxu0 %v2250_v42  ;;  %2438 = vmatpush1.msra.mxu1 %v2252_v51  ;;  %7377 = vst [vmem:[#allocation44_spill] sm:$0xff] %v5899_v35  ;;  %7378 = vst [vmem:[#allocation15_spill] sm:$0xff] %v5901_v32  ;;  %v5905_v42 = vld [vmem:[#allocation8 + $0x1e0] sm:$0xff]  ;;  %v5907_v51 = vld [vmem:[#allocation8 + $0x1f0] sm:$0xff] }
 0x748   :  { %2362 = vmatprep.subr.mxu0 %v2247_v47  ;;  %2439 = vmatprep.subr.mxu1 %v2249_v53  ;;  %v5911_v47 = vld [vmem:[#allocation8 + $0x1c8] sm:$0xff]  ;;  %v5913_v53 = vld [vmem:[#allocation8 + $0x1d8] sm:$0xff] }
 0x749   :  { %2363 = vmatpush1.msra.mxu0 %v2246_v38  ;;  %2440 = vmatpush1.msra.mxu1 %v2248_v31  ;;  %v5917_v38 = vld [vmem:[#allocation8 + $0x1c0] sm:$0xff]  ;;  %v5919_v31 = vld [vmem:[#allocation8 + $0x1d0] sm:$0xff] }
 0x74a   :  { %2364 = vmatprep.subr.mxu0 %v2243_v36  ;;  %2441 = vmatprep.subr.mxu1 %v2245_v45  ;;  %v5923_v36 = vld [vmem:[#allocation8 + $0x1a8] sm:$0xff]  ;;  %v5925_v45 = vld [vmem:[#allocation8 + $0x1b8] sm:$0xff] }
 0x74b   :  { %2365 = vmatpush1.msra.mxu0 %v2242_v34  ;;  %2442 = vmatpush1.msra.mxu1 %v2244_v57  ;;  %v5929_v34 = vld [vmem:[#allocation8 + $0x1a0] sm:$0xff]  ;;  %v5931_v57 = vld [vmem:[#allocation8 + $0x1b0] sm:$0xff] }
 0x74c   :  { %2366 = vmatprep.subr.mxu0 %v2239_v59  ;;  %2443 = vmatprep.subr.mxu1 %v2241_v61  ;;  %v5935_v59 = vld [vmem:[#allocation8 + $0x188] sm:$0xff]  ;;  %v5937_v61 = vld [vmem:[#allocation8 + $0x198] sm:$0xff] }
 0x74d   :  { %2367 = vmatpush1.msra.mxu0 %v2238_v63  ;;  %2444 = vmatpush1.msra.mxu1 %v2240_v18  ;;  %v5941_v63 = vld [vmem:[#allocation8 + $0x180] sm:$0xff]  ;;  %v5943_v18 = vld [vmem:[#allocation8 + $0x190] sm:$0xff] }
 0x74e   :  { %2368 = vmatprep.subr.mxu0 %v2235_v13  ;;  %2445 = vmatprep.subr.mxu1 %v2237_v58  ;;  %v5947_v13 = vld [vmem:[#allocation8 + $0x168] sm:$0xff]  ;;  %v5949_v58 = vld [vmem:[#allocation8 + $0x178] sm:$0xff] }
 0x74f   :  { %2369 = vmatpush1.msra.mxu0 %v2234_v16  ;;  %2446 = vmatpush1.msra.mxu1 %v2236_v50  ;;  %v5953_v16 = vld [vmem:[#allocation8 + $0x160] sm:$0xff]  ;;  %v5955_v50 = vld [vmem:[#allocation8 + $0x170] sm:$0xff] }
 0x750   :  { %2370 = vmatprep.subr.mxu0 %v2231_v62  ;;  %2447 = vmatprep.subr.mxu1 %v2233_v56  ;;  %v5959_v62 = vld [vmem:[#allocation8 + $0x148] sm:$0xff]  ;;  %v5961_v56 = vld [vmem:[#allocation8 + $0x158] sm:$0xff] }
 0x751   :  { %2371 = vmatpush1.msra.mxu0 %v2230_v23  ;;  %2448 = vmatpush1.msra.mxu1 %v2232_v20  ;;  %v5965_v23 = vld [vmem:[#allocation8 + $0x140] sm:$0xff]  ;;  %v5967_v20 = vld [vmem:[#allocation8 + $0x150] sm:$0xff] }
 0x752   :  { %2372 = vmatprep.subr.mxu0 %v2227_v1  ;;  %2449 = vmatprep.subr.mxu1 %v2229_v60  ;;  %v5971_v1 = vld [vmem:[#allocation8 + $0x128] sm:$0xff]  ;;  %v5973_v60 = vld [vmem:[#allocation8 + $0x138] sm:$0xff] }
 0x753   :  { %2373 = vmatpush1.msra.mxu0 %v2226_v52  ;;  %2450 = vmatpush1.msra.mxu1 %v2228_v3  ;;  %v5977_v52 = vld [vmem:[#allocation8 + $0x120] sm:$0xff]  ;;  %v5979_v3 = vld [vmem:[#allocation8 + $0x130] sm:$0xff] }
 0x754   :  { %2374 = vmatprep.subr.mxu0 %v2223_v44  ;;  %2451 = vmatprep.subr.mxu1 %v2225_v2  ;;  %v5983_v44 = vld [vmem:[#allocation8 + $0x108] sm:$0xff]  ;;  %v5985_v2 = vld [vmem:[#allocation8 + $0x118] sm:$0xff] }
 0x755   :  { %2375 = vmatpush1.msra.mxu0 %v2222_v46  ;;  %2452 = vmatpush1.msra.mxu1 %v2224_v4  ;;  %v5989_v46 = vld [vmem:[#allocation8 + $0x100] sm:$0xff]  ;;  %v5991_v4 = vld [vmem:[#allocation8 + $0x110] sm:$0xff] }
 0x756   :  { %2376 = vmatprep.subr.mxu0 %v2219_v55  ;;  %2453 = vmatprep.subr.mxu1 %v2221_v11  ;;  %v5995_v55 = vld [vmem:[#allocation8 + $0xe8] sm:$0xff]  ;;  %v5997_v11 = vld [vmem:[#allocation8 + $0xf8] sm:$0xff] }
 0x757   :  { %2377 = vmatpush1.msra.mxu0 %v2218_v12  ;;  %2454 = vmatpush1.msra.mxu1 %v2220_v40  ;;  %v6001_v12 = vld [vmem:[#allocation8 + $0xe0] sm:$0xff]  ;;  %v6003_v40 = vld [vmem:[#allocation8 + $0xf0] sm:$0xff] }
 0x758   :  { %2378 = vmatprep.subr.mxu0 %v2215_v14  ;;  %2455 = vmatprep.subr.mxu1 %v2217_v17  ;;  %v6007_v14 = vld [vmem:[#allocation8 + $0xc8] sm:$0xff]  ;;  %v6009_v17 = vld [vmem:[#allocation8 + $0xd8] sm:$0xff] }
 0x759   :  { %2379 = vmatpush1.msra.mxu0 %v2214_v19  ;;  %2456 = vmatpush1.msra.mxu1 %v2216_v22  ;;  %v6013_v19 = vld [vmem:[#allocation8 + $0xc0] sm:$0xff]  ;;  %v6015_v22 = vld [vmem:[#allocation8 + $0xd0] sm:$0xff] }
 0x75a   :  { %2380 = vmatprep.subr.mxu0 %v2211_v25  ;;  %2457 = vmatprep.subr.mxu1 %v2213_v26  ;;  %7379 = vst [vmem:[#allocation13_spill] sm:$0xff] %v6015_v22  ;;  %v6017_v25 = vld [vmem:[#allocation8 + $0xa8] sm:$0xff]  ;;  %v6021_v26 = vld [vmem:[#allocation8 + $0xb8] sm:$0xff] }
 0x75b   :  { %2381 = vmatpush1.msra.mxu0 %v2210_v27  ;;  %2458 = vmatpush1.msra.mxu1 %v2212_v28  ;;  %7380 = vst [vmem:[#allocation45_spill] sm:$0xff] %v6017_v25  ;;  %7381 = vst [vmem:[#allocation26_spill] sm:$0xff] %v6021_v26  ;;  %v6023_v27 = vld [vmem:[#allocation8 + $0xa0] sm:$0xff]  ;;  %v6025_v28 = vld [vmem:[#allocation8 + $0xb0] sm:$0xff] }
 0x75c   :  { %2382 = vmatprep.subr.mxu0 %v2207_v29  ;;  %2459 = vmatprep.subr.mxu1 %v2209_v30  ;;  %7382 = vst [vmem:[#allocation16_spill] sm:$0xff] %v6023_v27  ;;  %7383 = vst [vmem:[#allocation27_spill] sm:$0xff] %v6025_v28  ;;  %v6029_v29 = vld [vmem:[#allocation8 + $0x88] sm:$0xff]  ;;  %v6031_v30 = vld [vmem:[#allocation8 + $0x98] sm:$0xff] }
 0x75d   :  { %2383 = vmatpush1.msra.mxu0 %v2206_v0  ;;  %2460 = vmatpush1.msra.mxu1 %v2208_v37  ;;  %7384 = vst [vmem:[#allocation17_spill] sm:$0xff] %v6029_v29  ;;  %7385 = vst [vmem:[#allocation28_spill] sm:$0xff] %v6031_v30  ;;  %v6033_v0 = vld [vmem:[#allocation8 + $0x80] sm:$0xff]  ;;  %v6037_v37 = vld [vmem:[#allocation8 + $0x90] sm:$0xff] }
 0x75e   :  { %2384 = vmatprep.subr.mxu0 %v2203_v39  ;;  %2461 = vmatprep.subr.mxu1 %v2205_v5  ;;  %7386 = vst [vmem:[#allocation18_spill] sm:$0xff] %v6033_v0  ;;  %7387 = vst [vmem:[#allocation29_spill] sm:$0xff] %v6037_v37  ;;  %v6039_v39 = vld [vmem:[#allocation8 + $0x68] sm:$0xff]  ;;  %v6041_v5 = vld [vmem:[#allocation8 + $0x78] sm:$0xff] }
 0x75f   :  { %2385 = vmatpush1.msra.mxu0 %v2202_v15  ;;  %2418 = vmatprep.mubr.f32.mxu0 %v7370_v8  ;;  %7388 = vst [vmem:[#allocation19_spill] sm:$0xff] %v6039_v39  ;;  %7389 = vst [vmem:[#allocation30_spill] sm:$0xff] %v6041_v5  ;;  %v6045_v15 = vld [vmem:[#allocation8 + $0x60] sm:$0xff] }
 0x760   :  { %2462 = vmatpush1.msra.mxu1 %v2204_v49  ;;  %2495 = vmatprep.mubr.f32.mxu1 %v7370_v8  ;;  %7390 = vst [vmem:[#allocation20_spill] sm:$0xff] %v6045_v15  ;;  %v6047_v49 = vld [vmem:[#allocation8 + $0x70] sm:$0xff] }
 0x761   :  { %2419 = vmatmul.mubr.f32.vlgmr.msra.gmra.mxu0 %v2331_v48  ;;  %2496 = vmatmul.mubr.f32.vlgmr.msra.gmra.mxu1 %v2331_v48  ;;  %7391 = vst [vmem:[#allocation31_spill] sm:$0xff] %v6047_v49  ;;  %v6051_v48 = vld [vmem:[#allocation8 + $0x48] sm:$0xff] }
 0x762   :  { %2424 = vmatprep.mubr.f32.mxu0 %v7370_v8  ;;  %2501 = vmatprep.mubr.f32.mxu1 %v7370_v8  ;;  %7392 = vst [vmem:[#allocation21_spill] sm:$0xff] %v6051_v48 }
 0x763   :  { %2508 = vmatprep.subr.mxu0 %v5899_v35  ;;  %2579 = vmatprep.subr.mxu1 %v5901_v32 }
 0x764   :  { %2509 = vmatpush1.msra.mxu0 %v5905_v42  ;;  %2580 = vmatpush1.msra.mxu1 %v5907_v51 }
 0x765   :  { %2510 = vmatprep.subr.mxu0 %v5911_v47  ;;  %2581 = vmatprep.subr.mxu1 %v5913_v53 }
 0x766   :  { %2511 = vmatpush1.msra.mxu0 %v5917_v38  ;;  %2582 = vmatpush1.msra.mxu1 %v5919_v31 }
 0x767   :  { %2512 = vmatprep.subr.mxu0 %v5923_v36  ;;  %2583 = vmatprep.subr.mxu1 %v5925_v45 }
 0x768   :  { %2513 = vmatpush1.msra.mxu0 %v5929_v34  ;;  %2584 = vmatpush1.msra.mxu1 %v5931_v57 }
 0x769   :  { %2514 = vmatprep.subr.mxu0 %v5935_v59  ;;  %2585 = vmatprep.subr.mxu1 %v5937_v61 }
 0x76a   :  { %2515 = vmatpush1.msra.mxu0 %v5941_v63  ;;  %2586 = vmatpush1.msra.mxu1 %v5943_v18 }
 0x76b   :  { %2516 = vmatprep.subr.mxu0 %v5947_v13  ;;  %2587 = vmatprep.subr.mxu1 %v5949_v58 }
 0x76c   :  { %2517 = vmatpush1.msra.mxu0 %v5953_v16  ;;  %2588 = vmatpush1.msra.mxu1 %v5955_v50 }
 0x76d   :  { %2518 = vmatprep.subr.mxu0 %v5959_v62  ;;  %2589 = vmatprep.subr.mxu1 %v5961_v56 }
 0x76e   :  { %2519 = vmatpush1.msra.mxu0 %v5965_v23  ;;  %2590 = vmatpush1.msra.mxu1 %v5967_v20 }
 0x76f   :  { %2520 = vmatprep.subr.mxu0 %v5971_v1  ;;  %2591 = vmatprep.subr.mxu1 %v5973_v60 }
 0x770   :  { %2521 = vmatpush1.msra.mxu0 %v5977_v52  ;;  %2592 = vmatpush1.msra.mxu1 %v5979_v3 }
 0x771   :  { %2522 = vmatprep.subr.mxu0 %v5983_v44  ;;  %2593 = vmatprep.subr.mxu1 %v5985_v2 }
 0x772   :  { %2523 = vmatpush1.msra.mxu0 %v5989_v46  ;;  %2594 = vmatpush1.msra.mxu1 %v5991_v4 }
 0x773   :  { %2524 = vmatprep.subr.mxu0 %v5995_v55  ;;  %2595 = vmatprep.subr.mxu1 %v5997_v11 }
 0x774   :  { %2525 = vmatpush1.msra.mxu0 %v6001_v12  ;;  %2596 = vmatpush1.msra.mxu1 %v6003_v40 }
 0x775   :  { %2526 = vmatprep.subr.mxu0 %v6007_v14  ;;  %2597 = vmatprep.subr.mxu1 %v6009_v17 }
 0x776   :  { %2527 = vmatpush1.msra.mxu0 %v6013_v19  ;;  %2598 = vmatpush1.msra.mxu1 %v6015_v22 }
 0x777   :  { %2528 = vmatprep.subr.mxu0 %v6017_v25  ;;  %2599 = vmatprep.subr.mxu1 %v6021_v26 }
 0x778   :  { %2529 = vmatpush1.msra.mxu0 %v6023_v27  ;;  %2600 = vmatpush1.msra.mxu1 %v6025_v28  ;;  %v6053_v28 = vld [vmem:[#allocation8 + $0x58] sm:$0xff]  ;;  %v6057_v27 = vld [vmem:[#allocation8 + $0x40] sm:$0xff] }
 0x779   :  { %2530 = vmatprep.subr.mxu0 %v6029_v29  ;;  %2601 = vmatprep.subr.mxu1 %v6031_v30  ;;  %7393 = vst [vmem:[#allocation32_spill] sm:$0xff] %v6053_v28  ;;  %7394 = vst [vmem:[#allocation22_spill] sm:$0xff] %v6057_v27  ;;  %v6059_v29 = vld [vmem:[#allocation8 + $0x50] sm:$0xff]  ;;  %v6069_v30 = vld [vmem:[#allocation8 + $0x20] sm:$0xff] }
 0x77a   :  { %2531 = vmatpush1.msra.mxu0 %v6033_v0  ;;  %2602 = vmatpush1.msra.mxu1 %v6037_v37  ;;  %7395 = vst [vmem:[#allocation33_spill] sm:$0xff] %v6059_v29  ;;  %v6065_v37 = vld [vmem:[#allocation8 + $0x28] sm:$0xff]  ;;  %v6067_v0 = vld [vmem:[#allocation8 + $0x38] sm:$0xff]  ;;  %7398 = vst [vmem:[#allocation24_spill] sm:$0xff] %v6069_v30 }
 0x77b   :  { %2532 = vmatprep.subr.mxu0 %v6039_v39  ;;  %2603 = vmatprep.subr.mxu1 %v6041_v5  ;;  %7396 = vst [vmem:[#allocation23_spill] sm:$0xff] %v6065_v37  ;;  %7397 = vst [vmem:[#allocation34_spill] sm:$0xff] %v6067_v0  ;;  %v6073_v5 = vld [vmem:[#allocation8 + $0x30] sm:$0xff]  ;;  %v6075_v39 = vld [vmem:[#allocation8 + $0x8] sm:$0xff] }
 0x77c   :  { %2533 = vmatpush1.msra.mxu0 %v6045_v15  ;;  %2604 = vmatpush1.msra.mxu1 %v6047_v49  ;;  %7399 = vst [vmem:[#allocation35_spill] sm:$0xff] %v6073_v5  ;;  %7400 = vst [vmem:[#allocation25_spill] sm:$0xff] %v6075_v39  ;;  %v6077_v15 = vld [vmem:[#allocation8 + $0x18] sm:$0xff] }
 0x77d   :  { %2534 = vmatprep.subr.mxu0 %v6051_v48  ;;  %2605 = vmatprep.subr.mxu1 %v6053_v28  ;;  %7401 = vst [vmem:[#allocation36_spill] sm:$0xff] %v6077_v15  ;;  %v6081_v28 = vld [vmem:[#allocation8] sm:$0xff]  ;;  %v6083_v48 = vld [vmem:[#allocation8 + $0x10] sm:$0xff] }
 0x77e   :  { %2535 = vmatpush1.msra.mxu0 %v6057_v27  ;;  %2606 = vmatpush1.msra.mxu1 %v6059_v29  ;;  %7402 = vst [vmem:[#allocation14_spill] sm:$0xff] %v6081_v28  ;;  %7403 = vst [vmem:[#allocation38_spill] sm:$0xff] %v6083_v48 }
 0x77f   :  { %2536 = vmatprep.subr.mxu0 %v6065_v37  ;;  %2607 = vmatprep.subr.mxu1 %v6067_v0 }
 0x780   :  { %2537 = vmatpush1.msra.mxu0 %v6069_v30  ;;  %2608 = vmatpush1.msra.mxu1 %v6073_v5 }
 0x781   :  { %2538 = vmatprep.subr.mxu0 %v6075_v39  ;;  %2609 = vmatprep.subr.mxu1 %v6077_v15 }
 0x782   :  { %2539 = vmatpush1.msra.mxu0 %v6081_v28  ;;  %2610 = vmatpush1.msra.mxu1 %v6083_v48 }
 0x783   :  { %2678 = vmatprep.subr.mxu0 %v5899_v35  ;;  %2749 = vmatprep.subr.mxu1 %v5901_v32 }
 0x800   :  { %v2026_v0 = vpop.f32.mrf.mxu0  ;;  %v2097_v49 = vpop.f32.mrf.mxu1 }
 0x801   :  { %v2106_v37 = vrot.slane %v2026_v0, 1  ;;  %v2110_v29 = vrot.slane %v2026_v0, 2 }
 0x802   :  { %v2028_v27 = vpop.f32.mrf.mxu0  ;;  %v2099_v35 = vpop.f32.mrf.mxu1 }
 0x803   :  { %v2122_v30 = vadd.f32 %v2106_v37, %v7371_v21  ;;  %v2126_v5 = vadd.f32 %v2110_v29, %v7372_v24  ;;  %v2107_v39 = vrot.slane %v2028_v27, 1  ;;  %v2111_v26 = vrot.slane %v2028_v27, 2 }
 0x804   :  { %v2109_v0 = vrot.slane %v2099_v35, 1  ;;  %v2113_v21 = vrot.slane %v2099_v35, 2  ;;  %v2108_v37 = vrot.slane %v2097_v49, 1  ;;  %v2112_v24 = vrot.slane %v2097_v49, 2 }
 0x805   :  { %v4149_v15 = vmul.f32 -1.442695, %v2122_v30  ;;  %v4150_v25 = vmul.f32 -1.442695, %v2126_v5  ;;  %v2123_v28 = vadd.f32 %v2107_v39, %v7373_v7  ;;  %v2127_v48 = vadd.f32 %v2111_v26, %v7374_v33 }
 0x806   :  { %v2125_v29 = vadd.f32 %v2109_v0, %v7228_v9  ;;  %v2129_v27 = vadd.f32 %v2113_v21, %v7258_v54  ;;  %v2124_v30 = vadd.f32 %v2108_v37, %v7375_v43  ;;  %v2128_v7 = vadd.f32 %v2112_v24, %v7376_v41 }
 0x807   :  { %4466 = vpow2.f32 %v4149_v15  ;;  %v4151_v32 = vmul.f32 -1.442695, %v2123_v28  ;;  %v4152_v22 = vmul.f32 -1.442695, %v2127_v48  ;;  %v2170_v0 = vrot.slane %v5888_v6, 7 }
 0x808   :  { %4468 = vpow2.f32 %v4150_v25  ;;  %v4153_v33 = vmul.f32 -1.442695, %v2125_v29  ;;  %v4154_v26 = vmul.f32 -1.442695, %v2129_v27  ;;  %v2171_v24 = vrot.slane %v5890_v10, 7 }
 0x809   :  { %4470 = vpow2.f32 %v4151_v32 }
 0x80a   :  { %4472 = vpow2.f32 %v4152_v22 }
 0x80b   :  { %4474 = vtanh.f32 %v2124_v30 }
 0x80c   :  { %4476 = vtanh.f32 %v2128_v7 }
 0x80d   :  { %4478 = vpow2.f32 %v4153_v33 }
 0x80e   :  { %4480 = vpow2.f32 %v4154_v26 }
 0x814   :  { %v4467_v39 = vpop.eup %4466 }
 0x815   :  { %v4469_v25 = vpop.eup %4468  ;;  %v2136_v28 = vadd.f32 1.0, %v4467_v39 }
 0x816   :  { %v2137_v32 = vadd.f32 1.0, %v4469_v25  ;;  %v4471_v35 = vpop.eup %4470 }
 0x817   :  { %v4473_v22 = vpop.eup %4472  ;;  %4482 = vrcp.f32 %v2136_v28  ;;  %v2148_v9 = vadd.f32 1.0, %v4471_v35 }
 0x818   :  { %4484 = vrcp.f32 %v2137_v32  ;;  %v2149_v54 = vadd.f32 1.0, %v4473_v22  ;;  %v4475_v43 = vpop.eup %4474 }
 0x819   :  { %4486 = vrcp.f32 %v2148_v9  ;;  %v4477_v41 = vpop.eup %4476 }
 0x81a   :  { %4488 = vrcp.f32 %v2149_v54  ;;  %v4479_v5 = vpop.eup %4478 }
 0x81b   :  { %v4481_v15 = vpop.eup %4480  ;;  %v2162_v21 = vadd.f32 1.0, %v4479_v5  ;;  %v7405_v5 = vld [vmem:[#allocation45_spill] sm:$0xff] }
 0x81c   :  { %v2163_v29 = vadd.f32 1.0, %v4481_v15  ;;  %v7406_v15 = vld [vmem:[#allocation26_spill] sm:$0xff] }
 0x81d   :  { %4490 = vrcp.f32 %v2162_v21  ;;  %v7410_v21 = vld [vmem:[#allocation28_spill] sm:$0xff] }
 0x81e   :  { %4492 = vrcp.f32 %v2163_v29  ;;  %v7413_v29 = vld [vmem:[#allocation19_spill] sm:$0xff] }
 0x824   :  { %v4483_v49 = vpop.eup %4482 }
 0x825   :  { %v4485_v48 = vpop.eup %4484  ;;  %v2176_v30 = vmul.f32 %v4483_v49, %v4475_v43  ;;  %v7407_v49 = vld [vmem:[#allocation16_spill] sm:$0xff] }
 0x826   :  { %v4487_v37 = vpop.eup %4486  ;;  %v2177_v33 = vmul.f32 %v4485_v48, %v4477_v41  ;;  %v7404_v41 = vld [vmem:[#allocation13_spill] sm:$0xff]  ;;  %v7408_v48 = vld [vmem:[#allocation27_spill] sm:$0xff] }
 0x827   :  { %v4489_v27 = vpop.eup %4488  ;;  %v2174_v7 = vmul.f32 %v4487_v37, %v2170_v0  ;;  %v7409_v0 = vld [vmem:[#allocation17_spill] sm:$0xff]  ;;  %v7411_v37 = vld [vmem:[#allocation18_spill] sm:$0xff] }
 0x828   :  { %v2175_v26 = vmul.f32 %v4489_v27, %v2171_v24  ;;  %v7412_v24 = vld [vmem:[#allocation29_spill] sm:$0xff]  ;;  %v7414_v27 = vld [vmem:[#allocation30_spill] sm:$0xff] }
 0x829   :  { %v2178_v39 = vadd.f32 %v2176_v30, %v2174_v7  ;;  %v7415_v30 = vld [vmem:[#allocation20_spill] sm:$0xff]  ;;  %v7416_v7 = vld [vmem:[#allocation31_spill] sm:$0xff] }
 0x82a   :  { %v2179_v25 = vadd.f32 %v2177_v33, %v2175_v26  ;;  %v4491_v10 = vpop.eup %4490  ;;  %v7417_v33 = vld [vmem:[#allocation21_spill] sm:$0xff]  ;;  %v7418_v26 = vld [vmem:[#allocation32_spill] sm:$0xff] }
 0x82b   :  { %4494 = vtanh.f32 %v2178_v39  ;;  %2200 = vst.msk [vmem:[%s6912_s11 - $0x7] sm:$0x80] %vm2191_vm8, %v2178_v39  ;;  %v4493_v28 = vpop.eup %4492  ;;  %v7419_v39 = vld [vmem:[#allocation22_spill] sm:$0xff] }
 0x82c   :  { %4496 = vtanh.f32 %v2179_v25  ;;  %v2197_v6 = vrot.slane %v2179_v25, 7  ;;  %v7420_v25 = vld [vmem:[#allocation33_spill] sm:$0xff] }
 0x82e   :  { %2201 = vst.msk [vmem:[%s6912_s11 + $0x1] sm:$0x1] %vm2193_vm9, %v2197_v6  ;;  %v7421_v6 = vld [vmem:[#allocation23_spill] sm:$0xff] }
 0x838   :  { %v4495_v32 = vpop.eup %4494 }
 0x839   :  { %v4497_v35 = vpop.eup %4496  ;;  %v2182_v22 = vmul.f32 %v4495_v32, %v4491_v10  ;;  %v7422_v10 = vld [vmem:[#allocation34_spill] sm:$0xff]  ;;  %v7424_v32 = vld [vmem:[#allocation35_spill] sm:$0xff] }
 0x83a   :  { %v2183_v9 = vmul.f32 %v4497_v35, %v4493_v28  ;;  %v7423_v28 = vld [vmem:[#allocation24_spill] sm:$0xff]  ;;  %v7425_v35 = vld [vmem:[#allocation25_spill] sm:$0xff] }
 0x83b   :  { %2189 = vst [vmem:[#allocation2 + $0x7] sm:$0x80] %v2182_v22  ;;  %2192 = vst.msk [vmem:[%s6911_s10 - $0x7] sm:$0x80] %vm2191_vm8, %v2182_v22  ;;  %v7426_v22 = vld [vmem:[#allocation36_spill] sm:$0xff] }
 0x83c   :  { %v2186_v54 = vrot.slane %v2183_v9, 7  ;;  %v7427_v9 = vld [vmem:[#allocation14_spill] sm:$0xff] }
 0x83e   :  { %2190 = vst [vmem:[#allocation2 + $0xf] sm:$0x1] %v2186_v54  ;;  %2194 = vst.msk [vmem:[%s6911_s10 + $0x1] sm:$0x1] %vm2193_vm9, %v2186_v54  ;;  %v7428_v54 = vld [vmem:[#allocation38_spill] sm:$0xff] }
 0x845   :  { %v2332_v43 = vld [vmem:[#allocation2 + $0x8] sm:$0xff] }
 0x846   :  { %2425 = vmatmul.mubr.f32.gmra.mxu0 %v2332_v43  ;;  %2502 = vmatmul.mubr.f32.gmra.mxu1 %v2332_v43  ;;  %v7429_v43 = vld [vmem:[#allocation44_spill] sm:$0xff] }
 0x847   :  { %2572 = vmatprep.mubr.f32.mxu0 %v7370_v8  ;;  %2643 = vmatprep.mubr.f32.mxu1 %v7370_v8 }
 0x84a   :  { %2573 = vmatmul.mubr.f32.vlgmr.msra.gmra.mxu0 %v7370_v8  ;;  %2644 = vmatmul.mubr.f32.vlgmr.msra.gmra.mxu1 %v7370_v8 }
 0x84b   :  { %2679 = vmatpush1.msra.mxu0 %v5905_v42  ;;  %2750 = vmatpush1.msra.mxu1 %v5907_v51 }
 0x84c   :  { %2680 = vmatprep.subr.mxu0 %v5911_v47  ;;  %2751 = vmatprep.subr.mxu1 %v5913_v53 }
 0x84d   :  { %2681 = vmatpush1.msra.mxu0 %v5917_v38  ;;  %2752 = vmatpush1.msra.mxu1 %v5919_v31 }
 0x84e   :  { %2682 = vmatprep.subr.mxu0 %v5923_v36  ;;  %2753 = vmatprep.subr.mxu1 %v5925_v45 }
 0x84f   :  { %2683 = vmatpush1.msra.mxu0 %v5929_v34  ;;  %2754 = vmatpush1.msra.mxu1 %v5931_v57 }
 0x850   :  { %2684 = vmatprep.subr.mxu0 %v5935_v59  ;;  %2755 = vmatprep.subr.mxu1 %v5937_v61 }
 0x851   :  { %2685 = vmatpush1.msra.mxu0 %v5941_v63  ;;  %2756 = vmatpush1.msra.mxu1 %v5943_v18 }
 0x852   :  { %2686 = vmatprep.subr.mxu0 %v5947_v13  ;;  %2757 = vmatprep.subr.mxu1 %v5949_v58 }
 0x853   :  { %2687 = vmatpush1.msra.mxu0 %v5953_v16  ;;  %2758 = vmatpush1.msra.mxu1 %v5955_v50 }
 0x854   :  { %2688 = vmatprep.subr.mxu0 %v5959_v62  ;;  %2759 = vmatprep.subr.mxu1 %v5961_v56 }
 0x855   :  { %2689 = vmatpush1.msra.mxu0 %v5965_v23  ;;  %2760 = vmatpush1.msra.mxu1 %v5967_v20 }
 0x856   :  { %2690 = vmatprep.subr.mxu0 %v5971_v1  ;;  %2761 = vmatprep.subr.mxu1 %v5973_v60 }
 0x857   :  { %2691 = vmatpush1.msra.mxu0 %v5977_v52  ;;  %2762 = vmatpush1.msra.mxu1 %v5979_v3 }
 0x858   :  { %2692 = vmatprep.subr.mxu0 %v5983_v44  ;;  %2763 = vmatprep.subr.mxu1 %v5985_v2 }
 0x859   :  { %2693 = vmatpush1.msra.mxu0 %v5989_v46  ;;  %2764 = vmatpush1.msra.mxu1 %v5991_v4 }
 0x85a   :  { %2694 = vmatprep.subr.mxu0 %v5995_v55  ;;  %2765 = vmatprep.subr.mxu1 %v5997_v11 }
 0x85b   :  { %2695 = vmatpush1.msra.mxu0 %v6001_v12  ;;  %2766 = vmatpush1.msra.mxu1 %v6003_v40 }
 0x85c   :  { %2696 = vmatprep.subr.mxu0 %v6007_v14  ;;  %2767 = vmatprep.subr.mxu1 %v6009_v17 }
 0x85d   :  { %2697 = vmatpush1.msra.mxu0 %v6013_v19  ;;  %2768 = vmatpush1.msra.mxu1 %v7404_v41 }
 0x85e   :  { %2698 = vmatprep.subr.mxu0 %v7405_v5  ;;  %2769 = vmatprep.subr.mxu1 %v7406_v15 }
 0x85f   :  { %2699 = vmatpush1.msra.mxu0 %v7407_v49  ;;  %2770 = vmatpush1.msra.mxu1 %v7408_v48 }
 0x860   :  { %2700 = vmatprep.subr.mxu0 %v7409_v0  ;;  %2771 = vmatprep.subr.mxu1 %v7410_v21 }
 0x861   :  { %2701 = vmatpush1.msra.mxu0 %v7411_v37  ;;  %2772 = vmatpush1.msra.mxu1 %v7412_v24 }
 0x862   :  { %2702 = vmatprep.subr.mxu0 %v7413_v29  ;;  %2773 = vmatprep.subr.mxu1 %v7414_v27 }
 0x863   :  { %2703 = vmatpush1.msra.mxu0 %v7415_v30  ;;  %2774 = vmatpush1.msra.mxu1 %v7416_v7 }
 0x864   :  { %2704 = vmatprep.subr.mxu0 %v7417_v33  ;;  %2775 = vmatprep.subr.mxu1 %v7418_v26 }
 0x865   :  { %2705 = vmatpush1.msra.mxu0 %v7419_v39  ;;  %2776 = vmatpush1.msra.mxu1 %v7420_v25 }
 0x866   :  { %2706 = vmatprep.subr.mxu0 %v7421_v6  ;;  %2777 = vmatprep.subr.mxu1 %v7422_v10  ;;  %v7430_v6 = vld [vmem:[#allocation15_spill] sm:$0xff]  ;;  %v2420_v10 = vpop.f32.mrf.mxu0 }
 0x867   :  { %2707 = vmatpush1.msra.mxu0 %v7423_v28  ;;  %2778 = vmatpush1.msra.mxu1 %v7424_v32  ;;  %v2497_v28 = vpop.f32.mrf.mxu1 }
 0x868   :  { %2708 = vmatprep.subr.mxu0 %v7425_v35  ;;  %2779 = vmatprep.subr.mxu1 %v7426_v22  ;;  %v2330_v35 = vld [vmem:[%s6907_s6] sm:$0xf]  ;;  %v2422_v32 = vpop.f32.mrf.mxu0  ;;  %v7431_v22 = vld [vmem:[#allocation37_spill] sm:$0xff] }
 0x869   :  { %2709 = vmatpush1.msra.mxu0 %v7427_v9  ;;  %2742 = vmatprep.mubr.f32.mxu0 %v7370_v8  ;;  %v7432_v25 = vsub.s32 0, %v7431_v22  ;;  %v2499_v39 = vpop.f32.mrf.mxu1 }
 0x86a   :  { %2780 = vmatpush1.msra.mxu1 %v7428_v54  ;;  %2813 = vmatprep.mubr.f32.mxu1 %v7370_v8  ;;  %v7435_v54 = vsub.s32 1, %v7431_v22 }
 0x86b   :  { %2866 = vmatprep.subr.mxu0 %v7429_v43  ;;  %2937 = vmatprep.subr.mxu1 %v7430_v6  ;;  %v6192_v9 = vrot.slane %v2330_v35, %v7432_v25 }
 0x86c   :  { %v6198_v8 = vrot.slane %v2330_v35, %v7435_v54 }
 0x86d   :  { %7433 = vst [vmem:[#allocation40_spill] sm:$0xff] %v6192_v9  ;;  %v6205_v33 = vadd.f32 %v2420_v10, %v6192_v9 }
 0x86e   :  { %7436 = vst [vmem:[#allocation41_spill] sm:$0xff] %v6198_v8  ;;  %v6208_v30 = vadd.f32 %v2422_v32, %v6198_v8 }
 0x906   :  { %v6194_v26 = vpop.f32.mrf.mxu0  ;;  %v6200_v43 = vpop.f32.mrf.mxu1 }
 0x907   :  { %7434 = vst [vmem:[#allocation39_spill] sm:$0xff] %v6194_v26  ;;  %7437 = vst [vmem:[#allocation43_spill] sm:$0xff] %v6200_v43 }
 0x908   :  { %v6202_v6 = vpop.f32.mrf.mxu0  ;;  %v6210_v25 = vpop.f32.mrf.mxu1 }
 0x909   :  { %7438 = vst [vmem:[#allocation42_spill] sm:$0xff] %v6202_v6  ;;  %7439 = vst [vmem:[#allocation13_spill] sm:$0xff] %v6210_v25  ;;  %v7440_v6 = vsub.s32 3, %v7431_v22  ;;  %v7443_v25 = vsub.s32 2, %v7431_v22 }
 0x90a   :  { %v2574_v7 = vpop.f32.mrf.mxu0  ;;  %v2645_v24 = vpop.f32.mrf.mxu1 }
 0x90b   :  { %v2650_v27 = vadd.f32 %v2574_v7, %v6205_v33  ;;  %v6216_v37 = vrot.slane %v2330_v35, %v7440_v6  ;;  %v6223_v8 = vrot.slane %v2330_v35, %v7443_v25 }
 0x90c   :  { %v2576_v26 = vpop.f32.mrf.mxu0  ;;  %v2647_v10 = vpop.f32.mrf.mxu1 }
 0x90d   :  { %v4155_v29 = vmul.f32 -1.442695, %v2650_v27  ;;  %v2651_v54 = vadd.f32 %v2576_v26, %v6208_v30  ;;  %7441 = vst [vmem:[#allocation45_spill] sm:$0xff] %v6216_v37  ;;  %v6219_v32 = vadd.f32 %v2499_v39, %v6216_v37  ;;  %7444 = vst [vmem:[#allocation16_spill] sm:$0xff] %v6223_v8  ;;  %v6227_v7 = vadd.f32 %v2497_v28, %v6223_v8  ;;  %v7460_v8 = vld [vmem:[#allocation36_spill] sm:$0xff] }
 0x90f   :  { %4498 = vpow2.f32 %v4155_v29  ;;  %v4156_v43 = vmul.f32 -1.442695, %v2651_v54  ;;  %7442 = vst [vmem:[#allocation26_spill] sm:$0xff] %v6219_v32  ;;  %v2653_v27 = vadd.f32 %v2647_v10, %v6219_v32  ;;  %v2652_v54 = vadd.f32 %v2645_v24, %v6227_v7 }
 0x911   :  { %4500 = vpow2.f32 %v4156_v43  ;;  %v4157_v29 = vmul.f32 -1.442695, %v2653_v27 }
 0x913   :  { %4502 = vpow2.f32 %v4157_v29  ;;  %v7448_v29 = vld [vmem:[#allocation30_spill] sm:$0xff] }
 0x91c   :  { %v4499_v26 = vpop.eup %4498 }
 0x91d   :  { %v2657_v6 = vadd.f32 1.0, %v4499_v26 }
 0x91e   :  { %v4501_v9 = vpop.eup %4500 }
 0x91f   :  { %4504 = vrcp.f32 %v2657_v6  ;;  %v2663_v43 = vadd.f32 1.0, %v4501_v9  ;;  %v7446_v9 = vld [vmem:[#allocation29_spill] sm:$0xff]  ;;  %v7450_v6 = vld [vmem:[#allocation31_spill] sm:$0xff] }
 0x920   :  { %4506 = vtanh.f32 %v2652_v54  ;;  %v4503_v39 = vpop.eup %4502  ;;  %v7449_v54 = vld [vmem:[#allocation20_spill] sm:$0xff] }
 0x921   :  { %4508 = vrcp.f32 %v2663_v43  ;;  %v2670_v37 = vadd.f32 1.0, %v4503_v39  ;;  %v7451_v43 = vld [vmem:[#allocation21_spill] sm:$0xff]  ;;  %v7452_v39 = vld [vmem:[#allocation32_spill] sm:$0xff] }
 0x923   :  { %4510 = vrcp.f32 %v2670_v37  ;;  %v7445_v37 = vld [vmem:[#allocation18_spill] sm:$0xff] }
 0x92c   :  { %v4505_v22 = vpop.eup %4504 }
 0x92d   :  { %v4507_v35 = vpop.eup %4506 }
 0x92e   :  { %v4509_v25 = vpop.eup %4508  ;;  %v2674_v32 = vmul.f32 %v4507_v35, %v4505_v22  ;;  %v7453_v22 = vld [vmem:[#allocation22_spill] sm:$0xff]  ;;  %v7454_v35 = vld [vmem:[#allocation33_spill] sm:$0xff] }
 0x92f   :  { %v2673_v10 = vmul.f32 0.0, %v4509_v25  ;;  %v7455_v25 = vld [vmem:[#allocation23_spill] sm:$0xff] }
 0x930   :  { %v4511_v24 = vpop.eup %4510 }
 0x931   :  { %v6230_v28 = vadd.f32 %v2674_v32, %v2673_v10  ;;  %v7447_v32 = vld [vmem:[#allocation19_spill] sm:$0xff]  ;;  %v7456_v10 = vld [vmem:[#allocation34_spill] sm:$0xff] }
 0x933   :  { %4512 = vtanh.f32 %v6230_v28 }
 0x940   :  { %v4513_v27 = vpop.eup %4512 }
 0x941   :  { %v2677_v26 = vmul.f32 %v4513_v27, %v4511_v24  ;;  %v7457_v24 = vld [vmem:[#allocation24_spill] sm:$0xff]  ;;  %v7458_v27 = vld [vmem:[#allocation35_spill] sm:$0xff] }
 0x943   :  { %2743 = vmatmul.mubr.f32.vlgmr.msra.gmra.mxu0 %v2677_v26  ;;  %2814 = vmatmul.mubr.f32.vlgmr.msra.gmra.mxu1 %v2677_v26  ;;  %v7459_v26 = vld [vmem:[#allocation25_spill] sm:$0xff] }
 0x944   :  { %2867 = vmatpush1.msra.mxu0 %v5905_v42  ;;  %2938 = vmatpush1.msra.mxu1 %v5907_v51 }
 0x945   :  { %2868 = vmatprep.subr.mxu0 %v5911_v47  ;;  %2939 = vmatprep.subr.mxu1 %v5913_v53 }
 0x946   :  { %2869 = vmatpush1.msra.mxu0 %v5917_v38  ;;  %2940 = vmatpush1.msra.mxu1 %v5919_v31 }
 0x947   :  { %2870 = vmatprep.subr.mxu0 %v5923_v36  ;;  %2941 = vmatprep.subr.mxu1 %v5925_v45 }
 0x948   :  { %2871 = vmatpush1.msra.mxu0 %v5929_v34  ;;  %2942 = vmatpush1.msra.mxu1 %v5931_v57 }
 0x949   :  { %2872 = vmatprep.subr.mxu0 %v5935_v59  ;;  %2943 = vmatprep.subr.mxu1 %v5937_v61 }
 0x94a   :  { %2873 = vmatpush1.msra.mxu0 %v5941_v63  ;;  %2944 = vmatpush1.msra.mxu1 %v5943_v18 }
 0x94b   :  { %2874 = vmatprep.subr.mxu0 %v5947_v13  ;;  %2945 = vmatprep.subr.mxu1 %v5949_v58 }
 0x94c   :  { %2875 = vmatpush1.msra.mxu0 %v5953_v16  ;;  %2946 = vmatpush1.msra.mxu1 %v5955_v50 }
 0x94d   :  { %2876 = vmatprep.subr.mxu0 %v5959_v62  ;;  %2947 = vmatprep.subr.mxu1 %v5961_v56 }
 0x94e   :  { %2877 = vmatpush1.msra.mxu0 %v5965_v23  ;;  %2948 = vmatpush1.msra.mxu1 %v5967_v20 }
 0x94f   :  { %2878 = vmatprep.subr.mxu0 %v5971_v1  ;;  %2949 = vmatprep.subr.mxu1 %v5973_v60 }
 0x950   :  { %2879 = vmatpush1.msra.mxu0 %v5977_v52  ;;  %2950 = vmatpush1.msra.mxu1 %v5979_v3 }
 0x951   :  { %2880 = vmatprep.subr.mxu0 %v5983_v44  ;;  %2951 = vmatprep.subr.mxu1 %v5985_v2 }
 0x952   :  { %2881 = vmatpush1.msra.mxu0 %v5989_v46  ;;  %2952 = vmatpush1.msra.mxu1 %v5991_v4 }
 0x953   :  { %2882 = vmatprep.subr.mxu0 %v5995_v55  ;;  %2953 = vmatprep.subr.mxu1 %v5997_v11 }
 0x954   :  { %2883 = vmatpush1.msra.mxu0 %v6001_v12  ;;  %2954 = vmatpush1.msra.mxu1 %v6003_v40 }
 0x955   :  { %2884 = vmatprep.subr.mxu0 %v6007_v14  ;;  %2955 = vmatprep.subr.mxu1 %v6009_v17 }
 0x956   :  { %2885 = vmatpush1.msra.mxu0 %v6013_v19  ;;  %2956 = vmatpush1.msra.mxu1 %v7404_v41 }
 0x957   :  { %2886 = vmatprep.subr.mxu0 %v7405_v5  ;;  %2957 = vmatprep.subr.mxu1 %v7406_v15 }
 0x958   :  { %2887 = vmatpush1.msra.mxu0 %v7407_v49  ;;  %2958 = vmatpush1.msra.mxu1 %v7408_v48 }
 0x959   :  { %2888 = vmatprep.subr.mxu0 %v7409_v0  ;;  %2959 = vmatprep.subr.mxu1 %v7410_v21 }
 0x95a   :  { %2889 = vmatpush1.msra.mxu0 %v7445_v37  ;;  %2960 = vmatpush1.msra.mxu1 %v7446_v9 }
 0x95b   :  { %2890 = vmatprep.subr.mxu0 %v7447_v32  ;;  %2961 = vmatprep.subr.mxu1 %v7448_v29 }
 0x95c   :  { %2891 = vmatpush1.msra.mxu0 %v7449_v54  ;;  %2962 = vmatpush1.msra.mxu1 %v7450_v6  ;;  %v7461_v6 = vld [vmem:[#allocation14_spill] sm:$0xff] }
 0x95d   :  { %2892 = vmatprep.subr.mxu0 %v7451_v43  ;;  %2963 = vmatprep.subr.mxu1 %v7452_v39  ;;  %v7462_v43 = vmov 0.0   ;;  %v7463_v39 = vld [vmem:[#allocation38_spill] sm:$0xff] }
 0x95e   :  { %2893 = vmatpush1.msra.mxu0 %v7453_v22  ;;  %2964 = vmatpush1.msra.mxu1 %v7454_v35  ;;  %v7464_v35 = vld [vmem:[#allocation44_spill] sm:$0xff] }
 0x95f   :  { %2894 = vmatprep.subr.mxu0 %v7455_v25  ;;  %2965 = vmatprep.subr.mxu1 %v7456_v10  ;;  %v7465_v25 = vld [vmem:[#allocation15_spill] sm:$0xff] }
 0x960   :  { %2895 = vmatpush1.msra.mxu0 %v7457_v24  ;;  %2966 = vmatpush1.msra.mxu1 %v7458_v27 }
 0x961   :  { %2896 = vmatprep.subr.mxu0 %v7459_v26  ;;  %2967 = vmatprep.subr.mxu1 %v7460_v8 }
 0x962   :  { %2897 = vmatpush1.msra.mxu0 %v7461_v6  ;;  %2930 = vmatprep.mubr.f32.mxu0 %v7462_v43 }
 0x963   :  { %2968 = vmatpush1.msra.mxu1 %v7463_v39  ;;  %3001 = vmatprep.mubr.f32.mxu1 %v7462_v43  ;;  %v7466_v43 = vld [vmem:[#allocation26_spill] sm:$0xff] }
 0x964   :  { %3054 = vmatprep.subr.mxu0 %v7464_v35  ;;  %3125 = vmatprep.subr.mxu1 %v7465_v25 }
 0xa03   :  { %v2744_v10 = vpop.f32.mrf.mxu0  ;;  %v2815_v26 = vpop.f32.mrf.mxu1 }
 0xa04   :  { %v2824_v24 = vrot.slane %v2744_v10, 6  ;;  %v2826_v35 = vrot.slane %v2815_v26, 6 }
 0xa05   :  { %v2746_v22 = vpop.f32.mrf.mxu0  ;;  %v2817_v32 = vpop.f32.mrf.mxu1 }
 0xa06   :  { %v2832_v27 = vadd.f32 %v2824_v24, %v6205_v33  ;;  %v2825_v54 = vrot.slane %v2746_v22, 6  ;;  %v2827_v39 = vrot.slane %v2817_v32, 6  ;;  %v2834_v10 = vadd.f32 %v2826_v35, %v6227_v7 }
 0xa08   :  { %v4158_v8 = vmul.f32 -1.442695, %v2832_v27  ;;  %v2833_v6 = vadd.f32 %v2825_v54, %v6208_v30  ;;  %v2835_v9 = vadd.f32 %v2827_v39, %v7466_v43 }
 0xa0a   :  { %4514 = vpow2.f32 %v4158_v8  ;;  %v4159_v29 = vmul.f32 -1.442695, %v2833_v6  ;;  %v4160_v37 = vmul.f32 -1.442695, %v2835_v9 }
 0xa0c   :  { %4516 = vpow2.f32 %v4159_v29  ;;  %v2856_v29 = vrot.slane %v6230_v28, 6 }
 0xa0d   :  { %4518 = vpow2.f32 %v4160_v37 }
 0xa17   :  { %v4515_v25 = vpop.eup %4514 }
 0xa18   :  { %v2839_v21 = vadd.f32 1.0, %v4515_v25 }
 0xa19   :  { %v4517_v0 = vpop.eup %4516 }
 0xa1a   :  { %4520 = vrcp.f32 %v2839_v21  ;;  %v2845_v22 = vadd.f32 1.0, %v4517_v0  ;;  %v4519_v54 = vpop.eup %4518 }
 0xa1b   :  { %4522 = vtanh.f32 %v2834_v10  ;;  %v2852_v24 = vadd.f32 1.0, %v4519_v54 }
 0xa1c   :  { %4524 = vrcp.f32 %v2845_v22 }
 0xa1d   :  { %4526 = vrcp.f32 %v2852_v24 }
 0xa27   :  { %v4521_v8 = vpop.eup %4520 }
 0xa28   :  { %v4523_v6 = vpop.eup %4522 }
 0xa29   :  { %v4525_v32 = vpop.eup %4524  ;;  %v2859_v39 = vmul.f32 %v4523_v6, %v4521_v8 }
 0xa2a   :  { %v2858_v27 = vmul.f32 %v4525_v32, %v2856_v29  ;;  %v4527_v26 = vpop.eup %4526 }
 0xa2c   :  { %v6304_v9 = vadd.f32 %v2859_v39, %v2858_v27 }
 0xa2e   :  { %4528 = vtanh.f32 %v6304_v9  ;;  %v3044_v10 = vrot.slane %v6304_v9, 6  ;;  %v6388_v9 = vld [vmem:[#allocation8 + $0x1f0] sm:$0xff] }
 0xa3b   :  { %v4529_v37 = vpop.eup %4528 }
 0xa3c   :  { %v2862_v21 = vmul.f32 %v4529_v37, %v4527_v26  ;;  %v6385_v26 = vld [vmem:[#allocation8 + $0x1e0] sm:$0xff]  ;;  %v6391_v37 = vld [vmem:[#allocation8 + $0x1c8] sm:$0xff] }
 0xa3e   :  { %v2864_v0 = vrot.slane %v2862_v21, 2  ;;  %v6394_v21 = vld [vmem:[#allocation8 + $0x1d8] sm:$0xff] }
 0xa40   :  { %2931 = vmatmul.mubr.f32.vlgmr.msra.gmra.mxu0 %v2864_v0  ;;  %3002 = vmatmul.mubr.f32.vlgmr.msra.gmra.mxu1 %v2864_v0  ;;  %v6397_v0 = vld [vmem:[#allocation8 + $0x1c0] sm:$0xff] }
 0xa41   :  { %3055 = vmatpush1.msra.mxu0 %v5905_v42  ;;  %3126 = vmatpush1.msra.mxu1 %v5907_v51  ;;  %v7467_v42 = vld [vmem:[#allocation17_spill] sm:$0xff]  ;;  %v7468_v51 = vld [vmem:[#allocation28_spill] sm:$0xff] }
 0xa42   :  { %3056 = vmatprep.subr.mxu0 %v5911_v47  ;;  %3127 = vmatprep.subr.mxu1 %v5913_v53  ;;  %v7469_v47 = vld [vmem:[#allocation18_spill] sm:$0xff]  ;;  %v7470_v53 = vld [vmem:[#allocation29_spill] sm:$0xff] }
 0xa43   :  { %3057 = vmatpush1.msra.mxu0 %v5917_v38  ;;  %3128 = vmatpush1.msra.mxu1 %v5919_v31  ;;  %v7471_v38 = vld [vmem:[#allocation19_spill] sm:$0xff]  ;;  %v7472_v31 = vld [vmem:[#allocation30_spill] sm:$0xff] }
 0xa44   :  { %3058 = vmatprep.subr.mxu0 %v5923_v36  ;;  %3129 = vmatprep.subr.mxu1 %v5925_v45  ;;  %v7473_v36 = vld [vmem:[#allocation20_spill] sm:$0xff]  ;;  %v7474_v45 = vld [vmem:[#allocation31_spill] sm:$0xff] }
 0xa45   :  { %3059 = vmatpush1.msra.mxu0 %v5929_v34  ;;  %3130 = vmatpush1.msra.mxu1 %v5931_v57  ;;  %v7475_v34 = vld [vmem:[#allocation21_spill] sm:$0xff]  ;;  %v7476_v57 = vld [vmem:[#allocation32_spill] sm:$0xff] }
 0xa46   :  { %3060 = vmatprep.subr.mxu0 %v5935_v59  ;;  %3131 = vmatprep.subr.mxu1 %v5937_v61  ;;  %v7477_v59 = vld [vmem:[#allocation22_spill] sm:$0xff]  ;;  %v7478_v61 = vld [vmem:[#allocation33_spill] sm:$0xff] }
 0xa47   :  { %3061 = vmatpush1.msra.mxu0 %v5941_v63  ;;  %3132 = vmatpush1.msra.mxu1 %v5943_v18  ;;  %v7479_v63 = vld [vmem:[#allocation23_spill] sm:$0xff]  ;;  %v7480_v18 = vld [vmem:[#allocation34_spill] sm:$0xff] }
 0xa48   :  { %3062 = vmatprep.subr.mxu0 %v5947_v13  ;;  %3133 = vmatprep.subr.mxu1 %v5949_v58  ;;  %v7481_v13 = vld [vmem:[#allocation24_spill] sm:$0xff]  ;;  %v7482_v58 = vld [vmem:[#allocation35_spill] sm:$0xff] }
 0xa49   :  { %3063 = vmatpush1.msra.mxu0 %v5953_v16  ;;  %3134 = vmatpush1.msra.mxu1 %v5955_v50  ;;  %v7483_v16 = vld [vmem:[#allocation25_spill] sm:$0xff]  ;;  %v7484_v50 = vld [vmem:[#allocation36_spill] sm:$0xff] }
 0xa4a   :  { %3064 = vmatprep.subr.mxu0 %v5959_v62  ;;  %3135 = vmatprep.subr.mxu1 %v5961_v56  ;;  %v7485_v62 = vld [vmem:[#allocation14_spill] sm:$0xff]  ;;  %v7486_v56 = vmov 0.0  }
 0xa4b   :  { %3065 = vmatpush1.msra.mxu0 %v5965_v23  ;;  %3136 = vmatpush1.msra.mxu1 %v5967_v20  ;;  %v7487_v23 = vld [vmem:[#allocation38_spill] sm:$0xff] }
 0xa4c   :  { %3066 = vmatprep.subr.mxu0 %v5971_v1  ;;  %3137 = vmatprep.subr.mxu1 %v5973_v60  ;;  %v6371_v20 = vld [vmem:[#allocation8 + $0x1e8] sm:$0xff]  ;;  %v6374_v1 = vld [vmem:[#allocation8 + $0x1f8] sm:$0xff] }
 0xa4d   :  { %3067 = vmatpush1.msra.mxu0 %v5977_v52  ;;  %3138 = vmatpush1.msra.mxu1 %v5979_v3  ;;  %7488 = vst [vmem:[#allocation27_spill] sm:$0xff] %v6371_v20  ;;  %7489 = vst [vmem:[#allocation37_spill] sm:$0xff] %v6374_v1 }
 0xa4e   :  { %3068 = vmatprep.subr.mxu0 %v5983_v44  ;;  %3139 = vmatprep.subr.mxu1 %v5985_v2 }
 0xa4f   :  { %3069 = vmatpush1.msra.mxu0 %v5989_v46  ;;  %3140 = vmatpush1.msra.mxu1 %v5991_v4 }
 0xa50   :  { %3070 = vmatprep.subr.mxu0 %v5995_v55  ;;  %3141 = vmatprep.subr.mxu1 %v5997_v11 }
 0xa51   :  { %3071 = vmatpush1.msra.mxu0 %v6001_v12  ;;  %3142 = vmatpush1.msra.mxu1 %v6003_v40 }
 0xa52   :  { %3072 = vmatprep.subr.mxu0 %v6007_v14  ;;  %3143 = vmatprep.subr.mxu1 %v6009_v17 }
 0xa53   :  { %3073 = vmatpush1.msra.mxu0 %v6013_v19  ;;  %3144 = vmatpush1.msra.mxu1 %v7404_v41 }
 0xa54   :  { %3074 = vmatprep.subr.mxu0 %v7405_v5  ;;  %3145 = vmatprep.subr.mxu1 %v7406_v15 }
 0xa55   :  { %3075 = vmatpush1.msra.mxu0 %v7407_v49  ;;  %3146 = vmatpush1.msra.mxu1 %v7408_v48 }
 0xa56   :  { %3076 = vmatprep.subr.mxu0 %v7467_v42  ;;  %3147 = vmatprep.subr.mxu1 %v7468_v51  ;;  %v6400_v42 = vld [vmem:[#allocation8 + $0x1d0] sm:$0xff]  ;;  %v6403_v51 = vld [vmem:[#allocation8 + $0x1a8] sm:$0xff] }
 0xa57   :  { %3077 = vmatpush1.msra.mxu0 %v7469_v47  ;;  %3148 = vmatpush1.msra.mxu1 %v7470_v53  ;;  %v6406_v47 = vld [vmem:[#allocation8 + $0x1b8] sm:$0xff] }
 0xa58   :  { %3078 = vmatprep.subr.mxu0 %v7471_v38  ;;  %3149 = vmatprep.subr.mxu1 %v7472_v31 }
 0xa59   :  { %3079 = vmatpush1.msra.mxu0 %v7473_v36  ;;  %3150 = vmatpush1.msra.mxu1 %v7474_v45 }
 0xa5a   :  { %3080 = vmatprep.subr.mxu0 %v7475_v34  ;;  %3151 = vmatprep.subr.mxu1 %v7476_v57 }
 0xa5b   :  { %3081 = vmatpush1.msra.mxu0 %v7477_v59  ;;  %3152 = vmatpush1.msra.mxu1 %v7478_v61 }
 0xa5c   :  { %3082 = vmatprep.subr.mxu0 %v7479_v63  ;;  %3153 = vmatprep.subr.mxu1 %v7480_v18 }
 0xa5d   :  { %3083 = vmatpush1.msra.mxu0 %v7481_v13  ;;  %3154 = vmatpush1.msra.mxu1 %v7482_v58 }
 0xa5e   :  { %3084 = vmatprep.subr.mxu0 %v7483_v16  ;;  %3155 = vmatprep.subr.mxu1 %v7484_v50 }
 0xa5f   :  { %3085 = vmatpush1.msra.mxu0 %v7485_v62  ;;  %3118 = vmatprep.mubr.f32.mxu0 %v7486_v56 }
 0xa60   :  { %3156 = vmatpush1.msra.mxu1 %v7487_v23  ;;  %3189 = vmatprep.mubr.f32.mxu1 %v7486_v56 }
 0xa61   :  { %3242 = vmatprep.subr.mxu0 %v6371_v20  ;;  %3313 = vmatprep.subr.mxu1 %v6374_v1 }
 0xb00   :  { %v2932_v60 = vpop.f32.mrf.mxu0  ;;  %v3003_v2 = vpop.f32.mrf.mxu1 }
 0xb01   :  { %v3012_v52 = vrot.slane %v2932_v60, 4  ;;  %v3014_v17 = vrot.slane %v3003_v2, 4  ;;  %v6409_v60 = vld [vmem:[#allocation8 + $0x1a0] sm:$0xff] }
 0xb02   :  { %v2934_v3 = vpop.f32.mrf.mxu0  ;;  %v3005_v12 = vpop.f32.mrf.mxu1  ;;  %v6421_v2 = vld [vmem:[#allocation8 + $0x180] sm:$0xff] }
 0xb03   :  { %v3020_v44 = vadd.f32 %v3012_v52, %v6205_v33  ;;  %v3013_v46 = vrot.slane %v2934_v3, 4  ;;  %v3015_v40 = vrot.slane %v3005_v12, 4  ;;  %v3022_v5 = vadd.f32 %v3014_v17, %v6227_v7  ;;  %v6412_v52 = vld [vmem:[#allocation8 + $0x1b0] sm:$0xff]  ;;  %v6415_v3 = vld [vmem:[#allocation8 + $0x188] sm:$0xff]  ;;  %v6445_v17 = vld [vmem:[#allocation8 + $0x140] sm:$0xff] }
 0xb04   :  { %v6436_v12 = vld [vmem:[#allocation8 + $0x170] sm:$0xff] }
 0xb05   :  { %v4161_v4 = vmul.f32 -1.442695, %v3020_v44  ;;  %v3021_v55 = vadd.f32 %v3013_v46, %v6208_v30  ;;  %v3023_v14 = vadd.f32 %v3015_v40, %v7466_v43  ;;  %v6418_v44 = vld [vmem:[#allocation8 + $0x198] sm:$0xff]  ;;  %v6424_v46 = vld [vmem:[#allocation8 + $0x190] sm:$0xff]  ;;  %v6439_v40 = vld [vmem:[#allocation8 + $0x148] sm:$0xff] }
 0xb07   :  { %4530 = vpow2.f32 %v4161_v4  ;;  %v4162_v11 = vmul.f32 -1.442695, %v3021_v55  ;;  %v4163_v19 = vmul.f32 -1.442695, %v3023_v14  ;;  %v6427_v4 = vld [vmem:[#allocation8 + $0x168] sm:$0xff]  ;;  %v6430_v55 = vld [vmem:[#allocation8 + $0x178] sm:$0xff] }
 0xb08   :  { %v6442_v14 = vld [vmem:[#allocation8 + $0x158] sm:$0xff] }
 0xb09   :  { %4532 = vpow2.f32 %v4162_v11  ;;  %v6433_v11 = vld [vmem:[#allocation8 + $0x160] sm:$0xff] }
 0xb0a   :  { %4534 = vpow2.f32 %v4163_v19  ;;  %v6448_v19 = vld [vmem:[#allocation8 + $0x150] sm:$0xff] }
 0xb14   :  { %v4531_v41 = vpop.eup %4530 }
 0xb15   :  { %v3027_v15 = vadd.f32 1.0, %v4531_v41  ;;  %v6451_v41 = vld [vmem:[#allocation8 + $0x128] sm:$0xff] }
 0xb16   :  { %v4533_v49 = vpop.eup %4532 }
 0xb17   :  { %4536 = vrcp.f32 %v3027_v15  ;;  %v3033_v48 = vadd.f32 1.0, %v4533_v49  ;;  %v4535_v28 = vpop.eup %4534  ;;  %v6457_v15 = vld [vmem:[#allocation8 + $0x120] sm:$0xff]  ;;  %v6460_v49 = vld [vmem:[#allocation8 + $0x130] sm:$0xff] }
 0xb18   :  { %4538 = vtanh.f32 %v3022_v5  ;;  %v3040_v54 = vadd.f32 1.0, %v4535_v28  ;;  %v6454_v5 = vld [vmem:[#allocation8 + $0x138] sm:$0xff] }
 0xb19   :  { %4540 = vrcp.f32 %v3033_v48  ;;  %v6463_v48 = vld [vmem:[#allocation8 + $0x108] sm:$0xff]  ;;  %v6466_v28 = vld [vmem:[#allocation8 + $0x118] sm:$0xff] }
 0xb1a   :  { %4542 = vrcp.f32 %v3040_v54  ;;  %v6481_v54 = vld [vmem:[#allocation8 + $0xe0] sm:$0xff] }
 0xb24   :  { %v4537_v35 = vpop.eup %4536 }
 0xb25   :  { %v4539_v25 = vpop.eup %4538 }
 0xb26   :  { %v4541_v22 = vpop.eup %4540  ;;  %v3047_v8 = vmul.f32 %v4539_v25, %v4537_v35  ;;  %v6469_v35 = vld [vmem:[#allocation8 + $0x100] sm:$0xff]  ;;  %v6472_v25 = vld [vmem:[#allocation8 + $0x110] sm:$0xff] }
 0xb27   :  { %v3046_v6 = vmul.f32 %v4541_v22, %v3044_v10  ;;  %v4543_v32 = vpop.eup %4542  ;;  %v6475_v10 = vld [vmem:[#allocation8 + $0xe8] sm:$0xff]  ;;  %v6478_v22 = vld [vmem:[#allocation8 + $0xf8] sm:$0xff] }
 0xb29   :  { %v6382_v29 = vadd.f32 %v3047_v8, %v3046_v6  ;;  %v6484_v8 = vld [vmem:[#allocation8 + $0xf0] sm:$0xff]  ;;  %v6487_v6 = vld [vmem:[#allocation8 + $0xc8] sm:$0xff] }
 0xb2a   :  { %7490 = vst [vmem:[#allocation44_spill] sm:$0xff] %v6484_v8  ;;  %7491 = vst [vmem:[#allocation15_spill] sm:$0xff] %v6487_v6 }
 0xb2b   :  { %4544 = vtanh.f32 %v6382_v29 }
 0xb38   :  { %v4545_v24 = vpop.eup %4544 }
 0xb39   :  { %v3050_v39 = vmul.f32 %v4545_v24, %v4543_v32  ;;  %v6490_v32 = vld [vmem:[#allocation8 + $0xd8] sm:$0xff]  ;;  %v6493_v24 = vld [vmem:[#allocation8 + $0xc0] sm:$0xff] }
 0xb3a   :  { %7492 = vst [vmem:[#allocation26_spill] sm:$0xff] %v6490_v32  ;;  %7493 = vst [vmem:[#allocation17_spill] sm:$0xff] %v6493_v24 }
 0xb3b   :  { %v3052_v27 = vrot.slane %v3050_v39, 4  ;;  %v6496_v39 = vld [vmem:[#allocation8 + $0xd0] sm:$0xff] }
 0xb3c   :  { %7494 = vst [vmem:[#allocation28_spill] sm:$0xff] %v6496_v39 }
 0xb3d   :  { %3119 = vmatmul.mubr.f32.vlgmr.msra.gmra.mxu0 %v3052_v27  ;;  %3190 = vmatmul.mubr.f32.vlgmr.msra.gmra.mxu1 %v3052_v27  ;;  %v6499_v27 = vld [vmem:[#allocation8 + $0xa8] sm:$0xff] }
 0xb3e   :  { %3243 = vmatpush1.msra.mxu0 %v6385_v26  ;;  %3314 = vmatpush1.msra.mxu1 %v6388_v9  ;;  %7495 = vst [vmem:[#allocation18_spill] sm:$0xff] %v6499_v27 }
 0xb3f   :  { %3244 = vmatprep.subr.mxu0 %v6391_v37  ;;  %3315 = vmatprep.subr.mxu1 %v6394_v21 }
 0xb40   :  { %3245 = vmatpush1.msra.mxu0 %v6397_v0  ;;  %3316 = vmatpush1.msra.mxu1 %v6400_v42 }
 0xb41   :  { %3246 = vmatprep.subr.mxu0 %v6403_v51  ;;  %3317 = vmatprep.subr.mxu1 %v6406_v47 }
 0xb42   :  { %3247 = vmatpush1.msra.mxu0 %v6409_v60  ;;  %3318 = vmatpush1.msra.mxu1 %v6412_v52 }
 0xb43   :  { %3248 = vmatprep.subr.mxu0 %v6415_v3  ;;  %3319 = vmatprep.subr.mxu1 %v6418_v44 }
 0xb44   :  { %3249 = vmatpush1.msra.mxu0 %v6421_v2  ;;  %3320 = vmatpush1.msra.mxu1 %v6424_v46 }
 0xb45   :  { %3250 = vmatprep.subr.mxu0 %v6427_v4  ;;  %3321 = vmatprep.subr.mxu1 %v6430_v55 }
 0xb46   :  { %3251 = vmatpush1.msra.mxu0 %v6433_v11  ;;  %3322 = vmatpush1.msra.mxu1 %v6436_v12 }
 0xb47   :  { %3252 = vmatprep.subr.mxu0 %v6439_v40  ;;  %3323 = vmatprep.subr.mxu1 %v6442_v14 }
 0xb48   :  { %3253 = vmatpush1.msra.mxu0 %v6445_v17  ;;  %3324 = vmatpush1.msra.mxu1 %v6448_v19 }
 0xb49   :  { %3254 = vmatprep.subr.mxu0 %v6451_v41  ;;  %3325 = vmatprep.subr.mxu1 %v6454_v5 }
 0xb4a   :  { %3255 = vmatpush1.msra.mxu0 %v6457_v15  ;;  %3326 = vmatpush1.msra.mxu1 %v6460_v49 }
 0xb4b   :  { %3256 = vmatprep.subr.mxu0 %v6463_v48  ;;  %3327 = vmatprep.subr.mxu1 %v6466_v28 }
 0xb4c   :  { %3257 = vmatpush1.msra.mxu0 %v6469_v35  ;;  %3328 = vmatpush1.msra.mxu1 %v6472_v25 }
 0xb4d   :  { %3258 = vmatprep.subr.mxu0 %v6475_v10  ;;  %3329 = vmatprep.subr.mxu1 %v6478_v22 }
 0xb4e   :  { %3259 = vmatpush1.msra.mxu0 %v6481_v54  ;;  %3330 = vmatpush1.msra.mxu1 %v6484_v8  ;;  %v6502_v8 = vld [vmem:[#allocation8 + $0xb8] sm:$0xff] }
 0xb4f   :  { %3260 = vmatprep.subr.mxu0 %v6487_v6  ;;  %3331 = vmatprep.subr.mxu1 %v6490_v32  ;;  %v6505_v6 = vld [vmem:[#allocation8 + $0xa0] sm:$0xff]  ;;  %v6508_v32 = vld [vmem:[#allocation8 + $0xb0] sm:$0xff] }
 0xb50   :  { %3261 = vmatpush1.msra.mxu0 %v6493_v24  ;;  %3332 = vmatpush1.msra.mxu1 %v6496_v39  ;;  %v6511_v24 = vld [vmem:[#allocation8 + $0x88] sm:$0xff]  ;;  %v6514_v39 = vld [vmem:[#allocation8 + $0x98] sm:$0xff] }
 0xb51   :  { %3262 = vmatprep.subr.mxu0 %v6499_v27  ;;  %3333 = vmatprep.subr.mxu1 %v6502_v8  ;;  %7496 = vst [vmem:[#allocation29_spill] sm:$0xff] %v6511_v24  ;;  %7497 = vst [vmem:[#allocation19_spill] sm:$0xff] %v6514_v39  ;;  %v6517_v27 = vld [vmem:[#allocation8 + $0x80] sm:$0xff] }
 0xb52   :  { %3263 = vmatpush1.msra.mxu0 %v6505_v6  ;;  %3334 = vmatpush1.msra.mxu1 %v6508_v32  ;;  %7498 = vst [vmem:[#allocation30_spill] sm:$0xff] %v6517_v27 }
 0xb53   :  { %3264 = vmatprep.subr.mxu0 %v6511_v24  ;;  %3335 = vmatprep.subr.mxu1 %v6514_v39 }
 0xb54   :  { %3265 = vmatpush1.msra.mxu0 %v6517_v27  ;;  %3336 = vmatpush1.msra.mxu1 %v7470_v53 }
 0xb55   :  { %3266 = vmatprep.subr.mxu0 %v7471_v38  ;;  %3337 = vmatprep.subr.mxu1 %v7472_v31 }
 0xb56   :  { %3267 = vmatpush1.msra.mxu0 %v7473_v36  ;;  %3338 = vmatpush1.msra.mxu1 %v7474_v45 }
 0xb57   :  { %3268 = vmatprep.subr.mxu0 %v7475_v34  ;;  %3339 = vmatprep.subr.mxu1 %v7476_v57 }
 0xb58   :  { %3269 = vmatpush1.msra.mxu0 %v7477_v59  ;;  %3340 = vmatpush1.msra.mxu1 %v7478_v61 }
 0xb59   :  { %3270 = vmatprep.subr.mxu0 %v7479_v63  ;;  %3341 = vmatprep.subr.mxu1 %v7480_v18 }
 0xb5a   :  { %3271 = vmatpush1.msra.mxu0 %v7481_v13  ;;  %3342 = vmatpush1.msra.mxu1 %v7482_v58 }
 0xb5b   :  { %3272 = vmatprep.subr.mxu0 %v7483_v16  ;;  %3343 = vmatprep.subr.mxu1 %v7484_v50 }
 0xb5c   :  { %3273 = vmatpush1.msra.mxu0 %v7485_v62  ;;  %3306 = vmatprep.mubr.f32.mxu0 %v7486_v56 }
 0xb5d   :  { %3344 = vmatpush1.msra.mxu1 %v7487_v23  ;;  %3377 = vmatprep.mubr.f32.mxu1 %v7486_v56 }
 0xb5e   :  { %3415 = vmatprep.subr.mxu0 %v6371_v20  ;;  %3486 = vmatprep.subr.mxu1 %v6374_v1 }
 0xbfd   :  { %v3120_v53 = vpop.f32.mrf.mxu0  ;;  %v3191_v45 = vpop.f32.mrf.mxu1 }
 0xbfe   :  { %v3200_v38 = vrot.slane %v3120_v53, 2  ;;  %v3202_v58 = vrot.slane %v3191_v45, 2 }
 0xbff   :  { %v3122_v31 = vpop.f32.mrf.mxu0  ;;  %v3193_v63 = vpop.f32.mrf.mxu1 }
 0xc00   :  { %v3208_v36 = vadd.f32 %v3200_v38, %v6205_v33  ;;  %v3201_v34 = vrot.slane %v3122_v31, 2  ;;  %v3203_v18 = vrot.slane %v3193_v63, 2  ;;  %v3210_v62 = vadd.f32 %v3202_v58, %v6227_v7  ;;  %v7501_v58 = vld [vmem:[#allocation26_spill] sm:$0xff] }
 0xc02   :  { %v4164_v57 = vmul.f32 -1.442695, %v3208_v36  ;;  %v3209_v59 = vadd.f32 %v3201_v34, %v6208_v30  ;;  %v3211_v13 = vadd.f32 %v3203_v18, %v7466_v43  ;;  %v3232_v36 = vrot.slane %v6382_v29, 6  ;;  %v7499_v29 = vld [vmem:[#allocation44_spill] sm:$0xff] }
 0xc04   :  { %4546 = vpow2.f32 %v4164_v57  ;;  %v4165_v61 = vmul.f32 -1.442695, %v3209_v59  ;;  %v4166_v16 = vmul.f32 -1.442695, %v3211_v13  ;;  %v7500_v13 = vld [vmem:[#allocation15_spill] sm:$0xff] }
 0xc06   :  { %4548 = vpow2.f32 %v4165_v61 }
 0xc07   :  { %4550 = vpow2.f32 %v4166_v16  ;;  %v7502_v16 = vld [vmem:[#allocation17_spill] sm:$0xff] }
 0xc11   :  { %v4547_v50 = vpop.eup %4546 }
 0xc12   :  { %v3215_v23 = vadd.f32 1.0, %v4547_v50  ;;  %v7503_v50 = vld [vmem:[#allocation28_spill] sm:$0xff] }
 0xc13   :  { %v4549_v53 = vpop.eup %4548 }
 0xc14   :  { %4552 = vrcp.f32 %v3215_v23  ;;  %v3221_v33 = vadd.f32 1.0, %v4549_v53  ;;  %v4551_v30 = vpop.eup %4550  ;;  %v6594_v23 = vld [vmem:[#allocation8 + $0x90] sm:$0xff]  ;;  %v6597_v53 = vld [vmem:[#allocation8 + $0x68] sm:$0xff] }
 0xc15   :  { %4554 = vtanh.f32 %v3210_v62  ;;  %v3228_v57 = vadd.f32 1.0, %v4551_v30  ;;  %v7504_v62 = vld [vmem:[#allocation18_spill] sm:$0xff]  ;;  %7505 = vst [vmem:[#allocation20_spill] sm:$0xff] %v6594_v23  ;;  %7506 = vst [vmem:[#allocation31_spill] sm:$0xff] %v6597_v53  ;;  %v6603_v30 = vld [vmem:[#allocation8 + $0x60] sm:$0xff] }
 0xc16   :  { %4556 = vrcp.f32 %v3221_v33  ;;  %v6600_v33 = vld [vmem:[#allocation8 + $0x78] sm:$0xff]  ;;  %7508 = vst [vmem:[#allocation32_spill] sm:$0xff] %v6603_v30 }
 0xc17   :  { %4558 = vrcp.f32 %v3228_v57  ;;  %7507 = vst [vmem:[#allocation21_spill] sm:$0xff] %v6600_v33  ;;  %v6618_v57 = vld [vmem:[#allocation8 + $0x50] sm:$0xff] }
 0xc18   :  { %7513 = vst [vmem:[#allocation24_spill] sm:$0xff] %v6618_v57 }
 0xc21   :  { %v4553_v38 = vpop.eup %4552 }
 0xc22   :  { %v4555_v31 = vpop.eup %4554 }
 0xc23   :  { %v4557_v34 = vpop.eup %4556  ;;  %v3235_v43 = vmul.f32 %v4555_v31, %v4553_v38  ;;  %v6606_v38 = vld [vmem:[#allocation8 + $0x70] sm:$0xff]  ;;  %v6609_v31 = vld [vmem:[#allocation8 + $0x48] sm:$0xff] }
 0xc24   :  { %v3234_v45 = vmul.f32 %v4557_v34, %v3232_v36  ;;  %v4559_v7 = vpop.eup %4558  ;;  %7509 = vst [vmem:[#allocation22_spill] sm:$0xff] %v6606_v38  ;;  %7510 = vst [vmem:[#allocation33_spill] sm:$0xff] %v6609_v31  ;;  %v6612_v36 = vld [vmem:[#allocation8 + $0x58] sm:$0xff]  ;;  %v6615_v34 = vld [vmem:[#allocation8 + $0x40] sm:$0xff] }
 0xc25   :  { %7511 = vst [vmem:[#allocation23_spill] sm:$0xff] %v6612_v36  ;;  %7512 = vst [vmem:[#allocation34_spill] sm:$0xff] %v6615_v34 }
 0xc26   :  { %v6546_v59 = vadd.f32 %v3235_v43, %v3234_v45  ;;  %v6621_v43 = vld [vmem:[#allocation8 + $0x28] sm:$0xff]  ;;  %v6624_v45 = vld [vmem:[#allocation8 + $0x38] sm:$0xff] }
 0xc27   :  { %7514 = vst [vmem:[#allocation35_spill] sm:$0xff] %v6621_v43  ;;  %7515 = vst [vmem:[#allocation25_spill] sm:$0xff] %v6624_v45 }
 0xc28   :  { %4560 = vtanh.f32 %v6546_v59 }
 0xc35   :  { %v4561_v61 = vpop.eup %4560 }
 0xc36   :  { %v3238_v63 = vmul.f32 %v4561_v61, %v4559_v7  ;;  %v6627_v7 = vld [vmem:[#allocation8 + $0x20] sm:$0xff]  ;;  %v6630_v61 = vld [vmem:[#allocation8 + $0x30] sm:$0xff] }
 0xc37   :  { %7516 = vst [vmem:[#allocation36_spill] sm:$0xff] %v6627_v7  ;;  %7517 = vst [vmem:[#allocation14_spill] sm:$0xff] %v6630_v61 }
 0xc38   :  { %v3240_v18 = vrot.slane %v3238_v63, 6  ;;  %v6633_v63 = vld [vmem:[#allocation8 + $0x8] sm:$0xff] }
 0xc39   :  { %7518 = vst [vmem:[#allocation38_spill] sm:$0xff] %v6633_v63 }
 0xc3a   :  { %3307 = vmatmul.mubr.f32.vlgmr.msra.gmra.mxu0 %v3240_v18  ;;  %3378 = vmatmul.mubr.f32.vlgmr.msra.gmra.mxu1 %v3240_v18  ;;  %v6636_v18 = vld [vmem:[#allocation8 + $0x18] sm:$0xff] }
 0xc3b   :  { %3416 = vmatpush1.msra.mxu0 %v6385_v26  ;;  %3487 = vmatpush1.msra.mxu1 %v6388_v9  ;;  %7519 = vst [vmem:[#allocation44_spill] sm:$0xff] %v6636_v18 }
 0xc3c   :  { %3417 = vmatprep.subr.mxu0 %v6391_v37  ;;  %3488 = vmatprep.subr.mxu1 %v6394_v21 }
 0xc3d   :  { %3418 = vmatpush1.msra.mxu0 %v6397_v0  ;;  %3489 = vmatpush1.msra.mxu1 %v6400_v42 }
 0xc3e   :  { %3419 = vmatprep.subr.mxu0 %v6403_v51  ;;  %3490 = vmatprep.subr.mxu1 %v6406_v47 }
 0xc3f   :  { %3420 = vmatpush1.msra.mxu0 %v6409_v60  ;;  %3491 = vmatpush1.msra.mxu1 %v6412_v52 }
 0xc40   :  { %3421 = vmatprep.subr.mxu0 %v6415_v3  ;;  %3492 = vmatprep.subr.mxu1 %v6418_v44 }
 0xc41   :  { %3422 = vmatpush1.msra.mxu0 %v6421_v2  ;;  %3493 = vmatpush1.msra.mxu1 %v6424_v46 }
 0xc42   :  { %3423 = vmatprep.subr.mxu0 %v6427_v4  ;;  %3494 = vmatprep.subr.mxu1 %v6430_v55 }
 0xc43   :  { %3424 = vmatpush1.msra.mxu0 %v6433_v11  ;;  %3495 = vmatpush1.msra.mxu1 %v6436_v12 }
 0xc44   :  { %3425 = vmatprep.subr.mxu0 %v6439_v40  ;;  %3496 = vmatprep.subr.mxu1 %v6442_v14 }
 0xc45   :  { %3426 = vmatpush1.msra.mxu0 %v6445_v17  ;;  %3497 = vmatpush1.msra.mxu1 %v6448_v19 }
 0xc46   :  { %3427 = vmatprep.subr.mxu0 %v6451_v41  ;;  %3498 = vmatprep.subr.mxu1 %v6454_v5 }
 0xc47   :  { %3428 = vmatpush1.msra.mxu0 %v6457_v15  ;;  %3499 = vmatpush1.msra.mxu1 %v6460_v49 }
 0xc48   :  { %3429 = vmatprep.subr.mxu0 %v6463_v48  ;;  %3500 = vmatprep.subr.mxu1 %v6466_v28 }
 0xc49   :  { %3430 = vmatpush1.msra.mxu0 %v6469_v35  ;;  %3501 = vmatpush1.msra.mxu1 %v6472_v25 }
 0xc4a   :  { %3431 = vmatprep.subr.mxu0 %v6475_v10  ;;  %3502 = vmatprep.subr.mxu1 %v6478_v22 }
 0xc4b   :  { %3432 = vmatpush1.msra.mxu0 %v6481_v54  ;;  %3503 = vmatpush1.msra.mxu1 %v7499_v29 }
 0xc4c   :  { %3433 = vmatprep.subr.mxu0 %v7500_v13  ;;  %3504 = vmatprep.subr.mxu1 %v7501_v58 }
 0xc4d   :  { %3434 = vmatpush1.msra.mxu0 %v7502_v16  ;;  %3505 = vmatpush1.msra.mxu1 %v7503_v50 }
 0xc4e   :  { %3435 = vmatprep.subr.mxu0 %v7504_v62  ;;  %3506 = vmatprep.subr.mxu1 %v6502_v8 }
 0xc4f   :  { %3436 = vmatpush1.msra.mxu0 %v6505_v6  ;;  %3507 = vmatpush1.msra.mxu1 %v6508_v32 }
 0xc50   :  { %3437 = vmatprep.subr.mxu0 %v6511_v24  ;;  %3508 = vmatprep.subr.mxu1 %v6514_v39 }
 0xc51   :  { %3438 = vmatpush1.msra.mxu0 %v6517_v27  ;;  %3509 = vmatpush1.msra.mxu1 %v6594_v23 }
 0xc52   :  { %3439 = vmatprep.subr.mxu0 %v6597_v53  ;;  %3510 = vmatprep.subr.mxu1 %v6600_v33  ;;  %v7529_v33 = vld [vmem:[#allocation13_spill] sm:$0xff]  ;;  %v7531_v53 = vld [vmem:[#allocation16_spill] sm:$0xff] }
 0xc53   :  { %3440 = vmatpush1.msra.mxu0 %v6603_v30  ;;  %3511 = vmatpush1.msra.mxu1 %v6606_v38  ;;  %v7528_v30 = vld [vmem:[#allocation45_spill] sm:$0xff] }
 0xc54   :  { %3441 = vmatprep.subr.mxu0 %v6609_v31  ;;  %3512 = vmatprep.subr.mxu1 %v6612_v36 }
 0xc55   :  { %3442 = vmatpush1.msra.mxu0 %v6615_v34  ;;  %3513 = vmatpush1.msra.mxu1 %v6618_v57  ;;  %v7525_v57 = vld [vmem:[#allocation41_spill] sm:$0xff]  ;;  %v7526_v34 = vld [vmem:[#allocation42_spill] sm:$0xff] }
 0xc56   :  { %3443 = vmatprep.subr.mxu0 %v6621_v43  ;;  %3514 = vmatprep.subr.mxu1 %v6624_v45  ;;  %v6639_v43 = vld [vmem:[#allocation8] sm:$0xff]  ;;  %v6643_v45 = vld [vmem:[#allocation8 + $0x10] sm:$0xff] }
 0xc57   :  { %3444 = vmatpush1.msra.mxu0 %v6627_v7  ;;  %3515 = vmatpush1.msra.mxu1 %v6630_v61  ;;  %7520 = vst [vmem:[#allocation15_spill] sm:$0xff] %v6639_v43  ;;  %7521 = vst [vmem:[#allocation26_spill] sm:$0xff] %v6643_v45  ;;  %v7523_v61 = vld [vmem:[#allocation39_spill] sm:$0xff] }
 0xc58   :  { %3445 = vmatprep.subr.mxu0 %v6633_v63  ;;  %3516 = vmatprep.subr.mxu1 %v6636_v18  ;;  %v7522_v63 = vld [vmem:[#allocation40_spill] sm:$0xff] }
 0xc59   :  { %3446 = vmatpush1.msra.mxu0 %v6639_v43  ;;  %3479 = vmatprep.mubr.f32.mxu0 %v7486_v56  ;;  %v6651_v7 = vadd.f32 %v7523_v61, %v7522_v63  ;;  %v6655_v43 = vadd.f32 %v7526_v34, %v7525_v57  ;;  %v6661_v61 = vadd.f32 %v7529_v33, %v7528_v30  ;;  %v7532_v34 = vld [vmem:[#allocation43_spill] sm:$0xff] }
 0xc5a   :  { %3517 = vmatpush1.msra.mxu1 %v6643_v45  ;;  %3550 = vmatprep.mubr.f32.mxu1 %v7486_v56  ;;  %v6666_v57 = vadd.f32 %v7532_v34, %v7531_v53 }
 0xc5b   :  { %3603 = vmatprep.subr.mxu0 %v6371_v20  ;;  %3674 = vmatprep.subr.mxu1 %v6374_v1  ;;  %7524 = vst [vmem:[#allocation17_spill] sm:$0xff] %v6651_v7  ;;  %7527 = vst [vmem:[#allocation28_spill] sm:$0xff] %v6655_v43 }
 0xc5c   :  { %7530 = vst [vmem:[#allocation18_spill] sm:$0xff] %v6661_v61 }
 0xcfa   :  { %v3308_v18 = vpop.f32.mrf.mxu0  ;;  %v3379_v56 = vpop.f32.mrf.mxu1 }
 0xcfb   :  { %v3384_v36 = vadd.f32 %v3308_v18, %v6651_v7 }
 0xcfc   :  { %v3310_v31 = vpop.f32.mrf.mxu0  ;;  %v3381_v1 = vpop.f32.mrf.mxu1 }
 0xcfd   :  { %v4167_v38 = vmul.f32 -1.442695, %v3384_v36  ;;  %v3385_v45 = vadd.f32 %v3310_v31, %v6655_v43  ;;  %v3387_v63 = vadd.f32 %v3381_v1, %v6661_v61  ;;  %v3386_v36 = vadd.f32 %v3379_v56, %v6666_v57 }
 0xcfe   :  { %v3408_v1 = vrot.slane %v6546_v59, 6  ;;  %v7533_v59 = vld [vmem:[#allocation31_spill] sm:$0xff] }
 0xcff   :  { %4562 = vpow2.f32 %v4167_v38  ;;  %v4168_v20 = vmul.f32 -1.442695, %v3385_v45  ;;  %v4169_v18 = vmul.f32 -1.442695, %v3387_v63 }
 0xd01   :  { %4564 = vpow2.f32 %v4168_v20 }
 0xd02   :  { %4566 = vpow2.f32 %v4169_v18 }
 0xd0c   :  { %v4563_v7 = vpop.eup %4562 }
 0xd0d   :  { %v3391_v31 = vadd.f32 1.0, %v4563_v7 }
 0xd0e   :  { %v4565_v38 = vpop.eup %4564 }
 0xd0f   :  { %4568 = vrcp.f32 %v3391_v31  ;;  %v3397_v20 = vadd.f32 1.0, %v4565_v38  ;;  %v4567_v45 = vpop.eup %4566  ;;  %v7537_v31 = vld [vmem:[#allocation33_spill] sm:$0xff]  ;;  %v7538_v38 = vld [vmem:[#allocation23_spill] sm:$0xff] }
 0xd10   :  { %4570 = vtanh.f32 %v3386_v36  ;;  %v3404_v43 = vadd.f32 1.0, %v4567_v45  ;;  %v7536_v36 = vld [vmem:[#allocation22_spill] sm:$0xff]  ;;  %v7540_v45 = vld [vmem:[#allocation24_spill] sm:$0xff] }
 0xd11   :  { %4572 = vrcp.f32 %v3397_v20  ;;  %v7539_v20 = vld [vmem:[#allocation34_spill] sm:$0xff] }
 0xd12   :  { %4574 = vrcp.f32 %v3404_v43  ;;  %v7534_v43 = vld [vmem:[#allocation21_spill] sm:$0xff] }
 0xd1c   :  { %v4569_v33 = vpop.eup %4568 }
 0xd1d   :  { %v4571_v30 = vpop.eup %4570 }
 0xd1e   :  { %v4573_v61 = vpop.eup %4572  ;;  %v3411_v53 = vmul.f32 %v4571_v30, %v4569_v33  ;;  %v7541_v33 = vld [vmem:[#allocation35_spill] sm:$0xff]  ;;  %v7542_v30 = vld [vmem:[#allocation25_spill] sm:$0xff] }
 0xd1f   :  { %v3410_v34 = vmul.f32 %v4573_v61, %v3408_v1  ;;  %v4575_v56 = vpop.eup %4574  ;;  %v7535_v61 = vld [vmem:[#allocation32_spill] sm:$0xff] }
 0xd20   :  { %v7543_v1 = vld [vmem:[#allocation36_spill] sm:$0xff] }
 0xd21   :  { %v6670_v63 = vadd.f32 %v3411_v53, %v3410_v34  ;;  %v7544_v53 = vld [vmem:[#allocation14_spill] sm:$0xff] }
 0xd22   :  { %v7545_v34 = vld [vmem:[#allocation38_spill] sm:$0xff] }
 0xd23   :  { %4576 = vtanh.f32 %v6670_v63 }
 0xd30   :  { %v4577_v7 = vpop.eup %4576 }
 0xd31   :  { %v3414_v18 = vmul.f32 %v4577_v7, %v4575_v56  ;;  %v7546_v56 = vld [vmem:[#allocation44_spill] sm:$0xff]  ;;  %v7547_v7 = vld [vmem:[#allocation15_spill] sm:$0xff] }
 0xd33   :  { %3480 = vmatmul.mubr.f32.vlgmr.msra.gmra.mxu0 %v3414_v18  ;;  %3551 = vmatmul.mubr.f32.vlgmr.msra.gmra.mxu1 %v3414_v18  ;;  %v7548_v18 = vmov 0.0  }
 0xd34   :  { %3604 = vmatpush1.msra.mxu0 %v6385_v26  ;;  %3675 = vmatpush1.msra.mxu1 %v6388_v9 }
 0xd35   :  { %3605 = vmatprep.subr.mxu0 %v6391_v37  ;;  %3676 = vmatprep.subr.mxu1 %v6394_v21 }
 0xd36   :  { %3606 = vmatpush1.msra.mxu0 %v6397_v0  ;;  %3677 = vmatpush1.msra.mxu1 %v6400_v42 }
 0xd37   :  { %3607 = vmatprep.subr.mxu0 %v6403_v51  ;;  %3678 = vmatprep.subr.mxu1 %v6406_v47 }
 0xd38   :  { %3608 = vmatpush1.msra.mxu0 %v6409_v60  ;;  %3679 = vmatpush1.msra.mxu1 %v6412_v52 }
 0xd39   :  { %3609 = vmatprep.subr.mxu0 %v6415_v3  ;;  %3680 = vmatprep.subr.mxu1 %v6418_v44 }
 0xd3a   :  { %3610 = vmatpush1.msra.mxu0 %v6421_v2  ;;  %3681 = vmatpush1.msra.mxu1 %v6424_v46 }
 0xd3b   :  { %3611 = vmatprep.subr.mxu0 %v6427_v4  ;;  %3682 = vmatprep.subr.mxu1 %v6430_v55 }
 0xd3c   :  { %3612 = vmatpush1.msra.mxu0 %v6433_v11  ;;  %3683 = vmatpush1.msra.mxu1 %v6436_v12 }
 0xd3d   :  { %3613 = vmatprep.subr.mxu0 %v6439_v40  ;;  %3684 = vmatprep.subr.mxu1 %v6442_v14 }
 0xd3e   :  { %3614 = vmatpush1.msra.mxu0 %v6445_v17  ;;  %3685 = vmatpush1.msra.mxu1 %v6448_v19 }
 0xd3f   :  { %3615 = vmatprep.subr.mxu0 %v6451_v41  ;;  %3686 = vmatprep.subr.mxu1 %v6454_v5 }
 0xd40   :  { %3616 = vmatpush1.msra.mxu0 %v6457_v15  ;;  %3687 = vmatpush1.msra.mxu1 %v6460_v49 }
 0xd41   :  { %3617 = vmatprep.subr.mxu0 %v6463_v48  ;;  %3688 = vmatprep.subr.mxu1 %v6466_v28 }
 0xd42   :  { %3618 = vmatpush1.msra.mxu0 %v6469_v35  ;;  %3689 = vmatpush1.msra.mxu1 %v6472_v25 }
 0xd43   :  { %3619 = vmatprep.subr.mxu0 %v6475_v10  ;;  %3690 = vmatprep.subr.mxu1 %v6478_v22 }
 0xd44   :  { %3620 = vmatpush1.msra.mxu0 %v6481_v54  ;;  %3691 = vmatpush1.msra.mxu1 %v7499_v29 }
 0xd45   :  { %3621 = vmatprep.subr.mxu0 %v7500_v13  ;;  %3692 = vmatprep.subr.mxu1 %v7501_v58 }
 0xd46   :  { %3622 = vmatpush1.msra.mxu0 %v7502_v16  ;;  %3693 = vmatpush1.msra.mxu1 %v7503_v50 }
 0xd47   :  { %3623 = vmatprep.subr.mxu0 %v7504_v62  ;;  %3694 = vmatprep.subr.mxu1 %v6502_v8 }
 0xd48   :  { %3624 = vmatpush1.msra.mxu0 %v6505_v6  ;;  %3695 = vmatpush1.msra.mxu1 %v6508_v32 }
 0xd49   :  { %3625 = vmatprep.subr.mxu0 %v6511_v24  ;;  %3696 = vmatprep.subr.mxu1 %v6514_v39 }
 0xd4a   :  { %3626 = vmatpush1.msra.mxu0 %v6517_v27  ;;  %3697 = vmatpush1.msra.mxu1 %v6594_v23 }
 0xd4b   :  { %3627 = vmatprep.subr.mxu0 %v7533_v59  ;;  %3698 = vmatprep.subr.mxu1 %v7534_v43 }
 0xd4c   :  { %3628 = vmatpush1.msra.mxu0 %v7535_v61  ;;  %3699 = vmatpush1.msra.mxu1 %v7536_v36  ;;  %v7553_v61 = vld [vmem:[#allocation28_spill] sm:$0xff] }
 0xd4d   :  { %3629 = vmatprep.subr.mxu0 %v7537_v31  ;;  %3700 = vmatprep.subr.mxu1 %v7538_v38  ;;  %v7549_v38 = vld [vmem:[#allocation26_spill] sm:$0xff] }
 0xd4e   :  { %3630 = vmatpush1.msra.mxu0 %v7539_v20  ;;  %3701 = vmatpush1.msra.mxu1 %v7540_v45  ;;  %v7550_v45 = vld [vmem:[#allocation27_spill] sm:$0xff] }
 0xd4f   :  { %3631 = vmatprep.subr.mxu0 %v7541_v33  ;;  %3702 = vmatprep.subr.mxu1 %v7542_v30  ;;  %v7551_v33 = vld [vmem:[#allocation37_spill] sm:$0xff] }
 0xd50   :  { %3632 = vmatpush1.msra.mxu0 %v7543_v1  ;;  %3703 = vmatpush1.msra.mxu1 %v7544_v53  ;;  %v7552_v53 = vld [vmem:[#allocation17_spill] sm:$0xff] }
 0xd51   :  { %3633 = vmatprep.subr.mxu0 %v7545_v34  ;;  %3704 = vmatprep.subr.mxu1 %v7546_v56 }
 0xd52   :  { %3634 = vmatpush1.msra.mxu0 %v7547_v7  ;;  %3667 = vmatprep.mubr.f32.mxu0 %v7548_v18 }
 0xd53   :  { %3705 = vmatpush1.msra.mxu1 %v7549_v38  ;;  %3738 = vmatprep.mubr.f32.mxu1 %v7548_v18  ;;  %v7554_v18 = vld [vmem:[#allocation18_spill] sm:$0xff] }
 0xd54   :  { %3791 = vmatprep.subr.mxu0 %v7550_v45  ;;  %3862 = vmatprep.subr.mxu1 %v7551_v33 }
 0xdf3   :  { %v3481_v30 = vpop.f32.mrf.mxu0  ;;  %v3552_v34 = vpop.f32.mrf.mxu1 }
 0xdf4   :  { %v3561_v1 = vrot.slane %v3481_v30, 6  ;;  %v3563_v45 = vrot.slane %v3552_v34, 6 }
 0xdf5   :  { %v3483_v20 = vpop.f32.mrf.mxu0  ;;  %v3554_v59 = vpop.f32.mrf.mxu1 }
 0xdf6   :  { %v3569_v31 = vadd.f32 %v3561_v1, %v7552_v53  ;;  %v3562_v36 = vrot.slane %v3483_v20, 6  ;;  %v3564_v38 = vrot.slane %v3554_v59, 6  ;;  %v3571_v30 = vadd.f32 %v3563_v45, %v6666_v57 }
 0xdf8   :  { %v4170_v56 = vmul.f32 -1.442695, %v3569_v31  ;;  %v3570_v7 = vadd.f32 %v3562_v36, %v7553_v61  ;;  %v3572_v23 = vadd.f32 %v3564_v38, %v7554_v18 }
 0xdfa   :  { %4578 = vpow2.f32 %v4170_v56  ;;  %v4171_v43 = vmul.f32 -1.442695, %v3570_v7  ;;  %v4172_v27 = vmul.f32 -1.442695, %v3572_v23 }
 0xdfc   :  { %4580 = vpow2.f32 %v4171_v43  ;;  %v3593_v43 = vrot.slane %v6670_v63, 6 }
 0xdfd   :  { %4582 = vpow2.f32 %v4172_v27 }
 0xe07   :  { %v4579_v33 = vpop.eup %4578 }
 0xe08   :  { %v3576_v39 = vadd.f32 1.0, %v4579_v33 }
 0xe09   :  { %v4581_v24 = vpop.eup %4580 }
 0xe0a   :  { %4584 = vrcp.f32 %v3576_v39  ;;  %v3582_v20 = vadd.f32 1.0, %v4581_v24  ;;  %v4583_v36 = vpop.eup %4582 }
 0xe0b   :  { %4586 = vtanh.f32 %v3571_v30  ;;  %v3589_v56 = vadd.f32 1.0, %v4583_v36 }
 0xe0c   :  { %4588 = vrcp.f32 %v3582_v20 }
 0xe0d   :  { %4590 = vrcp.f32 %v3589_v56 }
 0xe17   :  { %v4585_v31 = vpop.eup %4584 }
 0xe18   :  { %v4587_v1 = vpop.eup %4586 }
 0xe19   :  { %v4589_v59 = vpop.eup %4588  ;;  %v3596_v38 = vmul.f32 %v4587_v1, %v4585_v31 }
 0xe1a   :  { %v3595_v34 = vmul.f32 %v4589_v59, %v3593_v43  ;;  %v4591_v7 = vpop.eup %4590 }
 0xe1c   :  { %v6744_v23 = vadd.f32 %v3596_v38, %v3595_v34  ;;  %v3996_v38 = vld [vmem:[%s6908_s7 + $0x78] sm:$0xff]  ;;  %v3995_v34 = vld [vmem:[%s6908_s7 + $0x70] sm:$0xff] }
 0xe1e   :  { %4592 = vtanh.f32 %v6744_v23  ;;  %v3781_v45 = vrot.slane %v6744_v23, 6  ;;  %v3994_v23 = vld [vmem:[%s6908_s7 + $0x68] sm:$0xff] }
 0xe2b   :  { %v4593_v27 = vpop.eup %4592 }
 0xe2c   :  { %v3599_v39 = vmul.f32 %v4593_v27, %v4591_v7  ;;  %v3993_v7 = vld [vmem:[%s6908_s7 + $0x60] sm:$0xff]  ;;  %v3992_v27 = vld [vmem:[%s6908_s7 + $0x58] sm:$0xff] }
 0xe2e   :  { %v3601_v24 = vrot.slane %v3599_v39, 2  ;;  %v3991_v39 = vld [vmem:[%s6908_s7 + $0x50] sm:$0xff] }
 0xe30   :  { %3668 = vmatmul.mubr.f32.vlgmr.msra.gmra.mxu0 %v3601_v24  ;;  %3739 = vmatmul.mubr.f32.vlgmr.msra.gmra.mxu1 %v3601_v24  ;;  %v3990_v24 = vld [vmem:[%s6908_s7 + $0x48] sm:$0xff] }
 0xe31   :  { %3792 = vmatpush1.msra.mxu0 %v6385_v26  ;;  %3863 = vmatpush1.msra.mxu1 %v6388_v9  ;;  %v7555_v26 = vld [vmem:[#allocation29_spill] sm:$0xff]  ;;  %v7556_v9 = vld [vmem:[#allocation19_spill] sm:$0xff] }
 0xe32   :  { %3793 = vmatprep.subr.mxu0 %v6391_v37  ;;  %3864 = vmatprep.subr.mxu1 %v6394_v21  ;;  %v7557_v37 = vld [vmem:[#allocation30_spill] sm:$0xff]  ;;  %v7558_v21 = vld [vmem:[#allocation20_spill] sm:$0xff] }
 0xe33   :  { %3794 = vmatpush1.msra.mxu0 %v6397_v0  ;;  %3865 = vmatpush1.msra.mxu1 %v6400_v42  ;;  %v7559_v0 = vld [vmem:[#allocation31_spill] sm:$0xff]  ;;  %v7560_v42 = vld [vmem:[#allocation21_spill] sm:$0xff] }
 0xe34   :  { %3795 = vmatprep.subr.mxu0 %v6403_v51  ;;  %3866 = vmatprep.subr.mxu1 %v6406_v47  ;;  %v7561_v51 = vld [vmem:[#allocation32_spill] sm:$0xff]  ;;  %v7562_v47 = vld [vmem:[#allocation22_spill] sm:$0xff] }
 0xe35   :  { %3796 = vmatpush1.msra.mxu0 %v6409_v60  ;;  %3867 = vmatpush1.msra.mxu1 %v6412_v52  ;;  %v7563_v60 = vld [vmem:[#allocation33_spill] sm:$0xff]  ;;  %v7564_v52 = vld [vmem:[#allocation23_spill] sm:$0xff] }
 0xe36   :  { %3797 = vmatprep.subr.mxu0 %v6415_v3  ;;  %3868 = vmatprep.subr.mxu1 %v6418_v44  ;;  %v7565_v3 = vld [vmem:[#allocation34_spill] sm:$0xff]  ;;  %v7566_v44 = vld [vmem:[#allocation24_spill] sm:$0xff] }
 0xe37   :  { %3798 = vmatpush1.msra.mxu0 %v6421_v2  ;;  %3869 = vmatpush1.msra.mxu1 %v6424_v46  ;;  %v7567_v2 = vld [vmem:[#allocation35_spill] sm:$0xff]  ;;  %v7568_v46 = vld [vmem:[#allocation25_spill] sm:$0xff] }
 0xe38   :  { %3799 = vmatprep.subr.mxu0 %v6427_v4  ;;  %3870 = vmatprep.subr.mxu1 %v6430_v55  ;;  %v7569_v4 = vld [vmem:[#allocation36_spill] sm:$0xff]  ;;  %v7570_v55 = vld [vmem:[#allocation14_spill] sm:$0xff] }
 0xe39   :  { %3800 = vmatpush1.msra.mxu0 %v6433_v11  ;;  %3871 = vmatpush1.msra.mxu1 %v6436_v12  ;;  %v7571_v11 = vld [vmem:[#allocation38_spill] sm:$0xff]  ;;  %v7572_v12 = vld [vmem:[#allocation44_spill] sm:$0xff] }
 0xe3a   :  { %3801 = vmatprep.subr.mxu0 %v6439_v40  ;;  %3872 = vmatprep.subr.mxu1 %v6442_v14  ;;  %v7573_v40 = vld [vmem:[#allocation15_spill] sm:$0xff]  ;;  %v7574_v14 = vmov 0.0  }
 0xe3b   :  { %3802 = vmatpush1.msra.mxu0 %v6445_v17  ;;  %3873 = vmatpush1.msra.mxu1 %v6448_v19  ;;  %v7575_v17 = vld [vmem:[#allocation26_spill] sm:$0xff] }
 0xe3c   :  { %3803 = vmatprep.subr.mxu0 %v6451_v41  ;;  %3874 = vmatprep.subr.mxu1 %v6454_v5 }
 0xe3d   :  { %3804 = vmatpush1.msra.mxu0 %v6457_v15  ;;  %3875 = vmatpush1.msra.mxu1 %v6460_v49 }
 0xe3e   :  { %3805 = vmatprep.subr.mxu0 %v6463_v48  ;;  %3876 = vmatprep.subr.mxu1 %v6466_v28 }
 0xe3f   :  { %3806 = vmatpush1.msra.mxu0 %v6469_v35  ;;  %3877 = vmatpush1.msra.mxu1 %v6472_v25 }
 0xe40   :  { %3807 = vmatprep.subr.mxu0 %v6475_v10  ;;  %3878 = vmatprep.subr.mxu1 %v6478_v22 }
 0xe41   :  { %3808 = vmatpush1.msra.mxu0 %v6481_v54  ;;  %3879 = vmatpush1.msra.mxu1 %v7499_v29 }
 0xe42   :  { %3809 = vmatprep.subr.mxu0 %v7500_v13  ;;  %3880 = vmatprep.subr.mxu1 %v7501_v58 }
 0xe43   :  { %3810 = vmatpush1.msra.mxu0 %v7502_v16  ;;  %3881 = vmatpush1.msra.mxu1 %v7503_v50 }
 0xe44   :  { %3811 = vmatprep.subr.mxu0 %v7504_v62  ;;  %3882 = vmatprep.subr.mxu1 %v6502_v8 }
 0xe45   :  { %3812 = vmatpush1.msra.mxu0 %v6505_v6  ;;  %3883 = vmatpush1.msra.mxu1 %v6508_v32 }
 0xe46   :  { %3813 = vmatprep.subr.mxu0 %v7555_v26  ;;  %3884 = vmatprep.subr.mxu1 %v7556_v9  ;;  %v3989_v26 = vld [vmem:[%s6908_s7 + $0x40] sm:$0xff]  ;;  %v3988_v9 = vld [vmem:[%s6908_s7 + $0x38] sm:$0xff] }
 0xe47   :  { %3814 = vmatpush1.msra.mxu0 %v7557_v37  ;;  %3885 = vmatpush1.msra.mxu1 %v7558_v21  ;;  %v3987_v37 = vld [vmem:[%s6908_s7 + $0x30] sm:$0xff]  ;;  %v3986_v21 = vld [vmem:[%s6908_s7 + $0x28] sm:$0xff] }
 0xe48   :  { %3815 = vmatprep.subr.mxu0 %v7559_v0  ;;  %3886 = vmatprep.subr.mxu1 %v7560_v42  ;;  %v3985_v0 = vld [vmem:[%s6908_s7 + $0x20] sm:$0xff]  ;;  %v3984_v42 = vld [vmem:[%s6908_s7 + $0x18] sm:$0xff] }
 0xe49   :  { %3816 = vmatpush1.msra.mxu0 %v7561_v51  ;;  %3887 = vmatpush1.msra.mxu1 %v7562_v47  ;;  %v3983_v51 = vld [vmem:[%s6908_s7 + $0x10] sm:$0xff]  ;;  %v3982_v47 = vld [vmem:[%s6908_s7 + $0x8] sm:$0xff] }
 0xe4a   :  { %3817 = vmatprep.subr.mxu0 %v7563_v60  ;;  %3888 = vmatprep.subr.mxu1 %v7564_v52  ;;  %v3981_v60 = vld [vmem:[%s6908_s7] sm:$0xff] }
 0xe4b   :  { %3818 = vmatpush1.msra.mxu0 %v7565_v3  ;;  %3889 = vmatpush1.msra.mxu1 %v7566_v44 }
 0xe4c   :  { %3819 = vmatprep.subr.mxu0 %v7567_v2  ;;  %3890 = vmatprep.subr.mxu1 %v7568_v46 }
 0xe4d   :  { %3820 = vmatpush1.msra.mxu0 %v7569_v4  ;;  %3891 = vmatpush1.msra.mxu1 %v7570_v55 }
 0xe4e   :  { %3821 = vmatprep.subr.mxu0 %v7571_v11  ;;  %3892 = vmatprep.subr.mxu1 %v7572_v12 }
 0xe4f   :  { %3822 = vmatpush1.msra.mxu0 %v7573_v40  ;;  %3855 = vmatprep.mubr.f32.mxu0 %v7574_v14 }
 0xe50   :  { %3893 = vmatpush1.msra.mxu1 %v7575_v17  ;;  %3926 = vmatprep.mubr.f32.mxu1 %v7574_v14 }
 0xe51   :  { %4199 = vmatprep.subr.mxu0 %v7574_v14 }
 0xef0   :  { %v3669_v19 = vpop.f32.mrf.mxu0  ;;  %v3740_v49 = vpop.f32.mrf.mxu1 }
 0xef1   :  { %v3749_v41 = vrot.slane %v3669_v19, 4  ;;  %v3751_v8 = vrot.slane %v3740_v49, 4 }
 0xef2   :  { %v3671_v5 = vpop.f32.mrf.mxu0  ;;  %v3742_v10 = vpop.f32.mrf.mxu1 }
 0xef3   :  { %v3757_v15 = vadd.f32 %v3749_v41, %v7552_v53  ;;  %v3750_v48 = vrot.slane %v3671_v5, 4  ;;  %v3752_v22 = vrot.slane %v3742_v10, 4  ;;  %v3759_v29 = vadd.f32 %v3751_v8, %v6666_v57 }
 0xef5   :  { %v4173_v28 = vmul.f32 -1.442695, %v3757_v15  ;;  %v3758_v35 = vadd.f32 %v3750_v48, %v7553_v61  ;;  %v3760_v54 = vadd.f32 %v3752_v22, %v7554_v18 }
 0xef7   :  { %4594 = vpow2.f32 %v4173_v28  ;;  %v4174_v25 = vmul.f32 -1.442695, %v3758_v35  ;;  %v4175_v6 = vmul.f32 -1.442695, %v3760_v54 }
 0xef9   :  { %4596 = vpow2.f32 %v4174_v25 }
 0xefa   :  { %4598 = vpow2.f32 %v4175_v6 }
 0xf04   :  { %v4595_v32 = vpop.eup %4594 }
 0xf05   :  { %v3764_v13 = vadd.f32 1.0, %v4595_v32 }
 0xf06   :  { %v4597_v58 = vpop.eup %4596 }
 0xf07   :  { %4600 = vrcp.f32 %v3764_v13  ;;  %v3770_v16 = vadd.f32 1.0, %v4597_v58  ;;  %v4599_v50 = vpop.eup %4598  ;;  %v4181_v13 = vld [vmem:[%s6909_s8] ss:$0 sm:$0xff] }
 0xf08   :  { %4602 = vtanh.f32 %v3759_v29  ;;  %v3777_v30 = vadd.f32 1.0, %v4599_v50 }
 0xf09   :  { %4604 = vrcp.f32 %v3770_v16 }
 0xf0a   :  { %4606 = vrcp.f32 %v3777_v30 }
 0xf14   :  { %v4601_v62 = vpop.eup %4600 }
 0xf15   :  { %v4603_v63 = vpop.eup %4602 }
 0xf16   :  { %v4605_v33 = vpop.eup %4604  ;;  %v3784_v20 = vmul.f32 %v4603_v63, %v4601_v62 }
 0xf17   :  { %v3783_v36 = vmul.f32 %v4605_v33, %v3781_v45  ;;  %v4607_v1 = vpop.eup %4606 }
 0xf19   :  { %v6817_v31 = vadd.f32 %v3784_v20, %v3783_v36 }
 0xf1b   :  { %4608 = vtanh.f32 %v6817_v31  ;;  %v3969_v25 = vrot.slane %v6817_v31, 6 }
 0xf28   :  { %v4609_v43 = vpop.eup %4608 }
 0xf29   :  { %v3787_v59 = vmul.f32 %v4609_v43, %v4607_v1 }
 0xf2b   :  { %v3789_v56 = vrot.slane %v3787_v59, 4 }
 0xf2d   :  { %3856 = vmatmul.mubr.f32.vlgmr.msra.gmra.mxu0 %v3789_v56  ;;  %3927 = vmatmul.mubr.f32.vlgmr.msra.gmra.mxu1 %v3789_v56 }
 0xf2e   :  { %4200 = vmatpush3.msra.mxu0 %v3996_v38  ;;  %4231 = vmatprep.mubr.msk.f32.mxu0 %vm4846_vm10, %v7574_v14 }
 0xf2f   :  { %4201 = vmatprep.subr.mxu0 %v7574_v14 }
 0xf30   :  { %4202 = vmatpush3.msra.mxu0 %v3995_v34 }
 0xf31   :  { %4203 = vmatprep.subr.mxu0 %v7574_v14 }
 0xf32   :  { %4204 = vmatpush3.msra.mxu0 %v3994_v23 }
 0xf33   :  { %4205 = vmatprep.subr.mxu0 %v7574_v14 }
 0xf34   :  { %4206 = vmatpush3.msra.mxu0 %v3993_v7 }
 0xf35   :  { %4207 = vmatprep.subr.mxu0 %v7574_v14 }
 0xf36   :  { %4208 = vmatpush3.msra.mxu0 %v3992_v27 }
 0xf37   :  { %4209 = vmatprep.subr.mxu0 %v7574_v14 }
 0xf38   :  { %4210 = vmatpush3.msra.mxu0 %v3991_v39 }
 0xf39   :  { %4211 = vmatprep.subr.mxu0 %v7574_v14 }
 0xf3a   :  { %4212 = vmatpush3.msra.mxu0 %v3990_v24 }
 0xf3b   :  { %4213 = vmatprep.subr.mxu0 %v7574_v14 }
 0xf3c   :  { %4214 = vmatpush3.msra.mxu0 %v3989_v26 }
 0xf3d   :  { %4215 = vmatprep.subr.mxu0 %v7574_v14 }
 0xf3e   :  { %4216 = vmatpush3.msra.mxu0 %v3988_v9 }
 0xf3f   :  { %4217 = vmatprep.subr.mxu0 %v7574_v14 }
 0xf40   :  { %4218 = vmatpush3.msra.mxu0 %v3987_v37 }
 0xf41   :  { %4219 = vmatprep.subr.mxu0 %v7574_v14 }
 0xf42   :  { %4220 = vmatpush3.msra.mxu0 %v3986_v21 }
 0xf43   :  { %4221 = vmatprep.subr.mxu0 %v7574_v14 }
 0xf44   :  { %4222 = vmatpush3.msra.mxu0 %v3985_v0 }
 0xf45   :  { %4223 = vmatprep.subr.mxu0 %v7574_v14 }
 0xf46   :  { %4224 = vmatpush3.msra.mxu0 %v3984_v42 }
 0xf47   :  { %4225 = vmatprep.subr.mxu0 %v7574_v14 }
 0xf48   :  { %4226 = vmatpush3.msra.mxu0 %v3983_v51 }
 0xf49   :  { %4227 = vmatprep.subr.mxu0 %v7574_v14 }
 0xf4a   :  { %4228 = vmatpush3.msra.mxu0 %v3982_v47 }
 0xf4b   :  { %4229 = vmatprep.subr.mxu0 %v7574_v14 }
 0xf4c   :  { %4230 = vmatpush3.msra.mxu0 %v3981_v60 }
 0xfed   :  { %v3857_v52 = vpop.f32.mrf.mxu0  ;;  %v3928_v46 = vpop.f32.mrf.mxu1 }
 0xfee   :  { %v3937_v3 = vrot.slane %v3857_v52, 2  ;;  %v3939_v41 = vrot.slane %v3928_v46, 2 }
 0xfef   :  { %v3859_v44 = vpop.f32.mrf.mxu0  ;;  %v3930_v40 = vpop.f32.mrf.mxu1 }
 0xff0   :  { %v3945_v2 = vadd.f32 %v3937_v3, %v7552_v53  ;;  %v3938_v4 = vrot.slane %v3859_v44, 2  ;;  %v3940_v17 = vrot.slane %v3930_v40, 2  ;;  %v3947_v15 = vadd.f32 %v3939_v41, %v6666_v57 }
 0xff2   :  { %v4176_v55 = vmul.f32 -1.442695, %v3945_v2  ;;  %v3946_v11 = vadd.f32 %v3938_v4, %v7553_v61  ;;  %v3948_v19 = vadd.f32 %v3940_v17, %v7554_v18 }
 0xff4   :  { %4610 = vpow2.f32 %v4176_v55  ;;  %v4177_v12 = vmul.f32 -1.442695, %v3946_v11  ;;  %v4178_v14 = vmul.f32 -1.442695, %v3948_v19 }
 0xff6   :  { %4612 = vpow2.f32 %v4177_v12 }
 0xff7   :  { %4614 = vpow2.f32 %v4178_v14 }
0x1001   :  { %v4611_v5 = vpop.eup %4610 }
0x1002   :  { %v3952_v49 = vadd.f32 1.0, %v4611_v5 }
0x1003   :  { %v4613_v48 = vpop.eup %4612 }
0x1004   :  { %4616 = vrcp.f32 %v3952_v49  ;;  %v3958_v53 = vadd.f32 1.0, %v4613_v48  ;;  %v4615_v61 = vpop.eup %4614 }
0x1005   :  { %4618 = vtanh.f32 %v3947_v15  ;;  %v3965_v22 = vadd.f32 1.0, %v4615_v61 }
0x1006   :  { %4620 = vrcp.f32 %v3958_v53 }
0x1007   :  { %4622 = vrcp.f32 %v3965_v22 }
0x1011   :  { %v4617_v28 = vpop.eup %4616 }
0x1012   :  { %v4619_v35 = vpop.eup %4618 }
0x1013   :  { %v4621_v10 = vpop.eup %4620  ;;  %v3972_v18 = vmul.f32 %v4619_v35, %v4617_v28 }
0x1014   :  { %v3971_v54 = vmul.f32 %v4621_v10, %v3969_v25  ;;  %v4623_v57 = vpop.eup %4622 }
0x1016   :  { %v3973_v8 = vadd.f32 %v3972_v18, %v3971_v54 }
0x1018   :  { %4624 = vtanh.f32 %v3973_v8  ;;  %4180 = vst.msk [vmem:[%s6912_s11 - $0x4] sm:$0xc0] %vm3977_vm11, %v3973_v8  ;;  %s4814_s11 = scalar_lea.vmem %s4086_s30, 32 }
0x1019   :  { %p4815_p1 = scmp.ne.s32.totalorder %s4086_s30, %s4814_s11  ;;  %p4820_p3 = scmp.lt.s32.totalorder %s4814_s11, %s4814_s11 }
0x101b   :  { %p4821_p4 = por %p4820_p3, %p4819_p2 }
0x101d   :  { %p4822_p5 = pnand %p4821_p4, %p4815_p1 }
0x1025   :  { %v4625_v6 = vpop.eup %4624 }
0x1026   :  { %v3975_v32 = vmul.f32 %v4625_v6, %v4623_v57 }
0x1028   :  { %4179 = vst.msk [vmem:[%s6911_s10 - $0x4] sm:$0xc0] %vm3977_vm11, %v3975_v32  ;;  %v4005_v29 = vrot.slane %v3975_v32, 6 }
0x102a   :  { %4232 = vmatmul.mubr.f32.vlgmr.msra.gmra.mxu0 %v4005_v29 }
0x10ea   :  { %v4073_v58 = vpop.f32.mrf.mxu0 }
0x10eb   :  { %v4074_v16 = vadd.f32 %v4181_v13, %v4073_v58 }
0x10ec   :  { %v4233_v50 = vpop.f32.mrf.mxu0 }
0x10ed   :  { %4078 = vst.msk [vmem:[#allocation9] sm:$0x3] %vm4077_vm12, %v4074_v16 }
0x10ee   :  { %4825 = shalt.err (!%p4822_p5)
}
0x10ef   :  { %4088 = dma.vmem_to_hbm [thread:$0]  %s4086_s30, 32, %s6910_s9, [#allocation5]  }
0x10f0   :  { %4838 = dma.done.wait [#allocation5], 32  }
0x10f1   :  { %4839 = vsyncadd [#allocation5], 4294967264 }
0x10f2   :  { %4100 = vsyncpa [#allocation4], 1 }
0x10f3   :  { %4101 = vsyncpa [#allocation7], 1 }
0x10f4   :  { %4102 = vsyncpa [#allocation5], 1 }

</bundles_post_ra>
